<compile_context>
chip_gen: v5e
topology: v5e:2x2
jax: 0.10.0
libtpu: 0.0.40
codegen_flags: <defaults>
</compile_context>

<pallas_src>
import functools

import numpy as np
import jax
import jax.numpy as jnp
from jax import lax
from jax.experimental import pallas as pl
from jax.experimental.pallas import tpu as pltpu


# --------------------------------------------------------------------------- #
# VMEM budgeting (generation aware: v5e/v6e 128 MiB, v7x 64 MiB per TC)
# --------------------------------------------------------------------------- #

@functools.lru_cache(maxsize=None)
def _vmem_limit_bytes():
    cap = 64 * 1024 * 1024
    try:
        cap = int(pltpu.get_tpu_info().vmem_capacity_bytes)
    except Exception:
        pass
    return max(32 * 1024 * 1024, min(int(cap * 0.7), 112 * 1024 * 1024))


def _round_up(v, m):
    return ((v + m - 1) // m) * m


def _pick_row_tile(rows, c, hidden, vmem_limit):
    """MXU-friendly row tile: target 512 rows (multiple of 8), keep >=2 grid
    steps (v7x dual-TC), stay under ~half of the scoped-VMEM budget."""
    tr = min(512, _round_up(rows, 8))
    if rows >= 16:
        tr = min(tr, _round_up(pl.cdiv(rows, 2), 8))     # >= 2 grid steps
    weight_bytes = 2 * c * hidden * 2 + (c + hidden) * 4  # bf16 W1/W2 + biases

    def est(t):
        # 2 f32 inputs + 1 f32 output (double buffered) + hidden intermediates.
        return weight_bytes + t * (3 * c * 4 * 2 + hidden * 6 + c * 6)

    while tr > 8 and est(tr) > vmem_limit // 2:
        tr = _round_up(tr // 2, 8)
    return max(tr, 8)


# --------------------------------------------------------------------------- #
# in-kernel helpers
# --------------------------------------------------------------------------- #

def _gelu_tanh(x):
    # tanh-form GELU: the transcendental runs on the EUP, keeping VALU free.
    # TODO(synk): nn.GELU uses exact erf; tanh form differs by < ~3e-4 abs.
    c = 0.7978845608028654  # sqrt(2/pi)
    return 0.5 * x * (1.0 + jnp.tanh(c * (x + 0.044715 * (x * x * x))))


# --------------------------------------------------------------------------- #
# kernel 1: fused LN1 + padded/shifted window attention
#   input block = (1, ws, Wp, C) = one full row of windows of one image
# --------------------------------------------------------------------------- #

def _ln_window_attn_kernel(*refs, num_heads, scale, ws, n_ww,
                           img_h, img_w, hp, wp, shift,
                           has_mask, needs_valid, eps):
    if has_mask:
        (x_ref, mask_ref, g_ref, b_ref, rel_ref, wqkv_ref, bqkv_ref,
         wproj_ref, bproj_ref, o_ref, qkv_scr, oh_scr) = refs
    else:
        (x_ref, g_ref, b_ref, rel_ref, wqkv_ref, bqkv_ref,
         wproj_ref, bproj_ref, o_ref, qkv_scr, oh_scr) = refs
        mask_ref = None

    c = x_ref.shape[-1]
    hd = c // num_heads
    n = ws * ws
    t = n_ww * n

    # ---- LayerNorm (norm1), fp32 statistics ----
    x = x_ref[0].astype(jnp.float32)                          # (ws, Wp, C)
    mu = jnp.mean(x, axis=-1, keepdims=True)
    xc = x - mu
    var = jnp.mean(xc * xc, axis=-1, keepdims=True)
    xn = xc * lax.rsqrt(var + eps)
    xn = xn * g_ref[...].astype(jnp.float32) + b_ref[...].astype(jnp.float32)

    # ---- zero padded tokens so this matches "pad with zeros after norm1" ----
    if needs_valid:
        wh = pl.program_id(1)
        rows = wh * ws + lax.broadcasted_iota(jnp.int32, (ws, wp), 0) + shift
        rows = jnp.where(rows >= hp, rows - hp, rows)
        cols = lax.broadcasted_iota(jnp.int32, (ws, wp), 1) + shift
        cols = jnp.where(cols >= wp, cols - wp, cols)
        valid = jnp.logical_and(rows < img_h, cols < img_w)
        xn = jnp.where(valid[..., None], xn, 0.0)

    # ---- window partition inside the block (sublane-aligned slices only) ----
    xb = xn.astype(jnp.bfloat16)                              # bf16 MXU operands
    xw = jnp.concatenate(
        [xb[:, w * ws:(w + 1) * ws, :].reshape(n, c) for w in range(n_ww)],
        axis=0)                                               # (T, C)

    # ---- fused qkv projection: ONE dense (T, C) @ (C, 3C) matmul ----
    qkv = jnp.dot(xw, wqkv_ref[...], preferred_element_type=jnp.float32)
    qkv = qkv + bqkv_ref[...].astype(jnp.float32)
    qkv_scr[...] = qkv.astype(jnp.bfloat16)                   # staged in VMEM

    mask = mask_ref[...].astype(jnp.float32) if has_mask else None

    # ---- per-head attention; q/k/v sliced from the VMEM scratch so the
    #      (T, 3C) intermediate is never live in vregs across heads ----
    for h in range(num_heads):                                # static offsets
        q = qkv_scr[:, h * hd:(h + 1) * hd].reshape(n_ww, n, hd)
        k = qkv_scr[:, c + h * hd:c + (h + 1) * hd].reshape(n_ww, n, hd)
        v = qkv_scr[:, 2 * c + h * hd:2 * c + (h + 1) * hd].reshape(n_ww, n, hd)
        s = jnp.einsum("wnd,wmd->wnm", q, k,
                       preferred_element_type=jnp.float32) * scale
        s = s + rel_ref[h][None]
        if has_mask:
            s = s + mask
        s = s - jnp.max(s, axis=-1, keepdims=True)
        e = jnp.exp(s)
        denom = jnp.sum(e, axis=-1, keepdims=True)
        p = (e * pl.reciprocal(denom, approx=True)).astype(jnp.bfloat16)
        o_h = jnp.einsum("wnm,wmd->wnd", p, v,
                         preferred_element_type=jnp.float32)
        oh_scr[:, h * hd:(h + 1) * hd] = o_h.reshape(t, hd).astype(jnp.bfloat16)

    # ---- ONE dense (T, C) @ (C, C) output projection ----
    out = jnp.dot(oh_scr[...], wproj_ref[...],
                  preferred_element_type=jnp.float32)
    out = out + bproj_ref[...].astype(jnp.float32)

    # ---- window reverse inside the block ----
    o_full = jnp.concatenate(
        [out[w * n:(w + 1) * n, :].reshape(ws, ws, c) for w in range(n_ww)],
        axis=1)                                               # (ws, Wp, C)
    o_ref[0] = o_full.astype(o_ref.dtype)


def _ln_window_attention_call(xp, mask, gamma, beta, rel_bias,
                              wqkv_bf, bqkv, wproj_bf, bproj, *,
                              num_heads, window_size, scale,
                              img_h, img_w, shift):
    b, hp, wp, c = xp.shape
    ws = window_size
    n_wh, n_ww = hp // ws, wp // ws
    n = ws * ws
    t = n_ww * n
    has_mask = mask is not None
    needs_valid = (hp != img_h) or (wp != img_w)
    limit = _vmem_limit_bytes()

    kernel = functools.partial(
        _ln_window_attn_kernel, num_heads=num_heads, scale=scale, ws=ws,
        n_ww=n_ww, img_h=img_h, img_w=img_w, hp=hp, wp=wp, shift=shift,
        has_mask=has_mask, needs_valid=needs_valid, eps=1e-5)

    in_specs = [pl.BlockSpec((1, ws, wp, c), lambda i, j: (i, j, 0, 0))]
    args = [xp]
    if has_mask:
        # mask is NOT replicated over batch: indexed by the window-row only.
        in_specs.append(pl.BlockSpec((n_ww, n, n), lambda i, j: (j, 0, 0)))
        args.append(mask)
    in_specs += [
        pl.BlockSpec((1, c), lambda i, j: (0, 0)),             # gamma1
        pl.BlockSpec((1, c), lambda i, j: (0, 0)),             # beta1
        pl.BlockSpec((num_heads, n, n), lambda i, j: (0, 0, 0)),  # rel bias
        pl.BlockSpec((c, 3 * c), lambda i, j: (0, 0)),         # Wqkv (bf16)
        pl.BlockSpec((1, 3 * c), lambda i, j: (0, 0)),         # bqkv
        pl.BlockSpec((c, c), lambda i, j: (0, 0)),             # Wproj (bf16)
        pl.BlockSpec((1, c), lambda i, j: (0, 0)),             # bproj
    ]
    args += [gamma.reshape(1, c), beta.reshape(1, c), rel_bias,
             wqkv_bf, bqkv.reshape(1, 3 * c), wproj_bf, bproj.reshape(1, c)]

    return pl.pallas_call(
        kernel,
        out_shape=jax.ShapeDtypeStruct((b, hp, wp, c), xp.dtype),
        grid=(b, n_wh),
        in_specs=in_specs,
        out_specs=pl.BlockSpec((1, ws, wp, c), lambda i, j: (i, j, 0, 0)),
        scratch_shapes=[pltpu.VMEM((t, 3 * c), jnp.bfloat16),
                        pltpu.VMEM((t, c), jnp.bfloat16)],
        compiler_params=pltpu.CompilerParams(
            dimension_semantics=("parallel", "parallel"),
            vmem_limit_bytes=limit),
    )(*args)


# --------------------------------------------------------------------------- #
# kernel 2: fused residual-add + LN2 + MLP(GELU) + residual
# --------------------------------------------------------------------------- #

def _residual_ln_mlp_kernel(short_ref, attn_ref, g_ref, b_ref,
                            w1_ref, b1_ref, w2_ref, b2_ref, o_ref, *, eps):
    h = short_ref[...].astype(jnp.float32) + attn_ref[...].astype(jnp.float32)
    mu = jnp.mean(h, axis=-1, keepdims=True)
    hc = h - mu
    var = jnp.mean(hc * hc, axis=-1, keepdims=True)
    xn = hc * lax.rsqrt(var + eps)
    xn = xn * g_ref[...].astype(jnp.float32) + b_ref[...].astype(jnp.float32)
    z = jnp.dot(xn.astype(jnp.bfloat16), w1_ref[...],
                preferred_element_type=jnp.float32)
    z = z + b1_ref[...].astype(jnp.float32)
    z = _gelu_tanh(z)
    y = jnp.dot(z.astype(jnp.bfloat16), w2_ref[...],
                preferred_element_type=jnp.float32)
    y = y + b2_ref[...].astype(jnp.float32)
    # TODO(synk): DropPath / Dropout with rate 0 are identities (inference).
    o_ref[...] = (h + y).astype(o_ref.dtype)


def _residual_ln_mlp_call(shortcut2d, attn2d, gamma, beta,
                          w1_bf, b1, w2_bf, b2, eps=1e-5):
    r, c = shortcut2d.shape
    ch = w1_bf.shape[1]
    limit = _vmem_limit_bytes()
    tr = _pick_row_tile(r, c, ch, limit)
    return pl.pallas_call(
        functools.partial(_residual_ln_mlp_kernel, eps=eps),
        out_shape=jax.ShapeDtypeStruct((r, c), shortcut2d.dtype),
        grid=(pl.cdiv(r, tr),),
        in_specs=[
            pl.BlockSpec((tr, c), lambda i: (i, 0)),
            pl.BlockSpec((tr, c), lambda i: (i, 0)),
            pl.BlockSpec((1, c), lambda i: (0, 0)),
            pl.BlockSpec((1, c), lambda i: (0, 0)),
            pl.BlockSpec((c, ch), lambda i: (0, 0)),           # W1 (bf16)
            pl.BlockSpec((1, ch), lambda i: (0, 0)),
            pl.BlockSpec((ch, c), lambda i: (0, 0)),           # W2 (bf16)
            pl.BlockSpec((1, c), lambda i: (0, 0)),
        ],
        out_specs=pl.BlockSpec((tr, c), lambda i: (i, 0)),
        compiler_params=pltpu.CompilerParams(
            dimension_semantics=("parallel",),
            vmem_limit_bytes=limit),
    )(shortcut2d, attn2d, gamma.reshape(1, c), beta.reshape(1, c),
      w1_bf, b1.reshape(1, ch), w2_bf, b2.reshape(1, c))


# --------------------------------------------------------------------------- #
# module wrapper (forward semantics of SwinTransformerBlock, inference mode)
# --------------------------------------------------------------------------- #

class SwinTransformerBlockPallas:
    def __init__(self, dim, num_heads, window_size=7, shift_size=0,
                 mlp_ratio=4.0, qkv_bias=True, qk_scale=None, *, key):
        assert 0 <= shift_size < window_size, "shift_size must be in 0-window_size"
        self.dim = dim
        self.num_heads = num_heads
        self.window_size = window_size
        self.shift_size = shift_size
        head_dim = dim // num_heads
        self.scale = qk_scale or head_dim ** (-0.5)
        hidden = int(dim * mlp_ratio)

        ks = jax.random.split(key, 13)

        def init(k, shp, s=0.02):
            return s * jax.random.normal(k, shp, jnp.float32)

        # LayerNorm params (random to make the check non-trivial)
        self.gamma1 = 1.0 + init(ks[0], (dim,), 0.1)
        self.beta1 = init(ks[1], (dim,), 0.1)
        self.gamma2 = 1.0 + init(ks[2], (dim,), 0.1)
        self.beta2 = init(ks[3], (dim,), 0.1)
        # attention params, stored (in, out) (torch nn.Linear computes x @ W.T)
        self.wqkv = init(ks[4], (dim, 3 * dim))
        self.bqkv = init(ks[5], (3 * dim,)) if qkv_bias else jnp.zeros((3 * dim,), jnp.float32)
        self.wproj = init(ks[6], (dim, dim))
        self.bproj = init(ks[7], (dim,))
        self.rel_table = init(ks[8], ((2 * window_size - 1) ** 2, num_heads))
        # MLP params
        self.w1 = init(ks[9], (dim, hidden))
        self.b1 = init(ks[10], (hidden,))
        self.w2 = init(ks[11], (hidden, dim))
        self.b2 = init(ks[12], (dim,))

        # bf16 copies for the MXU (fp32 accumulation inside the kernels)
        self.wqkv_bf = self.wqkv.astype(jnp.bfloat16)
        self.wproj_bf = self.wproj.astype(jnp.bfloat16)
        self.w1_bf = self.w1.astype(jnp.bfloat16)
        self.w2_bf = self.w2.astype(jnp.bfloat16)

        # relative_position_index -> gathered (nH, N, N) bias (done once)
        ws = window_size
        coords = np.stack(np.meshgrid(np.arange(ws), np.arange(ws), indexing="ij"))
        cf = coords.reshape(2, -1)
        rel = (cf[:, :, None] - cf[:, None, :]).transpose(1, 2, 0).astype(np.int64)
        rel[..., 0] += ws - 1
        rel[..., 1] += ws - 1
        rel[..., 0] *= 2 * ws - 1
        rel_index = rel.sum(-1)                                 # (N, N)
        n = ws * ws
        self.rel_bias = self.rel_table[rel_index.reshape(-1)] \
            .reshape(n, n, num_heads).transpose(2, 0, 1)        # (nH, N, N)

        self.H = None
        self.W = None

    def __call__(self, x, mask_matrix):
        B, L, C = x.shape
        H, W = self.H, self.W
        assert L == H * W, "input feature has wrong size"
        ws, ss = self.window_size, self.shift_size

        shortcut = x.reshape(B * L, C)

        # ---- pad + cyclic shift (layout plumbing; windowing + LN1 are fused
        #      into the attention kernel via its BlockSpec / prologue) ----
        xs = x.reshape(B, H, W, C)
        pad_r = (ws - W % ws) % ws
        pad_b = (ws - H % ws) % ws
        if pad_r or pad_b:
            xs = jnp.pad(xs, ((0, 0), (0, pad_b), (0, pad_r), (0, 0)))
        if ss > 0:
            xs = jnp.roll(xs, shift=(-ss, -ss), axis=(1, 2))
            mask = mask_matrix.astype(jnp.float32)
        else:
            mask = None

        # ---- fused LN1 + window attention (Pallas) ----
        attn = _ln_window_attention_call(
            xs, mask, self.gamma1, self.beta1, self.rel_bias,
            self.wqkv_bf, self.bqkv, self.wproj_bf, self.bproj,
            num_heads=self.num_heads, window_size=ws, scale=self.scale,
            img_h=H, img_w=W, shift=ss)

        # ---- un-shift + un-pad ----
        if ss > 0:
            attn = jnp.roll(attn, shift=(ss, ss), axis=(1, 2))
        if pad_r or pad_b:
            attn = attn[:, :H, :W, :]
        attn2d = attn.reshape(B * L, C)

        # ---- fused residual + LN2 + MLP + residual (Pallas) ----
        out = _residual_ln_mlp_call(shortcut, attn2d,
                                    self.gamma2, self.beta2,
                                    self.w1_bf, self.b1, self.w2_bf, self.b2)
        return out.reshape(B, L, C)


# --------------------------------------------------------------------------- #
# pure-JAX reference (mirrors the PyTorch forward exactly, fp32)
# --------------------------------------------------------------------------- #

def _reference_forward(blk, x, mask_matrix):
    B, L, C = x.shape
    H, W = blk.H, blk.W
    ws, ss, nh = blk.window_size, blk.shift_size, blk.num_heads
    hd = C // nh

    def ln(v, g, b, eps=1e-5):
        mu = jnp.mean(v, axis=-1, keepdims=True)
        var = jnp.mean((v - mu) ** 2, axis=-1, keepdims=True)
        return (v - mu) * lax.rsqrt(var + eps) * g + b

    shortcut = x
    xn = ln(x, blk.gamma1, blk.beta1).reshape(B, H, W, C)
    pad_r = (ws - W % ws) % ws
    pad_b = (ws - H % ws) % ws
    xn = jnp.pad(xn, ((0, 0), (0, pad_b), (0, pad_r), (0, 0)))
    Hp, Wp = H + pad_b, W + pad_r
    xs = jnp.roll(xn, (-ss, -ss), axis=(1, 2)) if ss > 0 else xn
    nhw, nww = Hp // ws, Wp // ws
    xw = xs.reshape(B, nhw, ws, nww, ws, C).transpose(0, 1, 3, 2, 4, 5) \
           .reshape(-1, ws * ws, C)
    bw, n, _ = xw.shape
    qkv = (xw @ blk.wqkv + blk.bqkv).reshape(bw, n, 3, nh, hd).transpose(2, 0, 3, 1, 4)
    q, k, v = qkv[0] * blk.scale, qkv[1], qkv[2]
    attn = jnp.einsum("bhnd,bhmd->bhnm", q, k) + blk.rel_bias[None]
    if ss > 0:
        nw = mask_matrix.shape[0]
        attn = attn.reshape(bw // nw, nw, nh, n, n) + mask_matrix[None, :, None]
        attn = attn.reshape(bw, nh, n, n)
    attn = jax.nn.softmax(attn, axis=-1)
    ow = jnp.einsum("bhnm,bhmd->bhnd", attn, v).transpose(0, 2, 1, 3).reshape(bw, n, C)
    ow = ow @ blk.wproj + blk.bproj
    xs = ow.reshape(B, nhw, nww, ws, ws, C).transpose(0, 1, 3, 2, 4, 5) \
           .reshape(B, Hp, Wp, C)
    if ss > 0:
        xs = jnp.roll(xs, (ss, ss), axis=(1, 2))
    xs = xs[:, :H, :W, :].reshape(B, L, C)
    h = shortcut + xs
    hn = ln(h, blk.gamma2, blk.beta2)
    y = jax.nn.gelu(hn @ blk.w1 + blk.b1, approximate=False) @ blk.w2 + blk.b2
    return h + y


def _make_shift_mask(H, W, ws, ss):
    Hp = int(np.ceil(H / ws)) * ws
    Wp = int(np.ceil(W / ws)) * ws
    img_mask = np.zeros((1, Hp, Wp, 1), np.float32)
    h_slices = (slice(0, -ws), slice(-ws, -ss), slice(-ss, None))
    w_slices = (slice(0, -ws), slice(-ws, -ss), slice(-ss, None))
    cnt = 0
    for hs in h_slices:
        for wsl in w_slices:
            img_mask[:, hs, wsl, :] = cnt
            cnt += 1
    mw = img_mask.reshape(1, Hp // ws, ws, Wp // ws, ws, 1)
    mw = mw.transpose(0, 1, 3, 2, 4, 5).reshape(-1, ws * ws)
    m = mw[:, None, :] - mw[:, :, None]
    return jnp.asarray(np.where(m != 0, -100.0, 0.0).astype(np.float32))


# --------------------------------------------------------------------------- #
# main
# --------------------------------------------------------------------------- #

if __name__ == "__main__":
    B, H, W, C = 2, 16, 16, 32
    num_heads, ws, ss = 4, 8, 4
    L = H * W

    key = jax.random.PRNGKey(0)
    kx, kx2, kp = jax.random.split(key, 3)
    x = jax.random.normal(kx, (B, L, C), jnp.float32)

    # bf16 MXU operands (fp32 accumulation) -> looser tolerance than pure fp32
    TOL = 1e-2

    # 1) shifted-window block (SW-MSA, mask path)
    blk = SwinTransformerBlockPallas(C, num_heads, window_size=ws,
                                     shift_size=ss, mlp_ratio=4.0, key=kp)
    blk.H, blk.W = H, W
    mask_matrix = _make_shift_mask(H, W, ws, ss)
    out = jax.block_until_ready(blk(x, mask_matrix))
    ref = jax.block_until_ready(_reference_forward(blk, x, mask_matrix))
    assert out.shape == (B, L, C)
    err = float(jnp.max(jnp.abs(out - ref)))
    assert err < TOL, f"shifted-window max abs err {err}"

    # 2) non-shifted block (W-MSA, no mask) with padding exercised (H=W=12)
    H2 = W2 = 12
    x2 = jax.random.normal(kx2, (B, H2 * W2, C), jnp.float32)
    blk0 = SwinTransformerBlockPallas(C, num_heads, window_size=ws,
                                      shift_size=0, mlp_ratio=4.0, key=kp)
    blk0.H, blk0.W = H2, W2
    out0 = jax.block_until_ready(blk0(x2, mask_matrix))
    ref0 = jax.block_until_ready(_reference_forward(blk0, x2, mask_matrix))
    err0 = float(jnp.max(jnp.abs(out0 - ref0)))
    assert err0 < TOL, f"non-shifted max abs err {err0}"

    print("KERNEL_OK")
</pallas_src>

<mosaic_0001>
module attributes {stable_mosaic.version = 11 : i64} {
  func.func @_ln_window_attn_kernel(%arg0: i32, %arg1: i32, %arg2: memref<1x8x16x32xf32, #tpu.memory_space<vmem>>, %arg3: memref<2x64x64xf32, #tpu.memory_space<vmem>>, %arg4: memref<1x32xf32, #tpu.memory_space<vmem>>, %arg5: memref<1x32xf32, #tpu.memory_space<vmem>>, %arg6: memref<4x64x64xf32, #tpu.memory_space<vmem>>, %arg7: memref<32x96xbf16, #tpu.memory_space<vmem>>, %arg8: memref<1x96xf32, #tpu.memory_space<vmem>>, %arg9: memref<32x32xbf16, #tpu.memory_space<vmem>>, %arg10: memref<1x32xf32, #tpu.memory_space<vmem>>, %arg11: memref<1x8x16x32xf32, #tpu.memory_space<vmem>>, %arg12: memref<128x96xbf16, #tpu.memory_space<vmem>>, %arg13: memref<128x32xbf16, #tpu.memory_space<vmem>>) attributes {dimension_semantics = [#tpu.dimension_semantics<parallel>, #tpu.dimension_semantics<parallel>], iteration_bounds = array<i64: 2, 2>, scalar_prefetch = 0 : i64, scratch_operands = 2 : i64, tpu.core_type = #tpu.core_type<tc>, window_params = [{transform_indices = @transform_0, window_bounds = array<i64: 1, 8, 16, 32>}, {transform_indices = @transform_1, window_bounds = array<i64: 2, 64, 64>}, {pipeline_mode = #tpu.pipeline_mode<synchronous>, transform_indices = @transform_2, window_bounds = array<i64: 1, 32>}, {pipeline_mode = #tpu.pipeline_mode<synchronous>, transform_indices = @transform_3, window_bounds = array<i64: 1, 32>}, {pipeline_mode = #tpu.pipeline_mode<synchronous>, transform_indices = @transform_4, window_bounds = array<i64: 4, 64, 64>}, {pipeline_mode = #tpu.pipeline_mode<synchronous>, transform_indices = @transform_5, window_bounds = array<i64: 32, 96>}, {pipeline_mode = #tpu.pipeline_mode<synchronous>, transform_indices = @transform_6, window_bounds = array<i64: 1, 96>}, {pipeline_mode = #tpu.pipeline_mode<synchronous>, transform_indices = @transform_7, window_bounds = array<i64: 32, 32>}, {pipeline_mode = #tpu.pipeline_mode<synchronous>, transform_indices = @transform_8, window_bounds = array<i64: 1, 32>}, {transform_indices = @transform_9, window_bounds = array<i64: 1, 8, 16, 32>}]} {
    %c0 = arith.constant 0 : index
    %c0_0 = arith.constant 0 : index
    %c0_1 = arith.constant 0 : index
    %c0_2 = arith.constant 0 : index
    %0 = vector.load %arg2[%c0, %c0_0, %c0_1, %c0_2] : memref<1x8x16x32xf32, #tpu.memory_space<vmem>>, vector<1x8x16x32xf32>
    %1 = vector.shape_cast %0 : vector<1x8x16x32xf32> to vector<8x16x32xf32>
    %cst = arith.constant dense<0.000000e+00> : vector<8x16xf32>
    %2 = vector.multi_reduction <add>, %1, %cst [2] : vector<8x16x32xf32> to vector<8x16xf32>
    %3 = vector.shape_cast %2 : vector<8x16xf32> to vector<8x16x1xf32>
    %cst_3 = arith.constant 3.200000e+01 : f32
    %4 = vector.broadcast %cst_3 : f32 to vector<8x16x1xf32>
    %5 = arith.divf %3, %4 : vector<8x16x1xf32>
    %6 = vector.broadcast %5 : vector<8x16x1xf32> to vector<8x16x32xf32>
    %7 = arith.subf %1, %6 : vector<8x16x32xf32>
    %8 = arith.mulf %7, %7 : vector<8x16x32xf32>
    %cst_4 = arith.constant dense<0.000000e+00> : vector<8x16xf32>
    %9 = vector.multi_reduction <add>, %8, %cst_4 [2] : vector<8x16x32xf32> to vector<8x16xf32>
    %10 = vector.shape_cast %9 : vector<8x16xf32> to vector<8x16x1xf32>
    %cst_5 = arith.constant 3.200000e+01 : f32
    %11 = vector.broadcast %cst_5 : f32 to vector<8x16x1xf32>
    %12 = arith.divf %10, %11 : vector<8x16x1xf32>
    %cst_6 = arith.constant 9.99999974E-6 : f32
    %13 = vector.broadcast %cst_6 : f32 to vector<8x16x1xf32>
    %14 = arith.addf %12, %13 : vector<8x16x1xf32>
    %15 = math.rsqrt %14 : vector<8x16x1xf32>
    %16 = vector.broadcast %15 : vector<8x16x1xf32> to vector<8x16x32xf32>
    %17 = arith.mulf %7, %16 : vector<8x16x32xf32>
    %c0_7 = arith.constant 0 : index
    %c0_8 = arith.constant 0 : index
    %18 = vector.load %arg4[%c0_7, %c0_8] : memref<1x32xf32, #tpu.memory_space<vmem>>, vector<1x32xf32>
    %19 = vector.shape_cast %18 : vector<1x32xf32> to vector<1x1x32xf32>
    %20 = vector.broadcast %19 : vector<1x1x32xf32> to vector<8x16x32xf32>
    %21 = arith.mulf %17, %20 : vector<8x16x32xf32>
    %c0_9 = arith.constant 0 : index
    %c0_10 = arith.constant 0 : index
    %22 = vector.load %arg5[%c0_9, %c0_10] : memref<1x32xf32, #tpu.memory_space<vmem>>, vector<1x32xf32>
    %23 = vector.shape_cast %22 : vector<1x32xf32> to vector<1x1x32xf32>
    %24 = vector.broadcast %23 : vector<1x1x32xf32> to vector<8x16x32xf32>
    %25 = arith.addf %21, %24 : vector<8x16x32xf32>
    %26 = arith.truncf %25 : vector<8x16x32xf32> to vector<8x16x32xbf16>
    %27 = vector.extract_strided_slice %26 {offsets = [0, 0, 0], sizes = [8, 8, 32], strides = [1, 1, 1]} : vector<8x16x32xbf16> to vector<8x8x32xbf16>
    %28 = vector.shape_cast %27 : vector<8x8x32xbf16> to vector<64x32xbf16>
    %29 = vector.extract_strided_slice %26 {offsets = [0, 8, 0], sizes = [8, 8, 32], strides = [1, 1, 1]} : vector<8x16x32xbf16> to vector<8x8x32xbf16>
    %30 = vector.shape_cast %29 : vector<8x8x32xbf16> to vector<64x32xbf16>
    %31 = tpu.concatenate %28, %30 in 0 : vector<64x32xbf16>, vector<64x32xbf16> -> vector<128x32xbf16>
    %c0_11 = arith.constant 0 : index
    %c0_12 = arith.constant 0 : index
    %32 = vector.load %arg7[%c0_11, %c0_12] : memref<32x96xbf16, #tpu.memory_space<vmem>>, vector<32x96xbf16>
    %cst_13 = arith.constant dense<0.000000e+00> : vector<128x96xf32>
    %33 = tpu.matmul %31, %32, %cst_13 {dimension_numbers = #tpu.dot_dimension_numbers<[1], [0], [0], [1], [0, 0, 1, 1], [], []>} : vector<128x32xbf16>, vector<32x96xbf16>, vector<128x96xf32> -> vector<128x96xf32>
    %c0_14 = arith.constant 0 : index
    %c0_15 = arith.constant 0 : index
    %34 = vector.load %arg8[%c0_14, %c0_15] : memref<1x96xf32, #tpu.memory_space<vmem>>, vector<1x96xf32>
    %35 = vector.broadcast %34 : vector<1x96xf32> to vector<128x96xf32>
    %36 = arith.addf %33, %35 : vector<128x96xf32>
    %37 = arith.truncf %36 : vector<128x96xf32> to vector<128x96xbf16>
    %c0_16 = arith.constant 0 : index
    %c0_17 = arith.constant 0 : index
    %38 = vector.load %arg12[%c0_16, %c0_17] : memref<128x96xbf16, #tpu.memory_space<vmem>>, vector<128x96xbf16>
    tpu.vector_store %arg12[%c0_16, %c0_17], %37 {strides = array<i32>} : memref<128x96xbf16, #tpu.memory_space<vmem>>, vector<128x96xbf16>,
    %c0_18 = arith.constant 0 : index
    %c0_19 = arith.constant 0 : index
    %c0_20 = arith.constant 0 : index
    %39 = vector.load %arg3[%c0_18, %c0_19, %c0_20] : memref<2x64x64xf32, #tpu.memory_space<vmem>>, vector<2x64x64xf32>
    %c0_21 = arith.constant 0 : index
    %c0_22 = arith.constant 0 : index
    %40 = vector.load %arg12[%c0_21, %c0_22] : memref<128x96xbf16, #tpu.memory_space<vmem>>, vector<128x8xbf16>
    %41 = vector.shape_cast %40 : vector<128x8xbf16> to vector<2x64x8xbf16>
    %c0_23 = arith.constant 0 : index
    %c32 = arith.constant 32 : index
    %42 = vector.load %arg12[%c0_23, %c32] : memref<128x96xbf16, #tpu.memory_space<vmem>>, vector<128x8xbf16>
    %43 = vector.shape_cast %42 : vector<128x8xbf16> to vector<2x64x8xbf16>
    %c0_24 = arith.constant 0 : index
    %c64 = arith.constant 64 : index
    %44 = vector.load %arg12[%c0_24, %c64] : memref<128x96xbf16, #tpu.memory_space<vmem>>, vector<128x8xbf16>
    %45 = vector.shape_cast %44 : vector<128x8xbf16> to vector<2x64x8xbf16>
    "tpu.trace_start"() <{level = 10 : i32, message = "wnd,wmd->wnm"}> : () -> ()
    %cst_25 = arith.constant dense<0.000000e+00> : vector<2x64x64xf32>
    %46 = tpu.matmul %41, %43, %cst_25 {dimension_numbers = #tpu.dot_dimension_numbers<[2], [2], [1], [1], [0, 0, 0, 1, 1, 1], [0], [0]>} : vector<2x64x8xbf16>, vector<2x64x8xbf16>, vector<2x64x64xf32> -> vector<2x64x64xf32>
    "tpu.trace_stop"() : () -> ()
    %cst_26 = arith.constant 0.353553385 : f32
    %47 = vector.broadcast %cst_26 : f32 to vector<2x64x64xf32>
    %48 = arith.mulf %46, %47 : vector<2x64x64xf32>
    %c0_27 = arith.constant 0 : index
    %c0_28 = arith.constant 0 : index
    %c0_29 = arith.constant 0 : index
    %49 = vector.load %arg6[%c0_27, %c0_28, %c0_29] : memref<4x64x64xf32, #tpu.memory_space<vmem>>, vector<1x64x64xf32>
    %50 = vector.shape_cast %49 : vector<1x64x64xf32> to vector<64x64xf32>
    %51 = vector.shape_cast %50 : vector<64x64xf32> to vector<1x64x64xf32>
    %52 = vector.broadcast %51 : vector<1x64x64xf32> to vector<2x64x64xf32>
    %53 = arith.addf %48, %52 : vector<2x64x64xf32>
    %54 = arith.addf %53, %39 : vector<2x64x64xf32>
    %cst_30 = arith.constant dense<0xFF800000> : vector<2x64xf32>
    %55 = vector.multi_reduction <maximumf>, %54, %cst_30 [2] : vector<2x64x64xf32> to vector<2x64xf32>
    %56 = vector.shape_cast %55 : vector<2x64xf32> to vector<2x64x1xf32>
    %57 = vector.broadcast %56 : vector<2x64x1xf32> to vector<2x64x64xf32>
    %58 = arith.subf %54, %57 : vector<2x64x64xf32>
    %59 = math.exp %58 : vector<2x64x64xf32>
    %cst_31 = arith.constant dense<0.000000e+00> : vector<2x64xf32>
    %60 = vector.multi_reduction <add>, %59, %cst_31 [2] : vector<2x64x64xf32> to vector<2x64xf32>
    %61 = vector.shape_cast %60 : vector<2x64xf32> to vector<2x64x1xf32>
    %62 = tpu.reciprocal %61 {approx = true} : vector<2x64x1xf32> -> vector<2x64x1xf32>
    %63 = vector.broadcast %62 : vector<2x64x1xf32> to vector<2x64x64xf32>
    %64 = arith.mulf %59, %63 : vector<2x64x64xf32>
    %65 = arith.truncf %64 : vector<2x64x64xf32> to vector<2x64x64xbf16>
    "tpu.trace_start"() <{level = 10 : i32, message = "wnm,wmd->wnd"}> : () -> ()
    %cst_32 = arith.constant dense<0.000000e+00> : vector<2x64x8xf32>
    %66 = tpu.matmul %65, %45, %cst_32 {dimension_numbers = #tpu.dot_dimension_numbers<[2], [1], [1], [2], [0, 0, 0, 1, 1, 2], [0], [0]>} : vector<2x64x64xbf16>, vector<2x64x8xbf16>, vector<2x64x8xf32> -> vector<2x64x8xf32>
    "tpu.trace_stop"() : () -> ()
    %67 = vector.shape_cast %66 : vector<2x64x8xf32> to vector<128x8xf32>
    %68 = arith.truncf %67 : vector<128x8xf32> to vector<128x8xbf16>
    %c0_33 = arith.constant 0 : index
    %c0_34 = arith.constant 0 : index
    %69 = vector.load %arg13[%c0_33, %c0_34] : memref<128x32xbf16, #tpu.memory_space<vmem>>, vector<128x8xbf16>
    tpu.vector_store %arg13[%c0_33, %c0_34], %68 {strides = array<i32>} : memref<128x32xbf16, #tpu.memory_space<vmem>>, vector<128x8xbf16>,
    %c0_35 = arith.constant 0 : index
    %c8 = arith.constant 8 : index
    %70 = vector.load %arg12[%c0_35, %c8] : memref<128x96xbf16, #tpu.memory_space<vmem>>, vector<128x8xbf16>
    %71 = vector.shape_cast %70 : vector<128x8xbf16> to vector<2x64x8xbf16>
    %c0_36 = arith.constant 0 : index
    %c40 = arith.constant 40 : index
    %72 = vector.load %arg12[%c0_36, %c40] : memref<128x96xbf16, #tpu.memory_space<vmem>>, vector<128x8xbf16>
    %73 = vector.shape_cast %72 : vector<128x8xbf16> to vector<2x64x8xbf16>
    %c0_37 = arith.constant 0 : index
    %c72 = arith.constant 72 : index
    %74 = vector.load %arg12[%c0_37, %c72] : memref<128x96xbf16, #tpu.memory_space<vmem>>, vector<128x8xbf16>
    %75 = vector.shape_cast %74 : vector<128x8xbf16> to vector<2x64x8xbf16>
    "tpu.trace_start"() <{level = 10 : i32, message = "wnd,wmd->wnm"}> : () -> ()
    %cst_38 = arith.constant dense<0.000000e+00> : vector<2x64x64xf32>
    %76 = tpu.matmul %71, %73, %cst_38 {dimension_numbers = #tpu.dot_dimension_numbers<[2], [2], [1], [1], [0, 0, 0, 1, 1, 1], [0], [0]>} : vector<2x64x8xbf16>, vector<2x64x8xbf16>, vector<2x64x64xf32> -> vector<2x64x64xf32>
    "tpu.trace_stop"() : () -> ()
    %cst_39 = arith.constant 0.353553385 : f32
    %77 = vector.broadcast %cst_39 : f32 to vector<2x64x64xf32>
    %78 = arith.mulf %76, %77 : vector<2x64x64xf32>
    %c1 = arith.constant 1 : index
    %c0_40 = arith.constant 0 : index
    %c0_41 = arith.constant 0 : index
    %79 = vector.load %arg6[%c1, %c0_40, %c0_41] : memref<4x64x64xf32, #tpu.memory_space<vmem>>, vector<1x64x64xf32>
    %80 = vector.shape_cast %79 : vector<1x64x64xf32> to vector<64x64xf32>
    %81 = vector.shape_cast %80 : vector<64x64xf32> to vector<1x64x64xf32>
    %82 = vector.broadcast %81 : vector<1x64x64xf32> to vector<2x64x64xf32>
    %83 = arith.addf %78, %82 : vector<2x64x64xf32>
    %84 = arith.addf %83, %39 : vector<2x64x64xf32>
    %cst_42 = arith.constant dense<0xFF800000> : vector<2x64xf32>
    %85 = vector.multi_reduction <maximumf>, %84, %cst_42 [2] : vector<2x64x64xf32> to vector<2x64xf32>
    %86 = vector.shape_cast %85 : vector<2x64xf32> to vector<2x64x1xf32>
    %87 = vector.broadcast %86 : vector<2x64x1xf32> to vector<2x64x64xf32>
    %88 = arith.subf %84, %87 : vector<2x64x64xf32>
    %89 = math.exp %88 : vector<2x64x64xf32>
    %cst_43 = arith.constant dense<0.000000e+00> : vector<2x64xf32>
    %90 = vector.multi_reduction <add>, %89, %cst_43 [2] : vector<2x64x64xf32> to vector<2x64xf32>
    %91 = vector.shape_cast %90 : vector<2x64xf32> to vector<2x64x1xf32>
    %92 = tpu.reciprocal %91 {approx = true} : vector<2x64x1xf32> -> vector<2x64x1xf32>
    %93 = vector.broadcast %92 : vector<2x64x1xf32> to vector<2x64x64xf32>
    %94 = arith.mulf %89, %93 : vector<2x64x64xf32>
    %95 = arith.truncf %94 : vector<2x64x64xf32> to vector<2x64x64xbf16>
    "tpu.trace_start"() <{level = 10 : i32, message = "wnm,wmd->wnd"}> : () -> ()
    %cst_44 = arith.constant dense<0.000000e+00> : vector<2x64x8xf32>
    %96 = tpu.matmul %95, %75, %cst_44 {dimension_numbers = #tpu.dot_dimension_numbers<[2], [1], [1], [2], [0, 0, 0, 1, 1, 2], [0], [0]>} : vector<2x64x64xbf16>, vector<2x64x8xbf16>, vector<2x64x8xf32> -> vector<2x64x8xf32>
    "tpu.trace_stop"() : () -> ()
    %97 = vector.shape_cast %96 : vector<2x64x8xf32> to vector<128x8xf32>
    %98 = arith.truncf %97 : vector<128x8xf32> to vector<128x8xbf16>
    %c0_45 = arith.constant 0 : index
    %c8_46 = arith.constant 8 : index
    %99 = vector.load %arg13[%c0_45, %c8_46] : memref<128x32xbf16, #tpu.memory_space<vmem>>, vector<128x8xbf16>
    tpu.vector_store %arg13[%c0_45, %c8_46], %98 {strides = array<i32>} : memref<128x32xbf16, #tpu.memory_space<vmem>>, vector<128x8xbf16>,
    %c0_47 = arith.constant 0 : index
    %c16 = arith.constant 16 : index
    %100 = vector.load %arg12[%c0_47, %c16] : memref<128x96xbf16, #tpu.memory_space<vmem>>, vector<128x8xbf16>
    %101 = vector.shape_cast %100 : vector<128x8xbf16> to vector<2x64x8xbf16>
    %c0_48 = arith.constant 0 : index
    %c48 = arith.constant 48 : index
    %102 = vector.load %arg12[%c0_48, %c48] : memref<128x96xbf16, #tpu.memory_space<vmem>>, vector<128x8xbf16>
    %103 = vector.shape_cast %102 : vector<128x8xbf16> to vector<2x64x8xbf16>
    %c0_49 = arith.constant 0 : index
    %c80 = arith.constant 80 : index
    %104 = vector.load %arg12[%c0_49, %c80] : memref<128x96xbf16, #tpu.memory_space<vmem>>, vector<128x8xbf16>
    %105 = vector.shape_cast %104 : vector<128x8xbf16> to vector<2x64x8xbf16>
    "tpu.trace_start"() <{level = 10 : i32, message = "wnd,wmd->wnm"}> : () -> ()
    %cst_50 = arith.constant dense<0.000000e+00> : vector<2x64x64xf32>
    %106 = tpu.matmul %101, %103, %cst_50 {dimension_numbers = #tpu.dot_dimension_numbers<[2], [2], [1], [1], [0, 0, 0, 1, 1, 1], [0], [0]>} : vector<2x64x8xbf16>, vector<2x64x8xbf16>, vector<2x64x64xf32> -> vector<2x64x64xf32>
    "tpu.trace_stop"() : () -> ()
    %cst_51 = arith.constant 0.353553385 : f32
    %107 = vector.broadcast %cst_51 : f32 to vector<2x64x64xf32>
    %108 = arith.mulf %106, %107 : vector<2x64x64xf32>
    %c2 = arith.constant 2 : index
    %c0_52 = arith.constant 0 : index
    %c0_53 = arith.constant 0 : index
    %109 = vector.load %arg6[%c2, %c0_52, %c0_53] : memref<4x64x64xf32, #tpu.memory_space<vmem>>, vector<1x64x64xf32>
    %110 = vector.shape_cast %109 : vector<1x64x64xf32> to vector<64x64xf32>
    %111 = vector.shape_cast %110 : vector<64x64xf32> to vector<1x64x64xf32>
    %112 = vector.broadcast %111 : vector<1x64x64xf32> to vector<2x64x64xf32>
    %113 = arith.addf %108, %112 : vector<2x64x64xf32>
    %114 = arith.addf %113, %39 : vector<2x64x64xf32>
    %cst_54 = arith.constant dense<0xFF800000> : vector<2x64xf32>
    %115 = vector.multi_reduction <maximumf>, %114, %cst_54 [2] : vector<2x64x64xf32> to vector<2x64xf32>
    %116 = vector.shape_cast %115 : vector<2x64xf32> to vector<2x64x1xf32>
    %117 = vector.broadcast %116 : vector<2x64x1xf32> to vector<2x64x64xf32>
    %118 = arith.subf %114, %117 : vector<2x64x64xf32>
    %119 = math.exp %118 : vector<2x64x64xf32>
    %cst_55 = arith.constant dense<0.000000e+00> : vector<2x64xf32>
    %120 = vector.multi_reduction <add>, %119, %cst_55 [2] : vector<2x64x64xf32> to vector<2x64xf32>
    %121 = vector.shape_cast %120 : vector<2x64xf32> to vector<2x64x1xf32>
    %122 = tpu.reciprocal %121 {approx = true} : vector<2x64x1xf32> -> vector<2x64x1xf32>
    %123 = vector.broadcast %122 : vector<2x64x1xf32> to vector<2x64x64xf32>
    %124 = arith.mulf %119, %123 : vector<2x64x64xf32>
    %125 = arith.truncf %124 : vector<2x64x64xf32> to vector<2x64x64xbf16>
    "tpu.trace_start"() <{level = 10 : i32, message = "wnm,wmd->wnd"}> : () -> ()
    %cst_56 = arith.constant dense<0.000000e+00> : vector<2x64x8xf32>
    %126 = tpu.matmul %125, %105, %cst_56 {dimension_numbers = #tpu.dot_dimension_numbers<[2], [1], [1], [2], [0, 0, 0, 1, 1, 2], [0], [0]>} : vector<2x64x64xbf16>, vector<2x64x8xbf16>, vector<2x64x8xf32> -> vector<2x64x8xf32>
    "tpu.trace_stop"() : () -> ()
    %127 = vector.shape_cast %126 : vector<2x64x8xf32> to vector<128x8xf32>
    %128 = arith.truncf %127 : vector<128x8xf32> to vector<128x8xbf16>
    %c0_57 = arith.constant 0 : index
    %c16_58 = arith.constant 16 : index
    %129 = vector.load %arg13[%c0_57, %c16_58] : memref<128x32xbf16, #tpu.memory_space<vmem>>, vector<128x8xbf16>
    tpu.vector_store %arg13[%c0_57, %c16_58], %128 {strides = array<i32>} : memref<128x32xbf16, #tpu.memory_space<vmem>>, vector<128x8xbf16>,
    %c0_59 = arith.constant 0 : index
    %c24 = arith.constant 24 : index
    %130 = vector.load %arg12[%c0_59, %c24] : memref<128x96xbf16, #tpu.memory_space<vmem>>, vector<128x8xbf16>
    %131 = vector.shape_cast %130 : vector<128x8xbf16> to vector<2x64x8xbf16>
    %c0_60 = arith.constant 0 : index
    %c56 = arith.constant 56 : index
    %132 = vector.load %arg12[%c0_60, %c56] : memref<128x96xbf16, #tpu.memory_space<vmem>>, vector<128x8xbf16>
    %133 = vector.shape_cast %132 : vector<128x8xbf16> to vector<2x64x8xbf16>
    %c0_61 = arith.constant 0 : index
    %c88 = arith.constant 88 : index
    %134 = vector.load %arg12[%c0_61, %c88] : memref<128x96xbf16, #tpu.memory_space<vmem>>, vector<128x8xbf16>
    %135 = vector.shape_cast %134 : vector<128x8xbf16> to vector<2x64x8xbf16>
    "tpu.trace_start"() <{level = 10 : i32, message = "wnd,wmd->wnm"}> : () -> ()
    %cst_62 = arith.constant dense<0.000000e+00> : vector<2x64x64xf32>
    %136 = tpu.matmul %131, %133, %cst_62 {dimension_numbers = #tpu.dot_dimension_numbers<[2], [2], [1], [1], [0, 0, 0, 1, 1, 1], [0], [0]>} : vector<2x64x8xbf16>, vector<2x64x8xbf16>, vector<2x64x64xf32> -> vector<2x64x64xf32>
    "tpu.trace_stop"() : () -> ()
    %cst_63 = arith.constant 0.353553385 : f32
    %137 = vector.broadcast %cst_63 : f32 to vector<2x64x64xf32>
    %138 = arith.mulf %136, %137 : vector<2x64x64xf32>
    %c3 = arith.constant 3 : index
    %c0_64 = arith.constant 0 : index
    %c0_65 = arith.constant 0 : index
    %139 = vector.load %arg6[%c3, %c0_64, %c0_65] : memref<4x64x64xf32, #tpu.memory_space<vmem>>, vector<1x64x64xf32>
    %140 = vector.shape_cast %139 : vector<1x64x64xf32> to vector<64x64xf32>
    %141 = vector.shape_cast %140 : vector<64x64xf32> to vector<1x64x64xf32>
    %142 = vector.broadcast %141 : vector<1x64x64xf32> to vector<2x64x64xf32>
    %143 = arith.addf %138, %142 : vector<2x64x64xf32>
    %144 = arith.addf %143, %39 : vector<2x64x64xf32>
    %cst_66 = arith.constant dense<0xFF800000> : vector<2x64xf32>
    %145 = vector.multi_reduction <maximumf>, %144, %cst_66 [2] : vector<2x64x64xf32> to vector<2x64xf32>
    %146 = vector.shape_cast %145 : vector<2x64xf32> to vector<2x64x1xf32>
    %147 = vector.broadcast %146 : vector<2x64x1xf32> to vector<2x64x64xf32>
    %148 = arith.subf %144, %147 : vector<2x64x64xf32>
    %149 = math.exp %148 : vector<2x64x64xf32>
    %cst_67 = arith.constant dense<0.000000e+00> : vector<2x64xf32>
    %150 = vector.multi_reduction <add>, %149, %cst_67 [2] : vector<2x64x64xf32> to vector<2x64xf32>
    %151 = vector.shape_cast %150 : vector<2x64xf32> to vector<2x64x1xf32>
    %152 = tpu.reciprocal %151 {approx = true} : vector<2x64x1xf32> -> vector<2x64x1xf32>
    %153 = vector.broadcast %152 : vector<2x64x1xf32> to vector<2x64x64xf32>
    %154 = arith.mulf %149, %153 : vector<2x64x64xf32>
    %155 = arith.truncf %154 : vector<2x64x64xf32> to vector<2x64x64xbf16>
    "tpu.trace_start"() <{level = 10 : i32, message = "wnm,wmd->wnd"}> : () -> ()
    %cst_68 = arith.constant dense<0.000000e+00> : vector<2x64x8xf32>
    %156 = tpu.matmul %155, %135, %cst_68 {dimension_numbers = #tpu.dot_dimension_numbers<[2], [1], [1], [2], [0, 0, 0, 1, 1, 2], [0], [0]>} : vector<2x64x64xbf16>, vector<2x64x8xbf16>, vector<2x64x8xf32> -> vector<2x64x8xf32>
    "tpu.trace_stop"() : () -> ()
    %157 = vector.shape_cast %156 : vector<2x64x8xf32> to vector<128x8xf32>
    %158 = arith.truncf %157 : vector<128x8xf32> to vector<128x8xbf16>
    %c0_69 = arith.constant 0 : index
    %c24_70 = arith.constant 24 : index
    %159 = vector.load %arg13[%c0_69, %c24_70] : memref<128x32xbf16, #tpu.memory_space<vmem>>, vector<128x8xbf16>
    tpu.vector_store %arg13[%c0_69, %c24_70], %158 {strides = array<i32>} : memref<128x32xbf16, #tpu.memory_space<vmem>>, vector<128x8xbf16>,
    %c0_71 = arith.constant 0 : index
    %c0_72 = arith.constant 0 : index
    %160 = vector.load %arg13[%c0_71, %c0_72] : memref<128x32xbf16, #tpu.memory_space<vmem>>, vector<128x32xbf16>
    %c0_73 = arith.constant 0 : index
    %c0_74 = arith.constant 0 : index
    %161 = vector.load %arg9[%c0_73, %c0_74] : memref<32x32xbf16, #tpu.memory_space<vmem>>, vector<32x32xbf16>
    %cst_75 = arith.constant dense<0.000000e+00> : vector<128x32xf32>
    %162 = tpu.matmul %160, %161, %cst_75 {dimension_numbers = #tpu.dot_dimension_numbers<[1], [0], [0], [1], [0, 0, 1, 1], [], []>} : vector<128x32xbf16>, vector<32x32xbf16>, vector<128x32xf32> -> vector<128x32xf32>
    %c0_76 = arith.constant 0 : index
    %c0_77 = arith.constant 0 : index
    %163 = vector.load %arg10[%c0_76, %c0_77] : memref<1x32xf32, #tpu.memory_space<vmem>>, vector<1x32xf32>
    %164 = vector.broadcast %163 : vector<1x32xf32> to vector<128x32xf32>
    %165 = arith.addf %162, %164 : vector<128x32xf32>
    %166 = vector.extract_strided_slice %165 {offsets = [0, 0], sizes = [64, 32], strides = [1, 1]} : vector<128x32xf32> to vector<64x32xf32>
    %167 = vector.shape_cast %166 : vector<64x32xf32> to vector<8x8x32xf32>
    %168 = vector.extract_strided_slice %165 {offsets = [64, 0], sizes = [64, 32], strides = [1, 1]} : vector<128x32xf32> to vector<64x32xf32>
    %169 = vector.shape_cast %168 : vector<64x32xf32> to vector<8x8x32xf32>
    %170 = tpu.concatenate %167, %169 in 1 : vector<8x8x32xf32>, vector<8x8x32xf32> -> vector<8x16x32xf32>
    %c0_78 = arith.constant 0 : index
    %c0_79 = arith.constant 0 : index
    %c0_80 = arith.constant 0 : index
    %c0_81 = arith.constant 0 : index
    %171 = vector.load %arg11[%c0_78, %c0_79, %c0_80, %c0_81] : memref<1x8x16x32xf32, #tpu.memory_space<vmem>>, vector<1x8x16x32xf32>
    %172 = vector.shape_cast %171 : vector<1x8x16x32xf32> to vector<8x16x32xf32>
    %173 = vector.shape_cast %170 : vector<8x16x32xf32> to vector<1x8x16x32xf32>
    tpu.vector_store %arg11[%c0_78, %c0_79, %c0_80, %c0_81], %173 {strides = array<i32>} : memref<1x8x16x32xf32, #tpu.memory_space<vmem>>, vector<1x8x16x32xf32>,
    return
  }
  func.func @transform_0(%arg0: i32, %arg1: i32) -> (i32, i32, i32, i32) {
    %c0_i32 = arith.constant 0 : i32
    %c0_i32_0 = arith.constant 0 : i32
    %c0_i32_1 = arith.constant 0 : i32
    return %arg0, %arg1, %c0_i32, %c0_i32_0 : i32, i32, i32, i32
  }
  func.func @transform_1(%arg0: i32, %arg1: i32) -> (i32, i32, i32) {
    %c0_i32 = arith.constant 0 : i32
    %c0_i32_0 = arith.constant 0 : i32
    %c0_i32_1 = arith.constant 0 : i32
    return %arg1, %c0_i32, %c0_i32_0 : i32, i32, i32
  }
  func.func @transform_2(%arg0: i32, %arg1: i32) -> (i32, i32) {
    %c0_i32 = arith.constant 0 : i32
    %c0_i32_0 = arith.constant 0 : i32
    %c0_i32_1 = arith.constant 0 : i32
    return %c0_i32, %c0_i32_0 : i32, i32
  }
  func.func @transform_3(%arg0: i32, %arg1: i32) -> (i32, i32) {
    %c0_i32 = arith.constant 0 : i32
    %c0_i32_0 = arith.constant 0 : i32
    %c0_i32_1 = arith.constant 0 : i32
    return %c0_i32, %c0_i32_0 : i32, i32
  }
  func.func @transform_4(%arg0: i32, %arg1: i32) -> (i32, i32, i32) {
    %c0_i32 = arith.constant 0 : i32
    %c0_i32_0 = arith.constant 0 : i32
    %c0_i32_1 = arith.constant 0 : i32
    %c0_i32_2 = arith.constant 0 : i32
    return %c0_i32, %c0_i32_0, %c0_i32_1 : i32, i32, i32
  }
  func.func @transform_5(%arg0: i32, %arg1: i32) -> (i32, i32) {
    %c0_i32 = arith.constant 0 : i32
    %c0_i32_0 = arith.constant 0 : i32
    %c0_i32_1 = arith.constant 0 : i32
    return %c0_i32, %c0_i32_0 : i32, i32
  }
  func.func @transform_6(%arg0: i32, %arg1: i32) -> (i32, i32) {
    %c0_i32 = arith.constant 0 : i32
    %c0_i32_0 = arith.constant 0 : i32
    %c0_i32_1 = arith.constant 0 : i32
    return %c0_i32, %c0_i32_0 : i32, i32
  }
  func.func @transform_7(%arg0: i32, %arg1: i32) -> (i32, i32) {
    %c0_i32 = arith.constant 0 : i32
    %c0_i32_0 = arith.constant 0 : i32
    %c0_i32_1 = arith.constant 0 : i32
    return %c0_i32, %c0_i32_0 : i32, i32
  }
  func.func @transform_8(%arg0: i32, %arg1: i32) -> (i32, i32) {
    %c0_i32 = arith.constant 0 : i32
    %c0_i32_0 = arith.constant 0 : i32
    %c0_i32_1 = arith.constant 0 : i32
    return %c0_i32, %c0_i32_0 : i32, i32
  }
  func.func @transform_9(%arg0: i32, %arg1: i32) -> (i32, i32, i32, i32) {
    %c0_i32 = arith.constant 0 : i32
    %c0_i32_0 = arith.constant 0 : i32
    %c0_i32_1 = arith.constant 0 : i32
    return %arg0, %arg1, %c0_i32, %c0_i32_0 : i32, i32, i32, i32
  }
}

</mosaic_0001>

<bundles_post_ra>
// kernel: tpu_custom_call.1
= control target key start
LH: loop header
LB: loop body
LE: loop exit
PB: predicated region body
PF: predicated region fallthrough
CT: control target
= control target key end

     0   :  { %s7621_s0 = inlined_call_operand.hbm [shape: f32[2,16,16,32], index: 0, kind: input, shape index: {}]   ;;  %s7622_s1 = inlined_call_operand.hbm [shape: f32[4,64,64], index: 1, kind: input, shape index: {}]   ;;  %s7623_s2 = inlined_call_operand.vmem [shape: f32[1,32], index: 2, kind: input, shape index: {}]   ;;  %s7624_s3 = inlined_call_operand.vmem [shape: f32[1,32], index: 3, kind: input, shape index: {}]   ;;  %s7625_s4 = inlined_call_operand.hbm [shape: f32[4,64,64], index: 4, kind: input, shape index: {}]   ;;  %s7626_s5 = inlined_call_operand.hbm [shape: bf16[32,96], index: 5, kind: input, shape index: {}]   ;;  %s7627_s6 = inlined_call_operand.vmem [shape: f32[1,96], index: 6, kind: input, shape index: {}]   ;;  %s7628_s7 = inlined_call_operand.hbm [shape: bf16[32,32], index: 7, kind: input, shape index: {}]   ;;  %s7629_s8 = inlined_call_operand.vmem [shape: f32[1,32], index: 8, kind: input, shape index: {}]   ;;  %s7630_s9 = inlined_call_operand.hbm [shape: f32[2,16,16,32], index: 9, kind: output, shape index: {}]  }
   0x1   :  { %7691 = sst [smem:[#allocation72_spill]] %s7621_s0 }
   0x2   :  { %7692 = sst [smem:[#allocation73_spill]] %s7625_s4 }
   0x3   :  { %7693 = sst [smem:[#allocation74_spill]] %s7626_s5 }
   0x4   :  { %7694 = sst [smem:[#allocation75_spill]] %s7628_s7 }
   0x5   :  { %7695 = sst [smem:[#allocation76_spill]] %s7629_s8 }
   0x6   :  { %7696 = sst [smem:[#allocation77_spill]] %s7630_s9 }
   0x7   :  { %14 = vsyncpa [#allocation5], 0 }
   0x8   :  { %16 = vsyncpa [#allocation5 + $0x1], 0 }
   0x9   :  { %17 = vsyncpa [#allocation8], 0 }
   0xa   :  { %19 = vsyncpa [#allocation8 + $0x1], 0 }
   0xb   :  { %20 = vsyncpa [#allocation11], 0 }
   0xc   :  { %21 = vsyncpa [#allocation6], 0 }
   0xd   :  { %23 = vsyncpa [#allocation6 + $0x1], 0  ;;  %s5235_s30 = smov 0   ;;  %s5237_s10 = smov 0  }
   0xe   :  { %s5239_s11 = smov 0   ;;  %s5241_s12 = smov 0  }
   0xf   :  { %s5243_s13 = smov 0   ;;  %s5245_s14 = smov 0  }
  0x10   :  { %s5247_s15 = smov 0   ;;  %s5249_s16 = smov 0  }
  0x11   :  { %s5251_s17 = smov 0   ;;  %s5253_s18 = smov 0  }
  0x12   :  { %s5255_s19 = smov 0  }
  0x13 LB: > { %7697 = sst [smem:[#allocation19_spill]] %s5132_s12  ;;  %s5289_s20 = sadd.s32 4294967295, %s5160_s19   ;;  %s5160_s19 = sphi %s5255_s19, %s29_s19   ;;  %s5156_s18 = sphi %s5253_s18, %s7852_s18   ;;  %s5152_s17 = sphi %s5251_s17, %s7859_s17   ;;  %s5148_s16 = sphi %s5249_s16, %s7850_s16   ;;  %s5144_s15 = sphi %s5247_s15, %s7858_s15   ;;  %s5140_s14 = sphi %s5245_s14, %s7849_s14   ;;  %s5136_s13 = sphi %s5243_s13, %s7857_s13   ;;  %s5132_s12 = sphi %s5241_s12, %s7856_s12   ;;  %s5128_s11 = sphi %s5239_s11, %s7855_s11   ;;  %s5124_s10 = sphi %s5237_s10, %s7854_s10   ;;  %s5120_s30 = sphi %s5235_s30, %s7853_s30  }
  0x14   : > { %7698 = sst [smem:[#allocation20_spill]] %s5140_s14  ;;  %p89_p0 = scmp.ne.s32.totalorder %s5124_s10, %s5120_s30 }
  0x15   : > { %7699 = sst [smem:[#allocation21_spill]] %s5144_s15  ;;  %p64_p1 = scmp.eq.s32.totalorder %s5289_s20, 0 }
  0x16   : > { %7700 = sst [smem:[#allocation22_spill]] %s5148_s16  ;;  %p262_p2 = scmp.eq.s32.totalorder %s5289_s20, 3 }
  0x17   : > { %7701 = sst [smem:[#allocation23_spill]] %s5156_s18  ;;  %p4074_p3 = scmp.ge.s32.totalorder %s5160_s19, 1 }
  0x18   : > { %p275_p4 = scmp.lt.s32.totalorder %s5160_s19, 5  ;;  %p5298_p5 = por %p89_p0, %p64_p1 }
  0x19   : > { %s7704_s4 = sld [smem:[#allocation73_spill]]  ;;  %s5162_s26 = smov [#allocation9]  }
  0x1a   : > { %p5302_p6 = pnand %p4074_p3, %p275_p4  ;;  %s294_s27 = sshll.u32 %s5162_s26, 4  ;;  %s295_s27 = int_to_ptr.vmem [resolvable:$true] %s294_s27 }
  0x1b   : > { %s7706_s5 = sld [smem:[#allocation74_spill]]  ;;  %s7632_s23 = smov 128  }
  0x1c   : > { %p4424_p7 = pneg %p5302_p6  ;;  %s7635_s24 = smov 8  }
  0x1d   : > { %s5165_s26 = smov [#allocation10]   ;;  %s7707_s7 = sld [smem:[#allocation75_spill]] }
  0x1e   : > { %p5313_p8 = pnand %p4424_p7, %p64_p1  ;;  %s5166_s16 = smov 64  }
  0x1f   : > { %s292_s25 = sshll.u32 %s7704_s4, 4  ;;  %s308_s4 = sshll.u32 %s5165_s26, 4  ;;  %s293_s25 = int_to_ptr.hbm [resolvable:$true] %s292_s25  ;;  %s309_s4 = int_to_ptr.vmem [resolvable:$true] %s308_s4 }
  0x20   : > { %4427 = dma.hbm_to_vmem [thread:$0]  (!%p5313_p8), %s293_s25, 4096, %s295_s27, [#allocation8], %s7632_s23, %s7632_s23, %s7635_s24  }
  0x21   : > { %s306_s9 = sshll.u32 %s7706_s5, 4  ;;  %s5167_s15 = smov 4   ;;  %s307_s9 = int_to_ptr.hbm [resolvable:$true] %s306_s9 }
  0x22   : > { %4430 = dma.hbm_to_vmem [thread:$0]  (!%p5313_p8), %s307_s9, 256, %s309_s4, [#allocation11], %s5166_s16, %s5166_s16, %s5167_s15  }
  0x23   : > { %s323_s5 = sshll.u32 %s7707_s7, 4  ;;  %s5168_s25 = smov [#allocation12]   ;;  %s324_s5 = int_to_ptr.hbm [resolvable:$true] %s323_s5 }
  0x24   : > { %s325_s27 = sshll.u32 %s5168_s25, 4  ;;  %s4073_s26 = sadd.s32 4294967294, %s5160_s19   ;;  %s326_s27 = int_to_ptr.vmem [resolvable:$true] %s325_s27 }
  0x25   : > { %4433 = dma.hbm_to_vmem [thread:$0]  (!%p5313_p8), %s324_s5, 256, %s326_s27, [#allocation11], %s5166_s16, %s5166_s16, %s5167_s15  }
  0x26   : > { %s38_s29 = sadd.s32 1, %s5152_s17  ;;  %s41_s30 = sadd.s32 1, %s5156_s18 }
  0x27   : > { %p39_p9 = scmp.ge.s32.totalorder %s38_s29, 2  ;;  %s50_s23 = sadd.s32 1, %s5140_s14 }
  0x28   : > { %p57_p10 = scmp.ne.s32.totalorder %s5140_s14, %s5136_s13  ;;  %p7634_p11 = scmp.eq.s32.totalorder %s5160_s19, 0 }
  0x29   : > { %s7861_s29 = smov (%p39_p9, %s38_s29), 0  ;;  %s7863_s30 = smov (!%p39_p9, %s41_s30), %s5156_s18 }
  0x2a   : > { %7708 = sst [smem:[#allocation24_spill]] %s7861_s29  ;;  %s5343_s4 = ssub.s32 %s5152_s17, %s7861_s29 }
  0x2b   : > { %p43_p12 = scmp.ge.s32.totalorder %s7863_s30, 2  ;;  %p63_p13 = scmp.ne.s32.totalorder %s5136_s13, %s5132_s12 }
  0x2c   : > { %p5350_p0 = por %p7634_p11, %p57_p10  ;;  %p74_p3 = scmp.eq.s32.totalorder %s5343_s4, 0 }
  0x2d   : > { %s7865_s30 = smov (%p43_p12, %s7863_s30), 0  ;;  %p5359_p4 = por %p64_p1, %p63_p13 }
  0x2e   : > { %7710 = sst [smem:[#allocation25_spill]] %s7865_s30  ;;  %p5365_p7 = por %p262_p2, %p57_p10 }
  0x2f   : > { %s45_s16 = ssub.s32 %s5156_s18, %s7865_s30  ;;  %p268_p8 = scmp.eq.s32.totalorder %s4073_s26, 3 }
  0x30   : > { %s7712_s15 = scalar_select %p5365_p7, 1, 0 }
  0x31   : > { %s47_s28 = sor.u32 %s5343_s4, %s45_s16  ;;  %p4448_p9 = scmp.lt.s32.totalorder %s5160_s19, 4 }
  0x32   : > { %7713 = sst [smem:[#allocation26_spill]] %s7712_s15  ;;  %p48_p11 = scmp.eq.s32.totalorder %s47_s28, 0 }
  0x33   : > { %p5373_p12 = por %p268_p8, %p63_p13  ;;  %s342_s27 = sand.u32 1, %s5140_s14  }
  0x34   : > { %s4358_s24 = sshll.u32 %s5152_s17, 4  ;;  %s4079_s29 = sshll.u32 %s342_s27, 7 }
  0x35   : > { %s7714_s25 = scalar_select %p5373_p12, 1, 0 }
  0x36   : > { %s5380_s7 = scalar_select %p48_p11, %s5140_s14, %s50_s23  }
  0x37   : > { %7715 = sst [smem:[#allocation27_spill]] %s7714_s25  ;;  %s4082_s26 = sshll.u32 %s5156_s18, 5 }
  0x38   : > { %7716 = sst [smem:[#allocation28_spill]] %s5380_s7  ;;  %s352_s16 = sadd.s32 %s4358_s24, %s4082_s26 }
  0x39   : > { %s346_s28 = scalar_lea.vmem [#allocation4], %s4079_s29  ;;  %s4083_s12 = sshll.u32 %s352_s16, 3 }
  0x3a   : > { %s357_s30 = sshll.u32 %s346_s28, 4  ;;  %s7717_s0 = sld [smem:[#allocation72_spill]]  ;;  %s358_s30 = int_to_ptr.vmem [resolvable:$true] %s357_s30 }
  0x3b   : > { %p4435_p2 = pnand %p4448_p9, %p5350_p0  ;;  %s343_s7 = scalar_lea.sflag [#allocation5], %s342_s27 }
  0x3c   : > { %s7718_s14 = smov 8   ;;  %s7719_s18 = smov 128  }
  0x3d   : > { %s367_s24 = sand.u32 1, %s5160_s19   ;;  %s76_s29 = sadd.s32 1, %s5128_s11 }
  0x3e   : > { %p83_p10 = scmp.ne.s32.totalorder %s5128_s11, %s5124_s10  ;;  %p7720_p11 = scmp.eq.s32.totalorder %s5160_s19, 0 }
  0x3f   : > { %s5400_s26 = scalar_select %p74_p3, %s5128_s11, %s76_s29  }
  0x40   : > { %s354_s8 = scalar_lea.hbm %s7717_s0, %s4083_s12  ;;  %p85_p13 = por %p83_p10, %p7720_p11 }
  0x41   : > { %s355_s23 = sshll.u32 %s354_s8, 4  ;;  %s369_s12 = sand.u32 1, %s5128_s11   ;;  %s356_s23 = int_to_ptr.hbm [resolvable:$true] %s355_s23 }
  0x42   : > { %4437 = dma.hbm_to_vmem [thread:$0]  (!%p4435_p2), %s356_s23, 2048, %s358_s30, %s343_s7, %s7719_s18, %s7719_s18, %s7718_s14  }
  0x43   : > { %s4360_s5 = sshll.u32 %s5152_s17, 7  ;;  %s4084_s15 = sshll.u32 %s369_s12, 7 }
  0x44   : > { %s377_s27 = scalar_lea.hbm %s7622_s1, %s4360_s5  ;;  %s371_s28 = scalar_lea.vmem [#allocation7], %s4084_s15 }
  0x45   : > { %s378_s16 = sshll.u32 %s377_s27, 4  ;;  %s380_s0 = sshll.u32 %s371_s28, 4  ;;  %s379_s16 = int_to_ptr.hbm [resolvable:$true] %s378_s16  ;;  %s381_s0 = int_to_ptr.vmem [resolvable:$true] %s380_s0 }
  0x46   : > { %p4438_p0 = pnand %p4448_p9, %p85_p13  ;;  %s368_s7 = scalar_lea.sflag [#allocation8], %s367_s24 }
  0x47   : > { %392 = sbr.rel (%p5302_p6) target bundleno = 2141 (0x85d), region = 56 }
  0x48   : > { %4440 = dma.hbm_to_vmem [thread:$0]  (!%p4438_p0), %s379_s16, 2048, %s381_s0, %s368_s7, %s7719_s18, %s7719_s18, %s7718_s14  }
  0x4c   : > { %s5417_s30 = sand.u32 1, %s5136_s13  }
  0x4d   : > { %s4089_s4 = sshll.u32 %s5417_s30, 7  ;;  %s395_s23 = scalar_lea.sflag [#allocation5], %s5417_s30 }
  0x4e   : > { %s5423_s29 = scalar_lea.vmem [#allocation4], %s4089_s4 }
  0x4f   : > { %5099 = dma.done.wait (%p5359_p4), %s395_s23, 2048  }
  0x50   : > { %5101 = vsyncadd (%p5359_p4), %s395_s23, 4294965248  ;;  %s404_s0 = sand.u32 1, %s5289_s20   ;;  %s406_s14 = sand.u32 1, %s5124_s10  }
  0x51   : > { %s4090_s18 = sshll.u32 %s406_s14, 7  ;;  %s405_s22 = scalar_lea.sflag [#allocation8], %s404_s0 }
  0x52   : > { %s5431_s24 = scalar_lea.vmem [#allocation7], %s4090_s18 }
  0x53   : > { %5103 = dma.done.wait (%p5298_p5), %s405_s22, 2048  }
  0x54   : > { %5105 = vsyncadd (%p5298_p5), %s405_s22, 4294965248 }
  0x55   : > { %5107 = dma.done.wait (%p64_p1), [#allocation8], 4096  }
  0x56   : > { %5109 = vsyncadd (%p64_p1), [#allocation8], 4294963200 }
  0x57   : > { %5111 = dma.done.wait (%p64_p1), [#allocation11], 512  }
  0x58   : > { %5113 = vsyncadd (%p64_p1), [#allocation11], 4294966784  ;;  %vm484_vm0 = vcmask 261120   ;;  %v472_v0 = vld [vmem:[%s5423_s29 + $0x20] sm:$0xff]  ;;  %v474_v6 = vld [vmem:[%s5423_s29 + $0x30] sm:$0xff]  ;;  %v5169_v16 = vmov 32.0  }
  0x59   : > { %v468_v1 = vld [vmem:[%s5423_s29] sm:$0xff]  ;;  %v497_v2 = vsel %vm484_vm0, %v472_v0, 0.0  ;;  %v470_v7 = vld [vmem:[%s5423_s29 + $0x10] sm:$0xff]  ;;  %v503_v9 = vsel %vm484_vm0, %v474_v6, 0.0  ;;  %v5460_v14 = vld [vmem:[%s5423_s29 + $0x38] sm:$0xff]  ;;  %4568 = vrcp.f32 %v5169_v16  ;;  %s5170_s25 = smov 120  }
  0x5a   : > { %v485_v3 = vsel %vm484_vm0, %v468_v1, 0.0  ;;  %v476_v4 = vld [vmem:[%s5423_s29 + $0x40] sm:$0xff]  ;;  %498 = vadd.xlane.f32.xlu1 %v497_v2  ;;  %v478_v8 = vld [vmem:[%s5423_s29 + $0x50] sm:$0xff]  ;;  %v491_v10 = vsel %vm484_vm0, %v470_v7, 0.0  ;;  %v506_v15 = vsel %vm484_vm0, %v5460_v14, 0.0  ;;  %v5499_v49 = vld [vmem:[%s5423_s29 + $0x8] sm:$0xff] }
  0x5b   : > { %486 = vadd.xlane.f32.xlu0 %v485_v3  ;;  %v509_v5 = vsel %vm484_vm0, %v476_v4, 0.0  ;;  %v515_v11 = vsel %vm484_vm0, %v478_v8, 0.0  ;;  %v480_v12 = vld [vmem:[%s5423_s29 + $0x60] sm:$0xff]  ;;  %v5477_v36 = vld [vmem:[%s5423_s29 + $0x70] sm:$0xff]  ;;  %v488_v53 = vsel %vm484_vm0, %v5499_v49, 0.0  ;;  %v5513_v58 = vld [vmem:[%s5423_s29 + $0x48] sm:$0xff] }
  0x5c   : > { %510 = vadd.xlane.f32.xlu2 %v509_v5  ;;  %v521_v13 = vsel %vm484_vm0, %v480_v12, 0.0  ;;  %v527_v42 = vsel %vm484_vm0, %v5477_v36, 0.0  ;;  %v5516_v59 = vld [vmem:[%s5423_s29 + $0x18] sm:$0xff]  ;;  %v512_v62 = vsel %vm484_vm0, %v5513_v58, 0.0  ;;  %s5171_s8 = smov 96   ;;  %s5172_s27 = smov 112  }
  0x5d   : > { %v494_v63 = vsel %vm484_vm0, %v5516_v59, 0.0  ;;  %s5173_s16 = smov 80   ;;  %s5174_s28 = smov 88  }
  0x5e   : > { %s5175_s7 = smov 72   ;;  %s5176_s23 = smov 104  }
  0x5f   : > { %v4569_v17 = vpop.eup %4568  ;;  %s5178_s0 = smov 56   ;;  %s5179_s14 = smov 48  }
  0x60   : > { %v534_v18 = vmul.f32 32.0, %v4569_v17  ;;  %vm538_vm1 = vweird.f32 %v4569_v17  ;;  %s5180_s18 = smov 40   ;;  %s5181_s22 = smov 8  }
  0x61   : > { %s5183_s20 = smov 24   ;;  %s7841_s12 = sld [smem:[#allocation76_spill]] }
  0x62   : > { %504 = vadd.xlane.f32.xlu1 %v503_v9  ;;  %v535_v19 = vsub.f32 1.0, %v534_v18  ;;  %s7499_s5 = scalar_lea.vmem [#allocation13], %s4089_s4  ;;  %s7842_s4 = sld [smem:[#allocation21_spill]] }
  0x63   : > { %492 = vadd.xlane.f32.xlu0 %v491_v10  ;;  %s7843_s15 = sld [smem:[#allocation22_spill]] }
  0x64   : > { %516 = vadd.xlane.f32.xlu2 %v515_v11  ;;  %v536_v20 = vmul.f32 %v4569_v17, %v535_v19 }
  0x66   : > { %v537_v21 = vadd.f32 %v4569_v17, %v536_v20  ;;  %v4361_v20 = vld [vmem:[#allocation10] sm:$0xff] }
  0x68   : > { %v5464_v22 = vsel %vm538_vm1, %v4569_v17, %v537_v21  ;;  %v4362_v17 = vld [vmem:[#allocation10 + $0x8] sm:$0xff] }
  0x69   : > { %990 = vmatpush.bf16.msra.mxu0 %v4362_v17 }
  0x6c   : > { %522 = vadd.xlane.f32.xlu2 %v521_v13 }
  0x6d   : > { %991 = vmatpush.bf16.msra.mxu0 %v4361_v20 }
  0x74   : > { %507 = vadd.xlane.f32.xlu2 %v506_v15 }
  0xcd   : > { %v499_v23 = vpop.xlane.xlu1 %498 }
  0xce   : > { %v487_v24 = vpop.xlane.xlu0 %486  ;;  %v544_v35 = vmul.f32 %v5464_v22, %v499_v23 }
  0xcf   : > { %v540_v25 = vmul.f32 %v5464_v22, %v487_v24  ;;  %v511_v26 = vpop.xlane.xlu2 %510 }
  0xd0   : > { %v548_v34 = vmul.f32 %v5464_v22, %v511_v26  ;;  %v5491_v44 = vsub.f32 %v472_v0, %v544_v35 }
  0xd1   : > { %v5467_v27 = vsub.f32 %v468_v1, %v540_v25  ;;  %v5528_v1 = vld [vmem:[%s5423_s29 + $0x28] sm:$0xff] }
  0xd2   : > { %v5483_v40 = vsub.f32 %v476_v4, %v548_v34  ;;  %v576_v50 = vmul.f32 %v5491_v44, %v5491_v44  ;;  %v500_v3 = vsel %vm484_vm0, %v5528_v1, 0.0  ;;  %v5534_v4 = vld [vmem:[%s5423_s29 + $0x58] sm:$0xff] }
  0xd3   : > { %v572_v28 = vmul.f32 %v5467_v27, %v5467_v27  ;;  %v518_v5 = vsel %vm484_vm0, %v5534_v4, 0.0 }
  0xd4   : > { %v580_v48 = vmul.f32 %v5483_v40, %v5483_v40  ;;  %v600_v54 = vsel %vm484_vm0, %v576_v50, 0.0 }
  0xd5   : > { %v588_v29 = vsel %vm484_vm0, %v572_v28, 0.0  ;;  %v505_v30 = vpop.xlane.xlu1 %504 }
  0xd6   : > { %589 = vadd.xlane.f32.xlu0 %v588_v29  ;;  %v493_v31 = vpop.xlane.xlu0 %492  ;;  %v546_v32 = vmul.f32 %v5464_v22, %v505_v30  ;;  %v612_v52 = vsel %vm484_vm0, %v580_v48, 0.0 }
  0xd7   : > { %v542_v33 = vmul.f32 %v5464_v22, %v493_v31  ;;  %v517_v39 = vpop.xlane.xlu2 %516 }
  0xd8   : > { %v5479_v37 = vsub.f32 %v474_v6, %v546_v32  ;;  %v550_v47 = vmul.f32 %v5464_v22, %v517_v39 }
  0xd9   : > { %v5481_v38 = vsub.f32 %v470_v7, %v542_v33 }
  0xda   : > { %v578_v41 = vmul.f32 %v5479_v37, %v5479_v37  ;;  %v5503_v51 = vsub.f32 %v478_v8, %v550_v47  ;;  %v5540_v8 = vld [vmem:[%s5423_s29 + $0x68] sm:$0xff] }
  0xdb   : > { %v574_v43 = vmul.f32 %v5481_v38, %v5481_v38  ;;  %v524_v9 = vsel %vm484_vm0, %v5540_v8, 0.0 }
  0xdc   : > { %v606_v45 = vsel %vm484_vm0, %v578_v41, 0.0  ;;  %v582_v57 = vmul.f32 %v5503_v51, %v5503_v51 }
  0xdd   : > { %v594_v46 = vsel %vm484_vm0, %v574_v43, 0.0  ;;  %607 = vadd.xlane.f32.xlu2 %v606_v45 }
  0xde   : > { %528 = vadd.xlane.f32.xlu0 %v527_v42  ;;  %595 = vadd.xlane.f32.xlu1 %v594_v46  ;;  %v618_v61 = vsel %vm484_vm0, %v582_v57, 0.0 }
  0xdf   : > { %v523_v55 = vpop.xlane.xlu2 %522 }
  0xe0   : > { %v552_v56 = vmul.f32 %v5464_v22, %v523_v55 }
  0xe2   : > { %v5518_v60 = vsub.f32 %v480_v12, %v552_v56 }
  0xe4   : > { %v584_v0 = vmul.f32 %v5518_v60, %v5518_v60 }
  0xe5   : > { %613 = vadd.xlane.f32.xlu2 %v612_v52 }
  0xe6   : > { %489 = vadd.xlane.f32.xlu0 %v488_v53  ;;  %601 = vadd.xlane.f32.xlu1 %v600_v54  ;;  %v624_v2 = vsel %vm484_vm0, %v584_v0, 0.0 }
  0xe7   : > { %v508_v6 = vpop.xlane.xlu2 %507 }
  0xe8   : > { %v547_v7 = vmul.f32 %v5464_v22, %v508_v6 }
  0xea   : > { %v5545_v10 = vsub.f32 %v5460_v14, %v547_v7 }
  0xec   : > { %v579_v11 = vmul.f32 %v5545_v10, %v5545_v10 }
  0xed   : > { %513 = vadd.xlane.f32.xlu2 %v512_v62 }
  0xee   : > { %619 = vadd.xlane.f32.xlu0 %v618_v61  ;;  %495 = vadd.xlane.f32.xlu1 %v494_v63  ;;  %v609_v12 = vsel %vm484_vm0, %v579_v11, 0.0 }
  0xf6   : > { %625 = vadd.xlane.f32.xlu0 %v624_v2  ;;  %501 = vadd.xlane.f32.xlu1 %v500_v3 }
  0xfe   : > { %519 = vadd.xlane.f32.xlu0 %v518_v5 }
 0x106   : > { %525 = vadd.xlane.f32.xlu0 %v524_v9  ;;  %v5591_v9 = vld [vmem:[%s7623_s2] ss:$0 sm:$0xff] }
 0x10e   : > { %610 = vadd.xlane.f32.xlu0 %v609_v12 }
 0x149   : > { %v590_v13 = vpop.xlane.xlu0 %589 }
 0x14a   : > { %v636_v15 = vmul.f32 %v590_v13, %v5464_v22 }
 0x14c   : > { %v652_v16 = vadd.f32 1e-05, %v636_v15 }
 0x14e   : > { %4570 = vrsqrt.f32 %v652_v16  ;;  %vm674_vm3 = vweird.f32 %v652_v16 }
 0x150   : > { %v608_v18 = vpop.xlane.xlu2 %607 }
 0x151   : > { %v529_v19 = vpop.xlane.xlu0 %528  ;;  %v642_v14 = vmul.f32 %v608_v18, %v5464_v22  ;;  %v596_v21 = vpop.xlane.xlu1 %595 }
 0x152   : > { %v554_v23 = vmul.f32 %v5464_v22, %v529_v19  ;;  %v638_v24 = vmul.f32 %v596_v21, %v5464_v22  ;;  %v5607_v19 = vld [vmem:[%s5423_s29 + $0x78] sm:$0xff]  ;;  %s5177_s29 = smov 64  }
 0x153   : > { %v5554_v26 = vadd.f32 1e-05, %v642_v14 }
 0x154   : > { %v4571_v25 = vpop.eup %4570  ;;  %v5557_v28 = vsub.f32 %v5477_v36, %v554_v23  ;;  %v654_v30 = vadd.f32 1e-05, %v638_v24  ;;  %v5614_v23 = vld [vmem:[%s7624_s3] ss:$0 sm:$0xff] }
 0x155   : > { %v669_v29 = vmul.f32 %v4571_v25, %v652_v16  ;;  %4572 = vrsqrt.f32 %v5554_v26  ;;  %vm675_vm2 = vweird.f32 %v4571_v25  ;;  %vm734_vm8 = vweird.f32 %v5554_v26 }
 0x156   : > { %v586_v31 = vmul.f32 %v5557_v28, %v5557_v28  ;;  %4574 = vrsqrt.f32 %v654_v30  ;;  %vm5575_vm4 = vmor %vm674_vm3, %vm675_vm2  ;;  %vm694_vm5 = vweird.f32 %v654_v30 }
 0x157   : > { %v670_v32 = vmul.f32 %v4571_v25, %v669_v29 }
 0x158   : > { %v630_v33 = vsel %vm484_vm0, %v586_v31, 0.0  ;;  %v614_v35 = vpop.xlane.xlu2 %613 }
 0x159   : > { %v671_v34 = vmul.f32 0.5, %v670_v32  ;;  %631 = vadd.xlane.f32.xlu1 %v630_v33  ;;  %v490_v39 = vpop.xlane.xlu0 %489  ;;  %v644_v41 = vmul.f32 %v614_v35, %v5464_v22  ;;  %v602_v42 = vpop.xlane.xlu1 %601  ;;  %v530_v32 = vsel %vm484_vm0, %v5607_v19, 0.0 }
 0x15a   : > { %v541_v36 = vmul.f32 %v5464_v22, %v490_v39  ;;  %v640_v45 = vmul.f32 %v602_v42, %v5464_v22 }
 0x15b   : > { %v672_v43 = vsub.f32 1.5, %v671_v34  ;;  %v5566_v46 = vpop.eup %4572  ;;  %v5573_v53 = vadd.f32 1e-05, %v644_v41 }
 0x15c   : > { %v5569_v47 = vsub.f32 %v5499_v49, %v541_v36  ;;  %v4575_v48 = vpop.eup %4574  ;;  %v729_v52 = vmul.f32 %v5566_v46, %v5554_v26  ;;  %v656_v54 = vadd.f32 1e-05, %v640_v45  ;;  %vm735_vm9 = vweird.f32 %v5566_v46 }
 0x15d   : > { %v673_v50 = vmul.f32 %v4571_v25, %v672_v43  ;;  %v689_v56 = vmul.f32 %v4575_v48, %v654_v30  ;;  %vm695_vm6 = vweird.f32 %v4575_v48  ;;  %vm5643_vm12 = vmor %vm734_vm8, %vm735_vm9  ;;  %vm754_vm1 = vweird.f32 %v5573_v53 }
 0x15e   : > { %v730_v61 = vmul.f32 %v5566_v46, %v729_v52  ;;  %4576 = vrsqrt.f32 %v656_v54  ;;  %v573_v62 = vmul.f32 %v5569_v47, %v5569_v47  ;;  %vm5599_vm7 = vmor %vm694_vm5, %vm695_vm6  ;;  %vm714_vm10 = vweird.f32 %v656_v54 }
 0x15f   : > { %v677_v57 = vsel %vm5575_vm4, %v4571_v25, %v673_v50  ;;  %v690_v49 = vmul.f32 %v4575_v48, %v689_v56  ;;  %4578 = vrsqrt.f32 %v5573_v53 }
 0x160   : > { %v514_v0 = vpop.xlane.xlu2 %513  ;;  %v591_v5 = vsel %vm484_vm0, %v573_v62, 0.0  ;;  %v828_v7 = vmul.f32 %v677_v57, %v5467_v27  ;;  %v731_v11 = vmul.f32 0.5, %v730_v61 }
 0x161   : > { %v620_v63 = vpop.xlane.xlu0 %619  ;;  %v691_v2 = vmul.f32 0.5, %v690_v49  ;;  %v496_v3 = vpop.xlane.xlu1 %495  ;;  %592 = vadd.xlane.f32.xlu1 %v591_v5  ;;  %v549_v16 = vmul.f32 %v5464_v22, %v514_v0 }
 0x162   : > { %v646_v6 = vmul.f32 %v620_v63, %v5464_v22  ;;  %v543_v12 = vmul.f32 %v5464_v22, %v496_v3  ;;  %v848_v21 = vmul.f32 %v5591_v9, %v828_v7  ;;  %v732_v25 = vsub.f32 1.5, %v731_v11 }
 0x163   : > { %v692_v13 = vsub.f32 1.5, %v691_v2  ;;  %v5623_v31 = vsub.f32 %v5513_v58, %v549_v16 }
 0x164   : > { %v5594_v15 = vadd.f32 1e-05, %v646_v6  ;;  %v4577_v17 = vpop.eup %4576  ;;  %v5604_v27 = vsub.f32 %v5516_v59, %v543_v12  ;;  %v868_v58 = vadd.f32 %v5614_v23, %v848_v21  ;;  %v733_v42 = vmul.f32 %v5566_v46, %v732_v25 }
 0x165   : > { %v693_v20 = vmul.f32 %v4575_v48, %v692_v13  ;;  %v709_v14 = vmul.f32 %v4577_v17, %v656_v54  ;;  %v5616_v24 = vpop.eup %4578  ;;  %vm715_vm11 = vweird.f32 %v4577_v17  ;;  %v581_v52 = vmul.f32 %v5623_v31, %v5623_v31 }
 0x166   : > { %4580 = vrsqrt.f32 %v5594_v15  ;;  %v575_v59 = vmul.f32 %v5604_v27, %v5604_v27  ;;  %v749_v36 = vmul.f32 %v5616_v24, %v5573_v53  ;;  %vm5649_vm13 = vmor %vm714_vm10, %vm715_vm11  ;;  %v884_v61 = vpack.c.bf16 %v868_v58, %v868_v58 }
 0x167   : > { %v697_v29 = vsel %vm5599_vm7, %v4575_v48, %v693_v20  ;;  %v710_v30 = vmul.f32 %v4577_v17, %v709_v14  ;;  %v737_v49 = vsel %vm5643_vm12, %v5566_v46, %v733_v42  ;;  %vm774_vm14 = vweird.f32 %v5594_v15 }
 0x168   : > { %v597_v33 = vsel %vm484_vm0, %v575_v59, 0.0  ;;  %v830_v35 = vmul.f32 %v697_v29, %v5481_v38  ;;  %v750_v62 = vmul.f32 %v5616_v24, %v749_v36  ;;  %v908_v12 = vunpack.c.l.b16 %v884_v61 }
 0x169   : > { %v5630_v34 = vpop.xlane.xlu0 %625  ;;  %v711_v39 = vmul.f32 0.5, %v710_v30  ;;  %598 = vadd.xlane.f32.xlu2 %v597_v33  ;;  %v502_v41 = vpop.xlane.xlu1 %501  ;;  %531 = vadd.xlane.f32.xlu1 %v530_v32  ;;  %v834_v16 = vmul.f32 %v737_v49, %v5479_v37  ;;  %vm755_vm2 = vweird.f32 %v5616_v24 }
 0x16a   : > { %v545_v43 = vmul.f32 %v5464_v22, %v502_v41  ;;  %v850_v45 = vmul.f32 %v5591_v9, %v830_v35  ;;  %v751_v18 = vmul.f32 0.5, %v750_v62  ;;  %vm756_vm4 = vmor %vm754_vm1, %vm755_vm2 }
 0x16b   : > { %v712_v50 = vsub.f32 1.5, %v711_v39  ;;  %v854_v25 = vmul.f32 %v5591_v9, %v834_v16 }
 0x16c   : > { %v4581_v48 = vpop.eup %4580  ;;  %v5655_v56 = vsub.f32 %v5528_v1, %v545_v43  ;;  %v870_v26 = vadd.f32 %v5614_v23, %v850_v45  ;;  %v615_v1 = vsel %vm484_vm0, %v581_v52, 0.0  ;;  %v752_v59 = vsub.f32 1.5, %v751_v18 }
 0x16d   : > { %v769_v55 = vmul.f32 %v4581_v48, %v5594_v15  ;;  %v713_v57 = vmul.f32 %v4577_v17, %v712_v50  ;;  %vm775_vm15 = vweird.f32 %v4581_v48  ;;  %v874_v33 = vadd.f32 %v5614_v23, %v854_v25 }
 0x16e   : > { %v577_v0 = vmul.f32 %v5655_v56, %v5655_v56  ;;  %v886_v3 = vpack.c.bf16 %v870_v26, %v870_v26  ;;  %vm776_vm3 = vmor %vm774_vm14, %vm775_vm15  ;;  %v753_v35 = vmul.f32 %v5616_v24, %v752_v59 }
 0x16f   : > { %v770_v63 = vmul.f32 %v4581_v48, %v769_v55  ;;  %v717_v2 = vsel %vm5649_vm13, %v4577_v17, %v713_v57  ;;  %v890_v58 = vpack.c.bf16 %v874_v33, %v874_v33 }
 0x170   : > { %v603_v6 = vsel %vm484_vm0, %v577_v0, 0.0  ;;  %v832_v11 = vmul.f32 %v717_v2, %v5491_v44  ;;  %v909_v13 = vunpack.c.l.b16 %v886_v3  ;;  %v757_v42 = vsel %vm756_vm4, %v5616_v24, %v753_v35 }
 0x171   : > { %v771_v5 = vmul.f32 0.5, %v770_v63  ;;  %v520_v7 = vpop.xlane.xlu0 %519  ;;  %604 = vadd.xlane.f32.xlu2 %v603_v6  ;;  %616 = vadd.xlane.f32.xlu1 %v615_v1  ;;  %v911_v38 = vunpack.c.l.b16 %v890_v58  ;;  %v836_v50 = vmul.f32 %v757_v42, %v5483_v40  ;;  %v648_v40 = vmul.f32 %v5630_v34, %v5464_v22 }
 0x172   : > { %v551_v46 = vmul.f32 %v5464_v22, %v520_v7  ;;  %v916_v20 = vpack.c.b16 %v909_v13, %v908_v12  ;;  %v852_v14 = vmul.f32 %v5591_v9, %v832_v11  ;;  %vm1049_vm4 = vcmask 781312  }
 0x173   : > { %v772_v21 = vsub.f32 1.5, %v771_v5  ;;  %v664_v49 = vadd.f32 1e-05, %v648_v40 }
 0x174   : > { %v5672_v17 = vsub.f32 %v5534_v4, %v551_v46  ;;  %4103 = vmatmul.msk.bf16.vlgmr.msra.gmra.mxu0 %vm484_vm0, %v916_v20  ;;  %v872_v4 = vadd.f32 %v5614_v23, %v852_v14 }
 0x175   : > { %v773_v29 = vmul.f32 %v4581_v48, %v772_v21  ;;  %4582 = vrsqrt.f32 %v664_v49  ;;  %vm794_vm5 = vweird.f32 %v664_v49 }
 0x176   : > { %v583_v44 = vmul.f32 %v5672_v17, %v5672_v17  ;;  %v888_v39 = vpack.c.bf16 %v872_v4, %v872_v4 }
 0x177   : > { %v777_v41 = vsel %vm776_vm3, %v4581_v48, %v773_v29  ;;  %v856_v48 = vmul.f32 %v5591_v9, %v836_v50 }
 0x178   : > { %v621_v37 = vsel %vm484_vm0, %v583_v44, 0.0  ;;  %v910_v43 = vunpack.c.l.b16 %v888_v39  ;;  %v838_v45 = vmul.f32 %v777_v41, %v5503_v51 }
 0x179   : > { %v526_v30 = vpop.xlane.xlu0 %525  ;;  %622 = vadd.xlane.f32.xlu2 %v621_v37  ;;  %v876_v24 = vadd.f32 %v5614_v23, %v856_v48 }
 0x17a   : > { %v553_v32 = vmul.f32 %v5464_v22, %v526_v30  ;;  %v917_v52 = vpack.c.b16 %v911_v38, %v910_v43 }
 0x17b   : > { %v892_v57 = vpack.c.bf16 %v876_v24, %v876_v24  ;;  %v4583_v62 = vpop.eup %4582 }
 0x17c   : > { %v5688_v15 = vsub.f32 %v5540_v8, %v553_v32  ;;  %v858_v8 = vmul.f32 %v5591_v9, %v838_v45  ;;  %v789_v63 = vmul.f32 %v4583_v62, %v664_v49  ;;  %vm795_vm6 = vweird.f32 %v4583_v62 }
 0x17d   : > { %v912_v61 = vunpack.c.l.b16 %v892_v57  ;;  %vm796_vm7 = vmor %vm794_vm5, %vm795_vm6 }
 0x17e   : > { %v585_v53 = vmul.f32 %v5688_v15, %v5688_v15  ;;  %v878_v54 = vadd.f32 %v5614_v23, %v858_v8  ;;  %v790_v0 = vmul.f32 %v4583_v62, %v789_v63 }
 0x180   : > { %v627_v36 = vsel %vm484_vm0, %v585_v53, 0.0  ;;  %v894_v55 = vpack.c.bf16 %v878_v54, %v878_v54  ;;  %v791_v2 = vmul.f32 0.5, %v790_v0 }
 0x181   : > { %628 = vadd.xlane.f32.xlu0 %v627_v36  ;;  %v611_v5 = vpop.xlane.xlu0 %610 }
 0x182   : > { %v913_v26 = vunpack.c.l.b16 %v894_v55  ;;  %v792_v7 = vsub.f32 1.5, %v791_v2  ;;  %v643_v11 = vmul.f32 %v611_v5, %v5464_v22 }
 0x184   : > { %4104 = vmatmul.msk.bf16.gmra.mxu0 %vm484_vm0, %v917_v52  ;;  %v918_v51 = vpack.c.b16 %v913_v26, %v912_v61  ;;  %v793_v46 = vmul.f32 %v4583_v62, %v792_v7  ;;  %v5706_v34 = vadd.f32 1e-05, %v643_v11 }
 0x186   : > { %v797_v18 = vsel %vm796_vm7, %v4583_v62, %v793_v46  ;;  %vm744_vm2 = vweird.f32 %v5706_v34 }
 0x187   : > { %v840_v44 = vmul.f32 %v797_v18, %v5518_v60 }
 0x189   : > { %v860_v32 = vmul.f32 %v5591_v9, %v840_v44 }
 0x18b   : > { %v880_v45 = vadd.f32 %v5614_v23, %v860_v32 }
 0x194   : > { %4105 = vmatmul.msk.bf16.gmra.mxu0 %vm484_vm0, %v918_v51 }
 0x1cc   : > { %v632_v1 = vpop.xlane.xlu1 %631 }
 0x1cd   : > { %v650_v3 = vmul.f32 %v632_v1, %v5464_v22 }
 0x1cf   : > { %v666_v6 = vadd.f32 1e-05, %v650_v3 }
 0x1d1   : > { %4584 = vrsqrt.f32 %v666_v6  ;;  %vm814_vm9 = vweird.f32 %v666_v6 }
 0x1d2   : > { %4586 = vrsqrt.f32 %v5706_v34 }
 0x1d4   : > { %v593_v12 = vpop.xlane.xlu1 %592 }
 0x1d5   : > { %v637_v16 = vmul.f32 %v593_v12, %v5464_v22 }
 0x1d7   : > { %v4585_v13 = vpop.eup %4584  ;;  %v653_v14 = vadd.f32 1e-05, %v637_v16 }
 0x1d8   : > { %v809_v20 = vmul.f32 %v4585_v13, %v666_v6  ;;  %vm815_vm8 = vweird.f32 %v4585_v13  ;;  %v5714_v33 = vpop.eup %4586 }
 0x1d9   : > { %4588 = vrsqrt.f32 %v653_v14  ;;  %vm816_vm10 = vmor %vm814_vm9, %vm815_vm8  ;;  %v739_v42 = vmul.f32 %v5714_v33, %v5706_v34  ;;  %vm684_vm12 = vweird.f32 %v653_v14  ;;  %vm745_vm3 = vweird.f32 %v5714_v33 }
 0x1da   : > { %v810_v21 = vmul.f32 %v4585_v13, %v809_v20  ;;  %vm5757_vm5 = vmor %vm744_vm2, %vm745_vm3 }
 0x1db   : > { %v740_v24 = vmul.f32 %v5714_v33, %v739_v42 }
 0x1dc   : > { %v811_v25 = vmul.f32 0.5, %v810_v21  ;;  %v599_v59 = vpop.xlane.xlu2 %598  ;;  %v532_v29 = vpop.xlane.xlu1 %531  ;;  %v5744_v21 = vld [vmem:[%s7627_s6] ss:$0 sm:$0xff] }
 0x1dd   : > { %v639_v4 = vmul.f32 %v599_v59, %v5464_v22  ;;  %v555_v30 = vmul.f32 %v5464_v22, %v532_v29  ;;  %v741_v0 = vmul.f32 0.5, %v740_v24 }
 0x1de   : > { %v812_v37 = vsub.f32 1.5, %v811_v25 }
 0x1df   : > { %v655_v39 = vadd.f32 1e-05, %v639_v4  ;;  %v4589_v41 = vpop.eup %4588  ;;  %v5717_v60 = vsub.f32 %v5607_v19, %v555_v30 }
 0x1e0   : > { %v813_v35 = vmul.f32 %v4585_v13, %v812_v37  ;;  %v679_v58 = vmul.f32 %v4589_v41, %v653_v14  ;;  %vm685_vm11 = vweird.f32 %v4589_v41 }
 0x1e1   : > { %4590 = vrsqrt.f32 %v655_v39  ;;  %v587_v36 = vmul.f32 %v5717_v60, %v5717_v60  ;;  %vm686_vm13 = vmor %vm684_vm12, %vm685_vm11  ;;  %vm704_vm14 = vweird.f32 %v655_v39 }
 0x1e2   : > { %v817_v53 = vsel %vm816_vm10, %v4585_v13, %v813_v35  ;;  %v680_v38 = vmul.f32 %v4589_v41, %v679_v58  ;;  %v742_v13 = vsub.f32 1.5, %v741_v0 }
 0x1e3   : > { %v842_v43 = vmul.f32 %v817_v53, %v5557_v28  ;;  %v633_v52 = vsel %vm484_vm0, %v587_v36, 0.0  ;;  %v896_v28 = vpack.c.bf16 %v880_v45, %v880_v45 }
 0x1e4   : > { %v605_v50 = vpop.xlane.xlu2 %604  ;;  %v681_v8 = vmul.f32 0.5, %v680_v38  ;;  %634 = vadd.xlane.f32.xlu1 %v633_v52  ;;  %v617_v54 = vpop.xlane.xlu1 %616  ;;  %v743_v37 = vmul.f32 %v5714_v33, %v742_v13 }
 0x1e5   : > { %v862_v19 = vmul.f32 %v5591_v9, %v842_v43  ;;  %v641_v48 = vmul.f32 %v605_v50, %v5464_v22  ;;  %v645_v55 = vmul.f32 %v617_v54, %v5464_v22  ;;  %v914_v1 = vunpack.c.l.b16 %v896_v28 }
 0x1e6   : > { %v682_v61 = vsub.f32 1.5, %v681_v8 }
 0x1e7   : > { %v882_v57 = vadd.f32 %v5614_v23, %v862_v19  ;;  %v4591_v26 = vpop.eup %4590  ;;  %v657_v51 = vadd.f32 1e-05, %v641_v48  ;;  %v5731_v49 = vadd.f32 1e-05, %v645_v55 }
 0x1e8   : > { %v699_v40 = vmul.f32 %v4591_v26, %v655_v39  ;;  %v683_v63 = vmul.f32 %v4589_v41, %v682_v61  ;;  %vm705_vm15 = vweird.f32 %v4591_v26 }
 0x1e9   : > { %v898_v62 = vpack.c.bf16 %v882_v57, %v882_v57  ;;  %4592 = vrsqrt.f32 %v657_v51  ;;  %vm5737_vm1 = vmor %vm704_vm14, %vm705_vm15  ;;  %vm724_vm6 = vweird.f32 %v657_v51  ;;  %vm764_vm11 = vweird.f32 %v5731_v49 }
 0x1ea   : > { %v700_v2 = vmul.f32 %v4591_v26, %v699_v40  ;;  %v687_v5 = vsel %vm686_vm13, %v4589_v41, %v683_v63  ;;  %4594 = vrsqrt.f32 %v5731_v49 }
 0x1eb   : > { %v915_v3 = vunpack.c.l.b16 %v898_v62  ;;  %v829_v46 = vmul.f32 %v687_v5, %v5569_v47 }
 0x1ec   : > { %v701_v6 = vmul.f32 0.5, %v700_v2  ;;  %v623_v7 = vpop.xlane.xlu2 %622 }
 0x1ed   : > { %v919_v11 = vpack.c.b16 %v915_v3, %v914_v1  ;;  %v647_v12 = vmul.f32 %v623_v7, %v5464_v22  ;;  %v849_v44 = vmul.f32 %v5591_v9, %v829_v46 }
 0x1ee   : > { %v702_v16 = vsub.f32 1.5, %v701_v6 }
 0x1ef   : > { %4106 = vmatmul.msk.bf16.gmra.mxu0 %vm484_vm0, %v919_v11  ;;  %v4593_v18 = vpop.eup %4592  ;;  %v663_v14 = vadd.f32 1e-05, %v647_v12  ;;  %v869_v39 = vadd.f32 %v5614_v23, %v849_v44 }
 0x1f0   : > { %v703_v47 = vmul.f32 %v4591_v26, %v702_v16  ;;  %v719_v25 = vmul.f32 %v4593_v18, %v657_v51  ;;  %v5747_v59 = vpop.eup %4594  ;;  %vm725_vm7 = vweird.f32 %v4593_v18 }
 0x1f1   : > { %4596 = vrsqrt.f32 %v663_v14  ;;  %v993_v30 = vpop.f32.mrf.mxu0  ;;  %v759_v53 = vmul.f32 %v5747_v59, %v5731_v49  ;;  %vm726_vm8 = vmor %vm724_vm6, %vm725_vm7  ;;  %v885_v38 = vpack.c.bf16 %v869_v39, %v869_v39  ;;  %vm784_vm9 = vweird.f32 %v663_v14 }
 0x1f2   : > { %v707_v4 = vsel %vm5737_vm1, %v4591_v26, %v703_v47  ;;  %v720_v29 = vmul.f32 %v4593_v18, %v719_v25  ;;  %v994_v32 = vadd.f32 %v5744_v21, %v993_v30  ;;  %vm765_vm12 = vweird.f32 %v5747_v59 }
 0x1f3   : > { %v831_v35 = vmul.f32 %v707_v4, %v5604_v27  ;;  %v747_v27 = vsel %vm5757_vm5, %v5714_v33, %v743_v37  ;;  %v760_v52 = vmul.f32 %v5747_v59, %v759_v53  ;;  %v928_v28 = vunpack.c.l.b16 %v885_v38  ;;  %vm5787_vm14 = vmor %vm764_vm11, %vm765_vm12 }
 0x1f4   : > { %v721_v34 = vmul.f32 0.5, %v720_v29  ;;  %v1033_v58 = vpack.c.bf16 %v994_v32, %v994_v32  ;;  %v835_v55 = vmul.f32 %v747_v27, %v5545_v10  ;;  %vm1126_vm7 = vcmask 64512  }
 0x1f5   : > { %v851_v42 = vmul.f32 %v5591_v9, %v831_v35  ;;  %v761_v61 = vmul.f32 0.5, %v760_v52  ;;  %vm3730_vm11 = vcmask 257216  }
 0x1f6   : > { %v722_v36 = vsub.f32 1.5, %v721_v34  ;;  %1050 = vst.msk [vmem:[#allocation2] sm:$0xf] %vm1049_vm4, %v1033_v58  ;;  %v855_v2 = vmul.f32 %v5591_v9, %v835_v55 }
 0x1f7   : > { %v4597_v43 = vpop.eup %4596  ;;  %v871_v45 = vadd.f32 %v5614_v23, %v851_v42  ;;  %v762_v10 = vsub.f32 1.5, %v761_v61 }
 0x1f8   : > { %v723_v50 = vmul.f32 %v4593_v18, %v722_v36  ;;  %v779_v19 = vmul.f32 %v4597_v43, %v663_v14  ;;  %vm785_vm10 = vweird.f32 %v4597_v43  ;;  %v875_v7 = vadd.f32 %v5614_v23, %v855_v2 }
 0x1f9   : > { %v887_v8 = vpack.c.bf16 %v871_v45, %v871_v45  ;;  %v995_v24 = vpop.f32.mrf.mxu0  ;;  %vm5780_vm13 = vmor %vm784_vm9, %vm785_vm10  ;;  %v763_v11 = vmul.f32 %v5747_v59, %v762_v10  ;;  %vm2358_vm9 = vcmask 126016   ;;  %vm3044_vm10 = vcmask 191616  }
 0x1fa   : > { %v727_v48 = vsel %vm726_vm8, %v4593_v18, %v723_v50  ;;  %v780_v54 = vmul.f32 %v4597_v43, %v779_v19  ;;  %v996_v57 = vadd.f32 %v5744_v21, %v995_v24  ;;  %v891_v14 = vpack.c.bf16 %v875_v7, %v875_v7 }
 0x1fb   : > { %v929_v33 = vunpack.c.l.b16 %v887_v8  ;;  %v833_v26 = vmul.f32 %v727_v48, %v5655_v56  ;;  %v767_v44 = vsel %vm5787_vm14, %v5747_v59, %v763_v11  ;;  %vm1672_vm8 = vcmask 60416  }
 0x1fc   : > { %v781_v51 = vmul.f32 0.5, %v780_v54  ;;  %v1034_v40 = vpack.c.bf16 %v996_v57, %v996_v57  ;;  %v931_v29 = vunpack.c.l.b16 %v891_v14  ;;  %v837_v30 = vmul.f32 %v767_v44, %v5623_v31 }
 0x1fd   : > { %v936_v62 = vpack.c.b16 %v929_v33, %v928_v28  ;;  %v853_v63 = vmul.f32 %v5591_v9, %v833_v26  ;;  %v629_v28 = vpop.xlane.xlu0 %628 }
 0x1fe   : > { %v782_v0 = vsub.f32 1.5, %v781_v51  ;;  %1051 = vst.msk [vmem:[#allocation2 + $0x4] sm:$0xf] %vm1049_vm4, %v1034_v40  ;;  %v857_v41 = vmul.f32 %v5591_v9, %v837_v30  ;;  %v649_v26 = vmul.f32 %v629_v28, %v5464_v22 }
 0x1ff   : > { %4107 = vmatmul.msk.bf16.gmra.mxu0 %vm484_vm0, %v936_v62  ;;  %v873_v1 = vadd.f32 %v5614_v23, %v853_v63 }
 0x200   : > { %v783_v56 = vmul.f32 %v4597_v43, %v782_v0  ;;  %v877_v53 = vadd.f32 %v5614_v23, %v857_v41  ;;  %v665_v61 = vadd.f32 1e-05, %v649_v26 }
 0x201   : > { %v998_v3 = vpop.f32.mrf.mxu0  ;;  %v889_v49 = vpack.c.bf16 %v873_v1, %v873_v1 }
 0x202   : > { %v999_v6 = vadd.f32 %v5744_v21, %v998_v3  ;;  %v787_v13 = vsel %vm5780_vm13, %v4597_v43, %v783_v56  ;;  %v893_v36 = vpack.c.bf16 %v877_v53, %v877_v53  ;;  %4598 = vrsqrt.f32 %v665_v61 }
 0x203   : > { %v930_v47 = vunpack.c.l.b16 %v889_v49  ;;  %v839_v25 = vmul.f32 %v787_v13, %v5672_v17  ;;  %vm804_vm15 = vweird.f32 %v665_v61 }
 0x204   : > { %v1035_v12 = vpack.c.bf16 %v999_v6, %v999_v6  ;;  %v932_v38 = vunpack.c.l.b16 %v893_v36 }
 0x205   : > { %v4371_v16 = vld [vmem:[#allocation2] sm:$0xff]  ;;  %v937_v32 = vpack.c.b16 %v931_v29, %v930_v47  ;;  %v859_v35 = vmul.f32 %v5591_v9, %v839_v25 }
 0x206   : > { %v5793_v18 = vld [vmem:[#allocation2] sm:$0xff]  ;;  %1052 = vst.msk [vmem:[#allocation2 + $0x8] sm:$0xf] %vm1049_vm4, %v1035_v12  ;;  %1725 = vrot.lane.b32.xlu1 %v4371_v16, %s5170_s25 }
 0x207   : > { %v4379_v20 = vld [vmem:[#allocation2] sm:$0xff]  ;;  %1118 = vrot.lane.b32.xlu2 %v5793_v18, %s5171_s8  ;;  %v879_v31 = vadd.f32 %v5614_v23, %v859_v35 }
 0x208   : > { %2411 = vrot.lane.b32.xlu0 %v4379_v20, %s5172_s27  ;;  %v4387_v39 = vld [vmem:[#allocation2] sm:$0xff]  ;;  %v4599_v51 = vpop.eup %4598 }
 0x209   : > { %v1000_v37 = vpop.f32.mrf.mxu0  ;;  %v895_v42 = vpack.c.bf16 %v879_v31, %v879_v31  ;;  %v799_v40 = vmul.f32 %v4599_v51, %v665_v61  ;;  %vm805_vm1 = vweird.f32 %v4599_v51 }
 0x20a   : > { %v1001_v4 = vadd.f32 %v5744_v21, %v1000_v37  ;;  %vm806_vm2 = vmor %vm804_vm15, %vm805_vm1 }
 0x20b   : > { %v933_v43 = vunpack.c.l.b16 %v895_v42  ;;  %v800_v62 = vmul.f32 %v4599_v51, %v799_v40 }
 0x20c   : > { %v1036_v59 = vpack.c.bf16 %v1001_v4, %v1001_v4 }
 0x20d   : > { %v938_v52 = vpack.c.b16 %v933_v43, %v932_v38  ;;  %v801_v63 = vmul.f32 0.5, %v800_v62 }
 0x20e   : > { %1053 = vst.msk [vmem:[#allocation2 + $0xc] sm:$0xf] %vm1049_vm4, %v1036_v59  ;;  %2419 = vrot.lane.b32.xlu1 %v4379_v20, %s5173_s16 }
 0x20f   : > { %4108 = vmatmul.msk.bf16.gmra.mxu0 %vm484_vm0, %v937_v32  ;;  %1733 = vrot.lane.b32.xlu2 %v4371_v16, %s5174_s28  ;;  %v802_v1 = vsub.f32 1.5, %v801_v63 }
 0x210   : > { %3105 = vrot.lane.b32.xlu0 %v4387_v39, %s5175_s7 }
 0x211   : > { %v1003_v17 = vpop.f32.mrf.mxu0  ;;  %v803_v56 = vmul.f32 %v4599_v51, %v802_v1 }
 0x212   : > { %v1004_v34 = vadd.f32 %v5744_v21, %v1003_v17 }
 0x213   : > { %v807_v5 = vsel %vm806_vm2, %v4599_v51, %v803_v56 }
 0x214   : > { %v1037_v58 = vpack.c.bf16 %v1004_v34, %v1004_v34  ;;  %v841_v11 = vmul.f32 %v807_v5, %v5688_v15 }
 0x215   : > { %v4388_v19 = vld [vmem:[#allocation2 + $0x8] sm:$0xff] }
 0x216   : > { %1054 = vst.msk [vmem:[#allocation2 + $0x10] sm:$0xf] %vm1049_vm4, %v1037_v58  ;;  %3097 = vrot.lane.b32.xlu1 %v4387_v39, %s5176_s23  ;;  %v4372_v8 = vld [vmem:[#allocation2 + $0x8] sm:$0xff]  ;;  %v861_v49 = vmul.f32 %v5591_v9, %v841_v11 }
 0x217   : > { %1530 = vrot.lane.b32.xlu2 %v5793_v18, %s5177_s29  ;;  %v5827_v48 = vld [vmem:[#allocation2 + $0x8] sm:$0xff] }
 0x218   : > { %2152 = vrot.lane.b32.xlu0 %v4371_v16, %s5178_s0  ;;  %v4380_v24 = vld [vmem:[#allocation2 + $0x8] sm:$0xff]  ;;  %v881_v47 = vadd.f32 %v5614_v23, %v861_v49 }
 0x219   : > { %v1005_v27 = vpop.f32.mrf.mxu0 }
 0x21a   : > { %v1006_v45 = vadd.f32 %v5744_v21, %v1005_v27  ;;  %v897_v4 = vpack.c.bf16 %v881_v47, %v881_v47 }
 0x21c   : > { %v1038_v50 = vpack.c.bf16 %v1006_v45, %v1006_v45  ;;  %v934_v32 = vunpack.c.l.b16 %v897_v4 }
 0x21e   : > { %1055 = vst.msk [vmem:[#allocation2 + $0x14] sm:$0xf] %vm1049_vm4, %v1038_v50  ;;  %2838 = vrot.lane.b32.xlu1 %v4379_v20, %s5179_s14 }
 0x21f   : > { %4109 = vmatmul.msk.bf16.gmra.mxu0 %vm484_vm0, %v938_v52  ;;  %3107 = vrot.lane.b32.xlu2 %v4388_v19, %s5175_s7 }
 0x220   : > { %1735 = vrot.lane.b32.xlu0 %v4372_v8, %s5174_s28 }
 0x225   : > { %v5834_v54 = vld [vmem:[#allocation2 + $0x10] sm:$0xff] }
 0x226   : > { %1120 = vrot.lane.b32.xlu1 %v5827_v48, %s5171_s8  ;;  %v5840_v55 = vld [vmem:[#allocation2 + $0x10] sm:$0xff] }
 0x227   : > { %1532 = vrot.lane.b32.xlu2 %v5827_v48, %s5177_s29  ;;  %v4389_v57 = vld [vmem:[#allocation2 + $0x10] sm:$0xff] }
 0x228   : > { %1727 = vrot.lane.b32.xlu0 %v4372_v8, %s5170_s25  ;;  %v4381_v33 = vld [vmem:[#allocation2 + $0x10] sm:$0xff] }
 0x22e   : > { %2154 = vrot.lane.b32.xlu1 %v4372_v8, %s5178_s0 }
 0x22f   : > { %1737 = vrot.lane.b32.xlu2 %v5834_v54, %s5174_s28 }
 0x230   : > { %2421 = vrot.lane.b32.xlu0 %v4380_v24, %s5173_s16 }
 0x236   : > { %1534 = vrot.lane.b32.xlu1 %v5840_v55, %s5177_s29 }
 0x237   : > { %3101 = vrot.lane.b32.xlu2 %v4389_v57, %s5176_s23 }
 0x238   : > { %2413 = vrot.lane.b32.xlu0 %v4380_v24, %s5172_s27 }
 0x23e   : > { %2842 = vrot.lane.b32.xlu1 %v4381_v33, %s5179_s14 }
 0x240   : > { %3099 = vrot.lane.b32.xlu0 %v4388_v19, %s5176_s23 }
 0x248   : > { %2840 = vrot.lane.b32.xlu0 %v4380_v24, %s5179_s14 }
 0x250   : > { %1122 = vrot.lane.b32.xlu0 %v5840_v55, %s5171_s8 }
 0x257   : > { %v635_v0 = vpop.xlane.xlu1 %634 }
 0x258   : > { %v651_v2 = vmul.f32 %v635_v0, %v5464_v22  ;;  %1729 = vrot.lane.b32.xlu0 %v5834_v54, %s5170_s25 }
 0x25a   : > { %v667_v10 = vadd.f32 1e-05, %v651_v2 }
 0x25c   : > { %4600 = vrsqrt.f32 %v667_v10  ;;  %vm824_vm5 = vweird.f32 %v667_v10 }
 0x260   : > { %2423 = vrot.lane.b32.xlu0 %v4381_v33, %s5173_s16 }
 0x261   : > { %v5898_v24 = vpop.permute.xlu2 %1118 }
 0x262   : > { %v4601_v3 = vpop.eup %4600 }
 0x263   : > { %v819_v6 = vmul.f32 %v4601_v3, %v667_v10  ;;  %vm825_vm3 = vweird.f32 %v4601_v3 }
 0x264   : > { %vm826_vm6 = vmor %vm824_vm5, %vm825_vm3 }
 0x265   : > { %v820_v7 = vmul.f32 %v4601_v3, %v819_v6 }
 0x267   : > { %v821_v46 = vmul.f32 0.5, %v820_v7 }
 0x268   : > { %2415 = vrot.lane.b32.xlu0 %v4381_v33, %s5172_s27 }
 0x269   : > { %v822_v22 = vsub.f32 1.5, %v821_v46  ;;  %v5911_v63 = vpop.permute.xlu2 %1733 }
 0x26b   : > { %v823_v13 = vmul.f32 %v4601_v3, %v822_v22 }
 0x26c   : > { %v1008_v12 = vpop.f32.mrf.mxu0 }
 0x26d   : > { %v1009_v16 = vadd.f32 %v5744_v21, %v1008_v12  ;;  %v827_v20 = vsel %vm826_vm6, %v4601_v3, %v823_v13 }
 0x26e   : > { %v843_v44 = vmul.f32 %v827_v20, %v5717_v60 }
 0x26f   : > { %v1039_v14 = vpack.c.bf16 %v1009_v16, %v1009_v16 }
 0x270   : > { %3109 = vrot.lane.b32.xlu0 %v4389_v57, %s5175_s7  ;;  %v863_v15 = vmul.f32 %v5591_v9, %v843_v44 }
 0x271   : > { %1056 = vst.msk [vmem:[#allocation2 + $0x18] sm:$0xf] %vm1049_vm4, %v1039_v14  ;;  %v5928_v5 = vpop.permute.xlu2 %1530 }
 0x272   : > { %v883_v37 = vadd.f32 %v5614_v23, %v863_v15 }
 0x274   : > { %v1010_v25 = vpop.f32.mrf.mxu0  ;;  %v899_v30 = vpack.c.bf16 %v883_v37, %v883_v37 }
 0x275   : > { %v1011_v29 = vadd.f32 %v5744_v21, %v1010_v25 }
 0x276   : > { %v935_v35 = vunpack.c.l.b16 %v899_v30 }
 0x277   : > { %v1040_v59 = vpack.c.bf16 %v1011_v29, %v1011_v29 }
 0x278   : > { %2156 = vrot.lane.b32.xlu0 %v5834_v54, %s5178_s0  ;;  %v939_v60 = vpack.c.b16 %v935_v35, %v934_v32  ;;  %v5918_v0 = vpop.permute.xlu1 %1725 }
 0x279   : > { %1057 = vst.msk [vmem:[#allocation2 + $0x1c] sm:$0xf] %vm1049_vm4, %v1040_v59  ;;  %v5940_v46 = vpop.permute.xlu2 %3107 }
 0x27a   : > { %4110 = vmatmul.msk.bf16.gmra.mxu0 %vm484_vm0, %v939_v60  ;;  %v5871_v39 = vpop.permute.xlu0 %2411 }
 0x27c   : > { %v1013_v9 = vpop.f32.mrf.mxu0 }
 0x27d   : > { %v1014_v23 = vadd.f32 %v5744_v21, %v1013_v9 }
 0x27f   : > { %v1041_v41 = vpack.c.bf16 %v1014_v23, %v1014_v23 }
 0x280   : > { %v4374_v31 = vld [vmem:[#allocation2 + $0x18] sm:$0xff]  ;;  %v5930_v6 = vpop.permute.xlu1 %2419 }
 0x281   : > { %v5874_v17 = vld [vmem:[#allocation2 + $0x18] sm:$0xff]  ;;  %1058 = vst.msk [vmem:[#allocation2 + $0x20] sm:$0xf] %vm1049_vm4, %v1041_v41  ;;  %1739 = vrot.lane.b32.xlu1 %v4374_v31, %s5174_s28  ;;  %v5949_v49 = vpop.permute.xlu2 %1532 }
 0x282   : > { %v4382_v34 = vld [vmem:[#allocation2 + $0x18] sm:$0xff]  ;;  %1124 = vrot.lane.b32.xlu2 %v5874_v17, %s5171_s8  ;;  %v5881_v53 = vpop.permute.xlu0 %3105 }
 0x283   : > { %2417 = vrot.lane.b32.xlu0 %v4382_v34, %s5172_s27  ;;  %v4390_v50 = vld [vmem:[#allocation2 + $0x18] sm:$0xff] }
 0x284   : > { %v1015_v58 = vpop.f32.mrf.mxu0 }
 0x285   : > { %v1016_v42 = vadd.f32 %v5744_v21, %v1015_v58 }
 0x287   : > { %v1042_v36 = vpack.c.bf16 %v1016_v42, %v1016_v42 }
 0x288   : > { %v5942_v22 = vpop.permute.xlu1 %3097 }
 0x289   : > { %1059 = vst.msk [vmem:[#allocation2 + $0x24] sm:$0xf] %vm1049_vm4, %v1042_v36  ;;  %1731 = vrot.lane.b32.xlu1 %v4374_v31, %s5170_s25  ;;  %v1738_v44 = vpop.permute.xlu2 %1737 }
 0x28a   : > { %2425 = vrot.lane.b32.xlu2 %v4382_v34, %s5173_s16  ;;  %v5887_v43 = vpop.permute.xlu0 %2152 }
 0x28c   : > { %v1018_v27 = vpop.f32.mrf.mxu0 }
 0x28d   : > { %v1019_v45 = vadd.f32 %v5744_v21, %v1018_v27 }
 0x28f   : > { %v1043_v38 = vpack.c.bf16 %v1019_v45, %v1019_v45 }
 0x290   : > { %v4375_v52 = vld [vmem:[#allocation2 + $0x20] sm:$0xff]  ;;  %v5953_v16 = vpop.permute.xlu1 %2838 }
 0x291   : > { %1060 = vst.msk [vmem:[#allocation2 + $0x28] sm:$0xf] %vm1049_vm4, %v1043_v38  ;;  %1536 = vrot.lane.b32.xlu1 %v5874_v17, %s5177_s29  ;;  %2225 = vrot.lane.b32.xlu0 %v4375_v52, %s5178_s0  ;;  %v5900_v28 = vld [vmem:[#allocation2 + $0x20] sm:$0xff]  ;;  %v5965_v37 = vpop.permute.xlu2 %3101  ;;  %v1140_v38 = vsel %vm1126_vm7, %v5898_v24, 0  ;;  %v1760_v24 = vsel %vm1126_vm7, %v1738_v44, 0 }
 0x292   : > { %3111 = vrot.lane.b32.xlu2 %v4390_v50, %s5175_s7  ;;  %v5895_v19 = vpop.permute.xlu0 %1735  ;;  %v4383_v40 = vld [vmem:[#allocation2 + $0x20] sm:$0xff] }
 0x293   : > { %v4391_v3 = vld [vmem:[#allocation2 + $0x20] sm:$0xff] }
 0x294   : > { %v1020_v8 = vpop.f32.mrf.mxu0 }
 0x295   : > { %v1021_v54 = vadd.f32 %v5744_v21, %v1020_v8 }
 0x297   : > { %v1044_v57 = vpack.c.bf16 %v1021_v54, %v1021_v54 }
 0x298   : > { %v1121_v47 = vpop.permute.xlu1 %1120 }
 0x299   : > { %1061 = vst.msk [vmem:[#allocation2 + $0x2c] sm:$0xf] %vm1049_vm4, %v1044_v57  ;;  %1200 = vrot.lane.b32.xlu1 %v5900_v28, %s5171_s8  ;;  %v1143_v42 = vsel %vm1126_vm7, %v1121_v47, 0 }
 0x29a   : > { %3103 = vrot.lane.b32.xlu2 %v4390_v50, %s5176_s23  ;;  %v5906_v33 = vpop.permute.xlu0 %1727 }
 0x29c   : > { %v1023_v26 = vpop.f32.mrf.mxu0 }
 0x29d   : > { %v1024_v61 = vadd.f32 %v5744_v21, %v1023_v26 }
 0x29f   : > { %v1045_v51 = vpack.c.bf16 %v1024_v61, %v1024_v61 }
 0x2a0   : > { %v5909_v62 = vld [vmem:[#allocation2 + $0x28] sm:$0xff]  ;;  %v2155_v4 = vpop.permute.xlu1 %2154 }
 0x2a1   : > { %1062 = vst.msk [vmem:[#allocation2 + $0x30] sm:$0xf] %vm1049_vm4, %v1045_v51  ;;  %2500 = vrot.lane.b32.xlu1 %v4383_v40, %s5172_s27  ;;  %1202 = vrot.lane.b32.xlu0 %v5909_v62, %s5171_s8  ;;  %v4376_v13 = vld [vmem:[#allocation2 + $0x28] sm:$0xff] }
 0x2a2   : > { %2158 = vrot.lane.b32.xlu2 %v4374_v31, %s5178_s0  ;;  %v5920_v10 = vpop.permute.xlu0 %2421  ;;  %v5957_v14 = vld [vmem:[#allocation2 + $0x28] sm:$0xff] }
 0x2a3   : > { %v4392_v25 = vld [vmem:[#allocation2 + $0x28] sm:$0xff] }
 0x2a4   : > { %v1025_v2 = vpop.f32.mrf.mxu0 }
 0x2a5   : > { %v1026_v1 = vadd.f32 %v5744_v21, %v1025_v2 }
 0x2a7   : > { %v1046_v56 = vpack.c.bf16 %v1026_v1, %v1026_v1 }
 0x2a8   : > { %v1535_v35 = vpop.permute.xlu1 %1534 }
 0x2a9   : > { %1063 = vst.msk [vmem:[#allocation2 + $0x34] sm:$0xf] %vm1049_vm4, %v1046_v56  ;;  %3194 = vrot.lane.b32.xlu1 %v4391_v3, %s5175_s7  ;;  %1605 = vrot.lane.b32.xlu0 %v5909_v62, %s5177_s29 }
 0x2aa   : > { %2844 = vrot.lane.b32.xlu2 %v4382_v34, %s5179_s14  ;;  %v5932_v7 = vpop.permute.xlu0 %2413 }
 0x2b0   : > { %v5934_v11 = vld [vmem:[#allocation2 + $0x30] sm:$0xff]  ;;  %v2843_v31 = vpop.permute.xlu1 %2842 }
 0x2b1   : > { %3186 = vrot.lane.b32.xlu1 %v4391_v3, %s5176_s23  ;;  %1607 = vrot.lane.b32.xlu0 %v5934_v11, %s5177_s29  ;;  %v4377_v32 = vld [vmem:[#allocation2 + $0x30] sm:$0xff] }
 0x2b2   : > { %1822 = vrot.lane.b32.xlu2 %v4375_v52, %s5174_s28  ;;  %v5944_v12 = vpop.permute.xlu0 %3099  ;;  %v4393_v41 = vld [vmem:[#allocation2 + $0x30] sm:$0xff] }
 0x2b3   : > { %v4385_v36 = vld [vmem:[#allocation2 + $0x30] sm:$0xff] }
 0x2b9   : > { %1603 = vrot.lane.b32.xlu1 %v5900_v28, %s5177_s29 }
 0x2ba   : > { %1814 = vrot.lane.b32.xlu2 %v4375_v52, %s5170_s25  ;;  %v5955_v20 = vpop.permute.xlu0 %2840 }
 0x2c1   : > { %1824 = vrot.lane.b32.xlu1 %v4376_v13, %s5174_s28 }
 0x2c2   : > { %2508 = vrot.lane.b32.xlu2 %v4383_v40, %s5173_s16  ;;  %v1123_v15 = vpop.permute.xlu0 %1122 }
 0x2c3   : > { %v1146_v23 = vsel %vm1126_vm7, %v1123_v15, 0 }
 0x2c9   : > { %2502 = vrot.lane.b32.xlu1 %v5957_v14, %s5172_s27 }
 0x2ca   : > { %1816 = vrot.lane.b32.xlu2 %v4376_v13, %s5170_s25  ;;  %v5967_v29 = vpop.permute.xlu0 %1729 }
 0x2d1   : > { %3196 = vrot.lane.b32.xlu1 %v4392_v25, %s5175_s7 }
 0x2d2   : > { %2510 = vrot.lane.b32.xlu2 %v5957_v14, %s5173_s16  ;;  %v5972_v60 = vpop.permute.xlu0 %2423 }
 0x2d9   : > { %2227 = vrot.lane.b32.xlu1 %v4376_v13, %s5178_s0 }
 0x2da   : > { %3188 = vrot.lane.b32.xlu2 %v4392_v25, %s5176_s23  ;;  %v5980_v34 = vpop.permute.xlu0 %2415 }
 0x2dc   : > { %v1125_v30 = vpop.permute.xlu2 %1124 }
 0x2dd   : > { %v1149_v59 = vsel %vm1126_vm7, %v1125_v30, 0 }
 0x2de   : > { %1155 = vmatpush.bf16.xpose.msra.mxu2 %v1149_v59  ;;  %v3126_v59 = vsel %vm1126_vm7, %v5881_v53, 0 }
 0x2e1   : > { %1826 = vrot.lane.b32.xlu1 %v4377_v32, %s5174_s28 }
 0x2e2   : > { %1204 = vrot.lane.b32.xlu2 %v5934_v11, %s5171_s8  ;;  %v5992_v52 = vpop.permute.xlu0 %3109 }
 0x2e4   : > { %v2426_v9 = vpop.permute.xlu2 %2425 }
 0x2e6   : > { %1156 = vmatpush.bf16.xpose.msra.mxu2 %v1146_v23 }
 0x2e9   : > { %3190 = vrot.lane.b32.xlu1 %v4393_v41, %s5176_s23 }
 0x2ea   : > { %1818 = vrot.lane.b32.xlu2 %v4377_v32, %s5170_s25  ;;  %v2157_v51 = vpop.permute.xlu0 %2156 }
 0x2ec   : > { %v5982_v58 = vpop.permute.xlu2 %3111 }
 0x2ee   : > { %1157 = vmatpush.bf16.xpose.msra.mxu2 %v1143_v42 }
 0x2f1   : > { %2229 = vrot.lane.b32.xlu1 %v4377_v32, %s5178_s0 }
 0x2f2   : > { %2512 = vrot.lane.b32.xlu2 %v4385_v36, %s5173_s16 }
 0x2f3   : > { %v1740_v27 = vpop.permute.xlu1 %1739 }
 0x2f4   : > { %v5987_v45 = vpop.permute.xlu2 %3103  ;;  %v1763_v50 = vsel %vm1126_vm7, %v1740_v27, 0 }
 0x2f5   : > { %1769 = vmatpush.bf16.xpose.msra.mxu1 %v1763_v50 }
 0x2f6   : > { %1158 = vmatpush.bf16.xpose.msra.mxu2 %v1140_v38 }
 0x2f7   : > { %v1028_v8 = vpop.f32.mrf.mxu0 }
 0x2f8   : > { %v1029_v54 = vadd.f32 %v5744_v21, %v1028_v8 }
 0x2fa   : > { %2504 = vrot.lane.b32.xlu2 %v4385_v36, %s5172_s27  ;;  %v1047_v57 = vpack.c.bf16 %v1029_v54, %v1029_v54 }
 0x2fb   : > { %v5996_v26 = vpop.permute.xlu1 %1731 }
 0x2fc   : > { %v2159_v61 = vpop.permute.xlu2 %2158  ;;  %1064 = vst.msk [vmem:[#allocation2 + $0x38] sm:$0xf] %vm1049_vm4, %v1047_v57 }
 0x2fd   : > { %4127 = vmatmul.msk.bf16.vlgmr.msra.gmra.mxu2 %vm1126_vm7, %v5793_v18  ;;  %2180 = vmatpush.bf16.msrb.mxu0 %v2159_v61  ;;  %v1757_v18 = vsel %vm1126_vm7, %v5895_v19, 0  ;;  %v1754_v19 = vsel %vm1126_vm7, %v5911_v63, 0 }
 0x2fe   : > { %1770 = vmatpush.bf16.xpose.msra.mxu1 %v1760_v24 }
 0x2ff   : > { %v1030_v40 = vpop.f32.mrf.mxu0 }
 0x300   : > { %v1031_v2 = vadd.f32 %v5744_v21, %v1030_v40 }
 0x301   : > { %2181 = vmatpush.bf16.msrb.mxu0 %v2157_v51  ;;  %v6113_v51 = vld [vmem:[#allocation9 + $0x10] sm:$0xff] }
 0x302   : > { %3198 = vrot.lane.b32.xlu2 %v4393_v41, %s5175_s7  ;;  %v1048_v1 = vpack.c.bf16 %v1031_v2, %v1031_v2 }
 0x303   : > { %v1537_v56 = vpop.permute.xlu1 %1536 }
 0x304   : > { %1558 = vmatpush.bf16.msra.mxu3 %v1537_v56  ;;  %1065 = vst.msk [vmem:[#allocation2 + $0x3c] sm:$0xf] %vm1049_vm4, %v1048_v1  ;;  %v2845_v3 = vpop.permute.xlu2 %2844  ;;  %v6116_v56 = vld [vmem:[#allocation9 + $0x40] sm:$0xff]  ;;  %vm1317_vm4 = vcmask 523264  }
 0x305   : > { %2182 = vmatpush.bf16.msrb.mxu0 %v2155_v4  ;;  %v3129_v4 = vsel %vm1126_vm7, %v5940_v46, 0 }
 0x306   : > { %1771 = vmatpush.bf16.xpose.msra.mxu1 %v1757_v18  ;;  %v6119_v18 = vld [vmem:[%s5431_s24 + $0x10] sm:$0xff] }
 0x308   : > { %1559 = vmatpush.bf16.msra.mxu3 %v1535_v35 }
 0x309   : > { %2183 = vmatpush.bf16.msrb.mxu0 %v5887_v43  ;;  %v2449_v43 = vsel %vm1126_vm7, %v2426_v9, 0 }
 0x30a   : > { %2915 = vrot.lane.b32.xlu2 %v4385_v36, %s5179_s14 }
 0x30b   : > { %v6009_v21 = vpop.permute.xlu1 %1200  ;;  %v6012_v13 = vld [vmem:[#allocation2 + $0x38] sm:$0xff] }
 0x30c   : > { %1560 = vmatpush.bf16.msra.mxu3 %v5949_v49  ;;  %1609 = vrot.lane.b32.xlu1 %v6012_v13, %s5177_s29  ;;  %v4378_v49 = vld [vmem:[#allocation2 + $0x38] sm:$0xff]  ;;  %v6042_v47 = vpop.permute.xlu2 %1822  ;;  %s7845_s29 = sld [smem:[#allocation77_spill]] }
 0x30d   : > { %2866 = vmatpush.bf16.msra.mxu0 %v2845_v3  ;;  %4128 = vmatmul.msk.bf16.gmra.mxu2 %vm1126_vm7, %v5827_v48  ;;  %v4394_v63 = vld [vmem:[#allocation2 + $0x38] sm:$0xff] }
 0x30e   : > { %1772 = vmatpush.bf16.xpose.msra.mxu1 %v1754_v19  ;;  %1206 = vrot.lane.b32.xlu0 %v6012_v13, %s5171_s8  ;;  %v4386_v44 = vld [vmem:[#allocation2 + $0x38] sm:$0xff]  ;;  %s4354_s8 = sshll.u32 %s7843_s15, 5 }
 0x310   : > { %1561 = vmatpush.bf16.msra.mxu3 %v5928_v5  ;;  %v2446_v5 = vsel %vm1126_vm7, %v5972_v60, 0  ;;  %v2418_v60 = vpop.permute.xlu0 %2417 }
 0x311   : > { %2867 = vmatpush.bf16.msra.mxu0 %v2843_v31 }
 0x312   : > { %1828 = vrot.lane.b32.xlu2 %v4378_v49, %s5174_s28 }
 0x313   : > { %v6026_v48 = vpop.permute.xlu1 %2500 }
 0x314   : > { %3192 = vrot.lane.b32.xlu1 %v4394_v63, %s5176_s23  ;;  %v6053_v25 = vpop.permute.xlu2 %1814 }
 0x315   : > { %2868 = vmatpush.bf16.msra.mxu0 %v5955_v20  ;;  %4175 = vmatmul.msk.bf16.vlgmr.msra.gmra.mxu1 %vm1126_vm7, %v5918_v0  ;;  %v2443_v0 = vsel %vm1126_vm7, %v5920_v10, 0 }
 0x316   : > { %2455 = vmatpush.bf16.xpose.msrb.mxu1 %v2449_v43  ;;  %2514 = vrot.lane.b32.xlu0 %v4386_v44, %s5173_s16 }
 0x318   : > { %v6088_v53 = vpop.permute.xlu0 %2225 }
 0x319   : > { %2869 = vmatpush.bf16.msra.mxu0 %v5953_v16  ;;  %v2440_v16 = vsel %vm1126_vm7, %v5930_v6, 0  ;;  %7738 = vst [vmem:[#allocation30_spill] sm:$0xff] %v6088_v53 }
 0x31b   : > { %v6037_v20 = vpop.permute.xlu1 %3194 }
 0x31c   : > { %v6060_v6 = vpop.permute.xlu2 %2508 }
 0x31d   : > { %4129 = vmatmul.msk.bf16.gmra.mxu2 %vm1126_vm7, %v5840_v55  ;;  %v3135_v55 = vsel %vm1126_vm7, %v5982_v58, 0 }
 0x31e   : > { %2456 = vmatpush.bf16.xpose.msrb.mxu1 %v2446_v5  ;;  %1820 = vrot.lane.b32.xlu0 %v4378_v49, %s5170_s25  ;;  %v6131_v5 = vld [vmem:[#allocation9] sm:$0xff]  ;;  %s4405_s25 = sshll.u32 %s7842_s4, 4  ;;  %s5046_s4 = scalar_lea.hbm %s7845_s29, 512 }
 0x320   : > { %v1203_v41 = vpop.permute.xlu0 %1202 }
 0x321   : > { %v1224_v2 = vsel %vm1126_vm7, %v1203_v41, 0 }
 0x323   : > { %v6051_v15 = vpop.permute.xlu1 %3186 }
 0x325   : > { %4176 = vmatmul.msk.bf16.gmra.mxu1 %vm1126_vm7, %v5906_v33  ;;  %v3132_v33 = vsel %vm1126_vm7, %v5992_v52, 0 }
 0x326   : > { %2457 = vmatpush.bf16.xpose.msrb.mxu1 %v2443_v0  ;;  %3200 = vrot.lane.b32.xlu0 %v4394_v63, %s5175_s7 }
 0x328   : > { %v1606_v42 = vpop.permute.xlu0 %1605 }
 0x32b   : > { %v1604_v10 = vpop.permute.xlu1 %1603 }
 0x32d   : > { %4130 = vmatmul.msk.bf16.gmra.mxu2 %vm1126_vm7, %v5874_v17  ;;  %v6069_v17 = vpop.permute.xlu2 %1816 }
 0x32e   : > { %2458 = vmatpush.bf16.xpose.msrb.mxu1 %v2440_v16  ;;  %2506 = vrot.lane.b32.xlu0 %v4386_v44, %s5172_s27  ;;  %s3925_s27 = sadd.s32 %s4405_s25, %s4354_s8 }
 0x32f   : > { %s4355_s16 = sshll.u32 %s3925_s27, 3 }
 0x333   : > { %v6067_v30 = vpop.permute.xlu1 %1824 }
 0x335   : > { %4177 = vmatmul.msk.bf16.gmra.mxu1 %vm1126_vm7, %v5967_v29  ;;  %v6078_v32 = vpop.permute.xlu2 %2510 }
 0x336   : > { %3141 = vmatpush.bf16.xpose.msra.mxu1 %v3135_v55  ;;  %2231 = vrot.lane.b32.xlu0 %v4378_v49, %s5178_s0  ;;  %s3927_s0 = scalar_lea.hbm %s7845_s29, %s4355_s16 }
 0x33b   : > { %v6076_v29 = vpop.permute.xlu1 %2502 }
 0x33d   : > { %v6082_v46 = vpop.permute.xlu2 %3188 }
 0x33e   : > { %3142 = vmatpush.bf16.xpose.msra.mxu1 %v3132_v33  ;;  %2917 = vrot.lane.b32.xlu0 %v4386_v44, %s5179_s14  ;;  %v6129_v44 = vld [vmem:[%s5431_s24] sm:$0xff] }
 0x343   : > { %v6080_v35 = vpop.permute.xlu1 %3196 }
 0x345   : > { %4178 = vmatmul.msk.bf16.gmra.mxu1 %vm1126_vm7, %v5996_v26  ;;  %v1205_v23 = vpop.permute.xlu2 %1204 }
 0x346   : > { %3143 = vmatpush.bf16.xpose.msra.mxu1 %v3129_v4  ;;  %v1221_v4 = vsel %vm1126_vm7, %v6009_v21, 0 }
 0x34b   : > { %v6086_v9 = vpop.permute.xlu1 %2227 }
 0x34c   : > { %7737 = vst [vmem:[#allocation29_spill] sm:$0xff] %v6086_v9 }
 0x34d   : > { %v6094_v58 = vpop.permute.xlu2 %1818 }
 0x34e   : > { %3144 = vmatpush.bf16.xpose.msra.mxu1 %v3126_v59 }
 0x353   : > { %v6090_v31 = vpop.permute.xlu1 %1826 }
 0x355   : > { %4223 = vmatmul.msk.bf16.vlgmr.msrb.gmra.mxu1 %vm1126_vm7, %v5871_v39  ;;  %v6098_v27 = vpop.permute.xlu2 %2512  ;;  %v1608_v39 = vpop.permute.xlu0 %1607 }
 0x35b   : > { %v6096_v36 = vpop.permute.xlu1 %3190 }
 0x35d   : > { %v6104_v50 = vpop.permute.xlu2 %2504 }
 0x363   : > { %v6102_v38 = vpop.permute.xlu1 %2229 }
 0x364   : > { %7739 = vst [vmem:[#allocation31_spill] sm:$0xff] %v6102_v38 }
 0x365   : > { %4224 = vmatmul.msk.bf16.gmra.mxu1 %vm1126_vm7, %v5932_v7  ;;  %v6107_v57 = vpop.permute.xlu2 %3198 }
 0x36d   : > { %v6111_v61 = vpop.permute.xlu2 %2915 }
 0x36e   : > { %7740 = vst [vmem:[#allocation32_spill] sm:$0xff] %v6111_v61  ;;  %v6273_v61 = vld [vmem:[%s5431_s24 + $0x30] sm:$0xff] }
 0x375   : > { %4225 = vmatmul.msk.bf16.gmra.mxu1 %vm1126_vm7, %v5980_v34  ;;  %v1227_v34 = vsel %vm1126_vm7, %v1205_v23, 0  ;;  %v1829_v55 = vpop.permute.xlu2 %1828 }
 0x376   : > { %v1852_v23 = vsel %vm1126_vm7, %v1829_v55, 0 }
 0x37e   : > { %v1610_v8 = vpop.permute.xlu1 %1609 }
 0x37f   : > { %1631 = vmatpush.bf16.msrb.mxu3 %v1610_v8 }
 0x380   : > { %v1160_v52 = vpop.f32.mrf.mxu2  ;;  %v1207_v54 = vpop.permute.xlu0 %1206 }
 0x381   : > { %v1230_v7 = vsel %vm1126_vm7, %v1207_v54, 0  ;;  %v1261_v63 = vmul.f32 0.35355338, %v1160_v52  ;;  %v6148_v52 = vld [vmem:[%s5431_s24 + $0x8] sm:$0xff] }
 0x382   : > { %1236 = vmatpush.bf16.xpose.msrb.mxu2 %v1230_v7  ;;  %v6153_v54 = vld [vmem:[#allocation9 + $0x8] sm:$0xff] }
 0x383   : > { %1632 = vmatpush.bf16.msrb.mxu3 %v1608_v39 }
 0x385   : > { %4226 = vmatmul.msk.bf16.gmra.mxu1 %vm1126_vm7, %v2418_v60  ;;  %v6143_v60 = vld [vmem:[#allocation9 + $0x48] sm:$0xff] }
 0x387   : > { %1633 = vmatpush.bf16.msrb.mxu3 %v1606_v42 }
 0x388   : > { %v1162_v26 = vpop.f32.mrf.mxu2 }
 0x389   : > { %v1262_v39 = vmul.f32 0.35355338, %v1162_v26 }
 0x38a   : > { %1237 = vmatpush.bf16.xpose.msrb.mxu2 %v1227_v34 }
 0x38b   : > { %1634 = vmatpush.bf16.msrb.mxu3 %v1604_v10  ;;  %v1285_v10 = vadd.f32 %v6131_v5, %v1261_v63 }
 0x38d   : > { %v6151_v8 = vadd.f32 %v1285_v10, %v6129_v44 }
 0x390   : > { %v1165_v24 = vpop.f32.mrf.mxu2 }
 0x391   : > { %v1263_v40 = vmul.f32 0.35355338, %v1165_v24  ;;  %v1286_v24 = vadd.f32 %v6153_v54, %v1262_v39 }
 0x392   : > { %v1774_v1 = vpop.f32.mrf.mxu1  ;;  %1238 = vmatpush.bf16.xpose.msrb.mxu2 %v1224_v2  ;;  %v1318_v2 = vsel %vm1317_vm4, %v6151_v8, -inf }
 0x393   : > { %v1287_v3 = vadd.f32 %v6113_v51, %v1263_v40  ;;  %v1883_v19 = vmul.f32 0.35355338, %v1774_v1  ;;  %v6163_v40 = vld [vmem:[#allocation9 + $0x50] sm:$0xff]  ;;  %v6175_v63 = vadd.f32 %v1286_v24, %v6148_v52 }
 0x395   : > { %v1908_v43 = vadd.f32 %v6116_v56, %v1883_v19  ;;  %4271 = vmatmul.msk.bf16.vlgmr.msra.gmra.mxu1 %vm1126_vm7, %v5942_v22  ;;  %v6126_v49 = vadd.f32 %v1287_v3, %v6119_v18  ;;  %v1849_v3 = vsel %vm1126_vm7, %v6090_v31, 0 }
 0x397   : > { %v1324_v0 = vsel %vm1317_vm4, %v6126_v49, -inf  ;;  %v6136_v16 = vadd.f32 %v1908_v43, %v6129_v44 }
 0x398   : > { %1325 = vmax.xlane.f32.xlu2 %v1324_v0  ;;  %v1167_v33 = vpop.f32.mrf.mxu2 }
 0x399   : > { %v1940_v22 = vsel %vm1317_vm4, %v6136_v16, -inf  ;;  %v1264_v19 = vmul.f32 0.35355338, %v1167_v33 }
 0x39a   : > { %1941 = vmax.xlane.f32.xlu1 %v1940_v22  ;;  %v1776_v59 = vpop.f32.mrf.mxu1  ;;  %1239 = vmatpush.bf16.xpose.msrb.mxu2 %v1221_v4  ;;  %v6180_v22 = vld [vmem:[#allocation9 + $0x28] sm:$0xff] }
 0x39b   : > { %v1884_v41 = vmul.f32 0.35355338, %v1776_v59  ;;  %v1321_v59 = vsel %vm1317_vm4, %v6175_v63, -inf }
 0x39d   : > { %v1909_v42 = vadd.f32 %v6143_v60, %v1884_v41  ;;  %v6193_v41 = vld [vmem:[%s5431_s24 + $0x18] sm:$0xff] }
 0x39f   : > { %v6156_v21 = vadd.f32 %v1909_v42, %v6148_v52 }
 0x3a0   : > { %v1170_v7 = vpop.f32.mrf.mxu2 }
 0x3a1   : > { %v1943_v34 = vsel %vm1317_vm4, %v6156_v21, -inf  ;;  %4147 = vmatmul.msk.bf16.vlgmr.msrb.gmra.mxu2 %vm1126_vm7, %v5900_v28  ;;  %v6172_v28 = vld [vmem:[#allocation9 + $0x18] sm:$0xff] }
 0x3a2   : > { %1858 = vmatpush.bf16.xpose.msra.mxu2 %v1852_v23  ;;  %1944 = vmax.xlane.f32.xlu0 %v1943_v34  ;;  %v1779_v26 = vpop.f32.mrf.mxu1  ;;  %v1288_v31 = vadd.f32 %v6172_v28, %v1264_v19  ;;  %v6190_v23 = vld [vmem:[%s5431_s24 + $0x28] sm:$0xff]  ;;  %v1846_v34 = vsel %vm1126_vm7, %v6067_v30, 0 }
 0x3a3   : > { %v1885_v1 = vmul.f32 0.35355338, %v1779_v26  ;;  %1319 = vmax.xlane.f32.xlu1 %v1318_v2 }
 0x3a4   : > { %v6203_v2 = vadd.f32 %v1288_v31, %v6193_v41 }
 0x3a5   : > { %v1910_v43 = vadd.f32 %v6163_v40, %v1885_v1  ;;  %4272 = vmatmul.msk.bf16.gmra.mxu1 %vm1126_vm7, %v5944_v12  ;;  %v6185_v12 = vld [vmem:[#allocation9 + $0x58] sm:$0xff]  ;;  %v1265_v1 = vmul.f32 0.35355338, %v1170_v7 }
 0x3a6   : > { %v1327_v31 = vsel %vm1317_vm4, %v6203_v2, -inf }
 0x3a7   : > { %v6178_v0 = vadd.f32 %v1910_v43, %v6119_v18 }
 0x3a8   : > { %v1172_v55 = vpop.f32.mrf.mxu2 }
 0x3a9   : > { %v1266_v33 = vmul.f32 0.35355338, %v1172_v55  ;;  %v1946_v10 = vsel %vm1317_vm4, %v6178_v0, -inf  ;;  %v2515_v55 = vpop.permute.xlu0 %2514 }
 0x3aa   : > { %1859 = vmatpush.bf16.xpose.msra.mxu2 %v1849_v3  ;;  %1947 = vmax.xlane.f32.xlu0 %v1946_v10  ;;  %v1781_v4 = vpop.f32.mrf.mxu1  ;;  %v6205_v3 = vld [vmem:[#allocation9 + $0x20] sm:$0xff] }
 0x3ab   : > { %v1290_v42 = vadd.f32 %v6180_v22, %v1266_v33  ;;  %v1886_v39 = vmul.f32 0.35355338, %v1781_v4  ;;  %1322 = vmax.xlane.f32.xlu1 %v1321_v59  ;;  %v1289_v7 = vadd.f32 %v6205_v3, %v1265_v1  ;;  %v6219_v4 = vld [vmem:[#allocation9 + $0x60] sm:$0xff] }
 0x3ad   : > { %v1911_v24 = vadd.f32 %v6185_v12, %v1886_v39  ;;  %v6200_v26 = vadd.f32 %v1290_v42, %v6190_v23  ;;  %v1843_v42 = vsel %vm1126_vm7, %v6042_v47, 0  ;;  %v6224_v39 = vld [vmem:[%s5431_s24 + $0x20] sm:$0xff]  ;;  %v6236_v47 = vld [vmem:[#allocation9 + $0x38] sm:$0xff] }
 0x3af   : > { %v1333_v19 = vsel %vm1317_vm4, %v6200_v26, -inf  ;;  %v6210_v43 = vadd.f32 %v1911_v24, %v6193_v41 }
 0x3b0   : > { %1334 = vmax.xlane.f32.xlu2 %v1333_v19  ;;  %v1175_v30 = vpop.f32.mrf.mxu2 }
 0x3b1   : > { %v1949_v33 = vsel %vm1317_vm4, %v6210_v43, -inf  ;;  %4148 = vmatmul.msk.bf16.gmra.mxu2 %vm1126_vm7, %v5909_v62  ;;  %v6231_v62 = vadd.f32 %v1289_v7, %v6224_v39 }
 0x3b2   : > { %1860 = vmatpush.bf16.xpose.msra.mxu2 %v1846_v34  ;;  %1328 = vmax.xlane.f32.xlu0 %v1327_v31  ;;  %v1784_v10 = vpop.f32.mrf.mxu1  ;;  %v2538_v34 = vsel %vm1126_vm7, %v2515_v55, 0 }
 0x3b3   : > { %1950 = vmax.xlane.f32.xlu1 %v1949_v33  ;;  %v1887_v59 = vmul.f32 0.35355338, %v1784_v10  ;;  %v1330_v31 = vsel %vm1317_vm4, %v6231_v62, -inf }
 0x3b5   : > { %v1912_v24 = vadd.f32 %v6219_v4, %v1887_v59  ;;  %4273 = vmatmul.msk.bf16.gmra.mxu1 %vm1126_vm7, %v5965_v37  ;;  %v6242_v59 = vld [vmem:[#allocation9 + $0x68] sm:$0xff] }
 0x3b7   : > { %v6234_v1 = vadd.f32 %v1912_v24, %v6224_v39 }
 0x3b8   : > { %v1177_v19 = vpop.f32.mrf.mxu2 }
 0x3b9   : > { %v1268_v33 = vmul.f32 0.35355338, %v1177_v19  ;;  %v1952_v55 = vsel %vm1317_vm4, %v6234_v1, -inf }
 0x3ba   : > { %1861 = vmatpush.bf16.xpose.msra.mxu2 %v1843_v42  ;;  %1953 = vmax.xlane.f32.xlu0 %v1952_v55  ;;  %v1786_v10 = vpop.f32.mrf.mxu1  ;;  %v6246_v42 = vld [vmem:[%s5431_s24 + $0x38] sm:$0xff] }
 0x3bb   : > { %v1292_v37 = vadd.f32 %v6236_v47, %v1268_v33  ;;  %1331 = vmax.xlane.f32.xlu1 %v1330_v31  ;;  %v1888_v7 = vmul.f32 0.35355338, %v1786_v10  ;;  %v6263_v10 = vld [vmem:[#allocation9 + $0x70] sm:$0xff] }
 0x3bc   : > { %7741 = vst [vmem:[#allocation33_spill] sm:$0xff] %v6263_v10 }
 0x3bd   : > { %v1913_v24 = vadd.f32 %v6242_v59, %v1888_v7  ;;  %v6252_v19 = vadd.f32 %v1292_v37, %v6246_v42  ;;  %v2532_v7 = vsel %vm1126_vm7, %v6078_v32, 0 }
 0x3bf   : > { %v6255_v55 = vadd.f32 %v1913_v24, %v6190_v23  ;;  %v1339_v31 = vsel %vm1317_vm4, %v6252_v19, -inf }
 0x3c1   : > { %v1955_v33 = vsel %vm1317_vm4, %v6255_v55, -inf  ;;  %4149 = vmatmul.msk.bf16.gmra.mxu2 %vm1126_vm7, %v5934_v11  ;;  %v6270_v11 = vld [vmem:[#allocation9 + $0x30] sm:$0xff] }
 0x3c2   : > { %2544 = vmatpush.bf16.xpose.msrb.mxu2 %v2538_v34  ;;  %v2535_v34 = vsel %vm1126_vm7, %v6098_v27, 0  ;;  %1956 = vmax.xlane.f32.xlu0 %v1955_v33  ;;  %v1789_v27 = vpop.f32.mrf.mxu1 }
 0x3c3   : > { %1340 = vmax.xlane.f32.xlu1 %v1339_v31  ;;  %v1889_v37 = vmul.f32 0.35355338, %v1789_v27 }
 0x3c5   : > { %v1914_v24 = vadd.f32 %v6263_v10, %v1889_v37  ;;  %4274 = vmatmul.msk.bf16.gmra.mxu1 %vm1126_vm7, %v5987_v45  ;;  %v2529_v45 = vsel %vm1126_vm7, %v6060_v6, 0 }
 0x3c7   : > { %v6276_v33 = vadd.f32 %v1914_v24, %v6273_v61 }
 0x3c9   : > { %v1958_v27 = vsel %vm1317_vm4, %v6276_v33, -inf }
 0x3ca   : > { %2545 = vmatpush.bf16.xpose.msrb.mxu2 %v2535_v34  ;;  %v1267_v34 = vmul.f32 0.35355338, %v1175_v30  ;;  %1959 = vmax.xlane.f32.xlu0 %v1958_v27  ;;  %v1791_v32 = vpop.f32.mrf.mxu1  ;;  %v6281_v30 = vld [vmem:[#allocation9 + $0x78] sm:$0xff] }
 0x3cb   : > { %7742 = vst [vmem:[#allocation34_spill] sm:$0xff] %v6281_v30  ;;  %v1890_v37 = vmul.f32 0.35355338, %v1791_v32  ;;  %v6298_v32 = vld [vmem:[#allocation9 + $0x80] sm:$0xff] }
 0x3cc   : > { %v1291_v31 = vadd.f32 %v6270_v11, %v1267_v34  ;;  %7743 = vst [vmem:[#allocation35_spill] sm:$0xff] %v6298_v32 }
 0x3ce   : > { %v6287_v53 = vadd.f32 %v1291_v31, %v6273_v61  ;;  %v1821_v31 = vpop.permute.xlu0 %1820 }
 0x3d0   : > { %v1336_v34 = vsel %vm1317_vm4, %v6287_v53, -inf }
 0x3d1   : > { %4150 = vmatmul.msk.bf16.gmra.mxu2 %vm1126_vm7, %v6012_v13 }
 0x3d2   : > { %2546 = vmatpush.bf16.xpose.msrb.mxu2 %v2532_v7  ;;  %v1915_v7 = vadd.f32 %v6281_v30, %v1890_v37  ;;  %1337 = vmax.xlane.f32.xlu0 %v1336_v34  ;;  %v2460_v6 = vpop.f32.mrf.mxu1  ;;  %v6306_v30 = vld [vmem:[#allocation9 + $0x88] sm:$0xff] }
 0x3d3   : > { %v2569_v37 = vmul.f32 0.35355338, %v2460_v6 }
 0x3d4   : > { %v6290_v24 = vadd.f32 %v1915_v7, %v6246_v42 }
 0x3d6   : > { %v1961_v27 = vsel %vm1317_vm4, %v6290_v24, -inf  ;;  %v3201_v10 = vpop.permute.xlu0 %3200 }
 0x3d7   : > { %1962 = vmax.xlane.f32.xlu2 %v1961_v27 }
 0x3da   : > { %2547 = vmatpush.bf16.xpose.msrb.mxu2 %v2529_v45  ;;  %v2594_v45 = vadd.f32 %v6298_v32, %v2569_v37  ;;  %v2462_v38 = vpop.f32.mrf.mxu1  ;;  %v3224_v37 = vsel %vm1126_vm7, %v3201_v10, 0  ;;  %v3221_v10 = vsel %vm1126_vm7, %v6107_v57, 0 }
 0x3db   : > { %v2570_v13 = vmul.f32 0.35355338, %v2462_v38 }
 0x3dc   : > { %v6302_v7 = vadd.f32 %v2594_v45, %v6129_v44  ;;  %v6317_v45 = vld [vmem:[#allocation9 + $0x90] sm:$0xff] }
 0x3dd   : > { %v2595_v34 = vadd.f32 %v6306_v30, %v2570_v13  ;;  %7745 = vst [vmem:[#allocation37_spill] sm:$0xff] %v6317_v45 }
 0x3de   : > { %v2626_v9 = vsel %vm1317_vm4, %v6302_v7, -inf }
 0x3df   : > { %2627 = vmax.xlane.f32.xlu1 %v2626_v9  ;;  %v6310_v27 = vadd.f32 %v2595_v34, %v6148_v52 }
 0x3e1   : > { %7744 = vst [vmem:[#allocation36_spill] sm:$0xff] %v6310_v27  ;;  %v2629_v6 = vsel %vm1317_vm4, %v6310_v27, -inf  ;;  %4195 = vmatmul.msk.bf16.vlgmr.msra.gmra.mxu2 %vm1126_vm7, %v6053_v25  ;;  %v3218_v25 = vsel %vm1126_vm7, %v6080_v35, 0 }
 0x3e2   : > { %2630 = vmax.xlane.f32.xlu2 %v2629_v6  ;;  %v2465_v9 = vpop.f32.mrf.mxu1  ;;  %3230 = vmatpush.bf16.xpose.msra.mxu2 %v3224_v37  ;;  %v3215_v37 = vsel %vm1126_vm7, %v6037_v20, 0 }
 0x3e3   : > { %v2571_v38 = vmul.f32 0.35355338, %v2465_v9 }
 0x3e5   : > { %v2596_v13 = vadd.f32 %v6317_v45, %v2571_v38  ;;  %v6333_v38 = vld [vmem:[#allocation9 + $0xa8] sm:$0xff] }
 0x3e6   : > { %7747 = vst [vmem:[#allocation39_spill] sm:$0xff] %v6333_v38 }
 0x3e7   : > { %v6321_v32 = vadd.f32 %v2596_v13, %v6119_v18 }
 0x3e9   : > { %7746 = vst [vmem:[#allocation38_spill] sm:$0xff] %v6321_v32  ;;  %v2632_v34 = vsel %vm1317_vm4, %v6321_v32, -inf }
 0x3ea   : > { %2633 = vmax.xlane.f32.xlu2 %v2632_v34  ;;  %v2467_v27 = vpop.f32.mrf.mxu1  ;;  %3231 = vmatpush.bf16.xpose.msra.mxu2 %v3221_v10  ;;  %v6343_v10 = vpop.permute.xlu1 %3192 }
 0x3f1   : > { %4196 = vmatmul.msk.bf16.gmra.mxu2 %vm1126_vm7, %v6069_v17 }
 0x3f2   : > { %v2470_v6 = vpop.f32.mrf.mxu1  ;;  %3232 = vmatpush.bf16.xpose.msra.mxu2 %v3218_v25  ;;  %v6345_v25 = vld [vmem:[#allocation9 + $0xb8] sm:$0xff] }
 0x3f3   : > { %7749 = vst [vmem:[#allocation41_spill] sm:$0xff] %v6345_v25 }
 0x3fa   : > { %v2472_v9 = vpop.f32.mrf.mxu1  ;;  %3233 = vmatpush.bf16.xpose.msra.mxu2 %v3215_v37 }
 0x3fb   : > { %v2574_v13 = vmul.f32 0.35355338, %v2472_v9 }
 0x3fd   : > { %v2599_v57 = vadd.f32 %v6333_v38, %v2574_v13 }
 0x3ff   : > { %v6337_v34 = vadd.f32 %v2599_v57, %v6190_v23 }
 0x401   : > { %7748 = vst [vmem:[#allocation40_spill] sm:$0xff] %v6337_v34  ;;  %v2641_v17 = vsel %vm1317_vm4, %v6337_v34, -inf  ;;  %4197 = vmatmul.msk.bf16.gmra.mxu2 %vm1126_vm7, %v6094_v58  ;;  %v6442_v34 = vld [vmem:[%s5431_s24 + $0x68] sm:$0xff] }
 0x402   : > { %2642 = vmax.xlane.f32.xlu2 %v2641_v17  ;;  %v2475_v35 = vpop.f32.mrf.mxu1 }
 0x40a   : > { %v2477_v20 = vpop.f32.mrf.mxu1 }
 0x40b   : > { %v2576_v37 = vmul.f32 0.35355338, %v2477_v20 }
 0x40d   : > { %v2601_v9 = vadd.f32 %v6345_v25, %v2576_v37  ;;  %v1942_v13 = vpop.xlane.xlu1 %1941  ;;  %v2575_v25 = vmul.f32 0.35355338, %v2475_v35 }
 0x40e   : > { %v1988_v57 = vsub.f32 %v6136_v16, %v1942_v13 }
 0x40f   : > { %v6350_v45 = vadd.f32 %v2601_v9, %v6246_v42  ;;  %v6362_v9 = vld [vmem:[%s5431_s24 + $0x40] sm:$0xff] }
 0x410   : > { %v2004_v38 = vmul.f32 1.442695, %v1988_v57 }
 0x411   : > { %7750 = vst [vmem:[#allocation42_spill] sm:$0xff] %v6350_v45  ;;  %v2647_v58 = vsel %vm1317_vm4, %v6350_v45, -inf  ;;  %4198 = vmatmul.msk.bf16.gmra.mxu2 %vm1126_vm7, %v1821_v31  ;;  %v2572_v45 = vmul.f32 0.35355338, %v2467_v27 }
 0x412   : > { %4602 = vpow2.f32 %v2004_v38  ;;  %2648 = vmax.xlane.f32.xlu2 %v2647_v58 }
 0x418   : > { %v6355_v17 = vpop.eup %4602 }
 0x419   : > { %7751 = vst [vmem:[#allocation43_spill] sm:$0xff] %v6355_v17  ;;  %v2036_v20 = vsel %vm1317_vm4, %v6355_v17, 0.0  ;;  %v2507_v17 = vpop.permute.xlu0 %2506 }
 0x41a   : > { %2037 = vadd.xlane.f32.xlu2 %v2036_v20  ;;  %v6371_v20 = vld [vmem:[%s5431_s24 + $0x48] sm:$0xff] }
 0x421   : > { %4243 = vmatmul.msk.bf16.vlgmr.msrb.gmra.mxu2 %vm1126_vm7, %v6026_v48 }
 0x424   : > { %v1241_v16 = vpop.f32.mrf.mxu2 }
 0x425   : > { %v1269_v37 = vmul.f32 0.35355338, %v1241_v16  ;;  %v6374_v16 = vld [vmem:[#allocation9 + $0x98] sm:$0xff] }
 0x427   : > { %v1293_v13 = vadd.f32 %v6131_v5, %v1269_v37  ;;  %v2597_v37 = vadd.f32 %v6374_v16, %v2572_v45 }
 0x429   : > { %v6366_v38 = vadd.f32 %v1293_v13, %v6362_v9 }
 0x42b   : > { %v1342_v31 = vsel %vm1317_vm4, %v6366_v38, -inf }
 0x42c   : > { %1343 = vmax.xlane.f32.xlu0 %v1342_v31  ;;  %v1243_v57 = vpop.f32.mrf.mxu2 }
 0x42d   : > { %v1270_v58 = vmul.f32 0.35355338, %v1243_v57  ;;  %v2573_v57 = vmul.f32 0.35355338, %v2470_v6 }
 0x42f   : > { %v1294_v48 = vadd.f32 %v6153_v54, %v1270_v58  ;;  %v6387_v54 = vld [vmem:[%s5431_s24 + $0x50] sm:$0xff]  ;;  %v6391_v58 = vadd.f32 %v2597_v37, %v6193_v41 }
 0x431   : > { %4244 = vmatmul.msk.bf16.gmra.mxu2 %vm1126_vm7, %v6076_v29  ;;  %v6381_v5 = vadd.f32 %v1294_v48, %v6371_v20  ;;  %7752 = vst [vmem:[#allocation44_spill] sm:$0xff] %v6391_v58  ;;  %v4858_v48 = vld [vmem:[#allocation2 + $0x10] sm:$0xff] }
 0x432   : > { %2913 = vrot.lane.b32.xlu2 %v5957_v14, %s5179_s14  ;;  %v6393_v14 = vld [vmem:[#allocation9 + $0xa0] sm:$0xff] }
 0x433   : > { %v1345_v13 = vsel %vm1317_vm4, %v6381_v5, -inf  ;;  %7753 = vst [vmem:[#allocation45_spill] sm:$0xff] %v6393_v14 }
 0x434   : > { %1346 = vmax.xlane.f32.xlu1 %v1345_v13  ;;  %v1246_v27 = vpop.f32.mrf.mxu2  ;;  %v2598_v13 = vadd.f32 %v6393_v14, %v2573_v57  ;;  %v6411_v57 = vld [vmem:[#allocation9 + $0xb0] sm:$0xff] }
 0x435   : > { %v1271_v31 = vmul.f32 0.35355338, %v1246_v27  ;;  %v2635_v27 = vsel %vm1317_vm4, %v6391_v58, -inf }
 0x437   : > { %v1295_v29 = vadd.f32 %v6113_v51, %v1271_v31  ;;  %v6405_v31 = vld [vmem:[%s5431_s24 + $0x58] sm:$0xff] }
 0x439   : > { %v6397_v45 = vadd.f32 %v1295_v29, %v6387_v54  ;;  %v6409_v29 = vadd.f32 %v2598_v13, %v6224_v39 }
 0x43a   : > { %3528 = vrot.lane.b32.xlu2 %v4858_v48, %s5180_s18 }
 0x43b   : > { %7754 = vst [vmem:[#allocation46_spill] sm:$0xff] %v6397_v45  ;;  %v1348_v51 = vsel %vm1317_vm4, %v6397_v45, -inf }
 0x43c   : > { %2636 = vmax.xlane.f32.xlu1 %v2635_v27  ;;  %1349 = vmax.xlane.f32.xlu0 %v1348_v51  ;;  %v1248_v6 = vpop.f32.mrf.mxu2  ;;  %7755 = vst [vmem:[#allocation47_spill] sm:$0xff] %v6409_v29  ;;  %v2600_v27 = vadd.f32 %v6411_v57, %v2575_v25  ;;  %v2638_v51 = vsel %vm1317_vm4, %v6409_v29, -inf  ;;  %v6430_v29 = vld [vmem:[#allocation9 + $0xc0] sm:$0xff] }
 0x43d   : > { %v1272_v37 = vmul.f32 0.35355338, %v1248_v6  ;;  %7757 = vst [vmem:[#allocation49_spill] sm:$0xff] %v6430_v29 }
 0x43e   : > { %v6428_v25 = vadd.f32 %v2600_v27, %v6273_v61 }
 0x43f   : > { %v1296_v48 = vadd.f32 %v6172_v28, %v1272_v37  ;;  %v3146_v28 = vpop.f32.mrf.mxu1  ;;  %v6424_v37 = vld [vmem:[%s5431_s24 + $0x60] sm:$0xff] }
 0x440   : > { %7756 = vst [vmem:[#allocation48_spill] sm:$0xff] %v6428_v25 }
 0x441   : > { %4245 = vmatmul.msk.bf16.gmra.mxu2 %vm1126_vm7, %v6104_v50  ;;  %v6416_v14 = vadd.f32 %v1296_v48, %v6405_v31  ;;  %v3255_v50 = vmul.f32 0.35355338, %v3146_v28  ;;  %v1320_v48 = vpop.xlane.xlu1 %1319 }
 0x443   : > { %v1351_v35 = vsel %vm1317_vm4, %v6416_v14, -inf }
 0x444   : > { %2639 = vmax.xlane.f32.xlu1 %v2638_v51  ;;  %1352 = vmax.xlane.f32.xlu0 %v1351_v35  ;;  %v1251_v13 = vpop.f32.mrf.mxu2  ;;  %v1366_v51 = vsub.f32 %v6151_v8, %v1320_v48  ;;  %v3280_v35 = vadd.f32 %v6430_v29, %v3255_v50  ;;  %v6448_v50 = vpop.permute.xlu0 %2231 }
 0x445   : > { %v1273_v6 = vmul.f32 0.35355338, %v1251_v13  ;;  %v2644_v13 = vsel %vm1317_vm4, %v6428_v25, -inf  ;;  %7759 = vst [vmem:[#allocation51_spill] sm:$0xff] %v6448_v50 }
 0x446   : > { %v6446_v8 = vadd.f32 %v3280_v35, %v6129_v44  ;;  %v6459_v35 = vld [vmem:[%s5431_s24 + $0x70] sm:$0xff] }
 0x447   : > { %v1297_v58 = vadd.f32 %v6205_v3, %v1273_v6  ;;  %v1382_v6 = vmul.f32 1.442695, %v1366_v51 }
 0x449   : > { %v6433_v45 = vadd.f32 %v1297_v58, %v6424_v37  ;;  %4604 = vpow2.f32 %v1382_v6 }
 0x44b   : > { %7758 = vst [vmem:[#allocation50_spill] sm:$0xff] %v6433_v45  ;;  %v1354_v28 = vsel %vm1317_vm4, %v6433_v45, -inf  ;;  %v1323_v45 = vpop.xlane.xlu1 %1322 }
 0x44c   : > { %2645 = vmax.xlane.f32.xlu1 %v2644_v13  ;;  %1355 = vmax.xlane.f32.xlu0 %v1354_v28  ;;  %v1253_v3 = vpop.f32.mrf.mxu2  ;;  %v3312_v13 = vsel %vm1317_vm4, %v6446_v8, -inf }
 0x44d   : > { %v1274_v27 = vmul.f32 0.35355338, %v1253_v3 }
 0x44f   : > { %v1298_v58 = vadd.f32 %v6180_v22, %v1274_v27  ;;  %v6467_v27 = vpop.permute.xlu0 %2917 }
 0x450   : > { %7762 = vst [vmem:[#allocation54_spill] sm:$0xff] %v6467_v27 }
 0x451   : > { %4246 = vmatmul.msk.bf16.gmra.mxu2 %vm1126_vm7, %v2507_v17  ;;  %v6452_v48 = vadd.f32 %v1298_v58, %v6442_v34  ;;  %v6462_v17 = vpop.eup %4604 }
 0x452   : > { %7760 = vst [vmem:[#allocation52_spill] sm:$0xff] %v6462_v17  ;;  %v1414_v6 = vsel %vm1317_vm4, %v6462_v17, 0.0 }
 0x453   : > { %v1357_v51 = vsel %vm1317_vm4, %v6452_v48, -inf }
 0x454   : > { %3313 = vmax.xlane.f32.xlu1 %v3312_v13  ;;  %1358 = vmax.xlane.f32.xlu0 %v1357_v51  ;;  %v1256_v22 = vpop.f32.mrf.mxu2 }
 0x455   : > { %v1275_v44 = vmul.f32 0.35355338, %v1256_v22  ;;  %v6474_v22 = vld [vmem:[%s5431_s24 + $0x78] sm:$0xff] }
 0x457   : > { %v1299_v28 = vadd.f32 %v6270_v11, %v1275_v44 }
 0x459   : > { %v6465_v3 = vadd.f32 %v1299_v28, %v6459_v35  ;;  %v6482_v28 = vpop.xlane.xlu0 %1944 }
 0x45b   : > { %7761 = vst [vmem:[#allocation53_spill] sm:$0xff] %v6465_v3  ;;  %v1360_v58 = vsel %vm1317_vm4, %v6465_v3, -inf  ;;  %v3148_v3 = vpop.f32.mrf.mxu1 }
 0x45c   : > { %1415 = vadd.xlane.f32.xlu1 %v1414_v6  ;;  %1361 = vmax.xlane.f32.xlu0 %v1360_v58  ;;  %v1258_v13 = vpop.f32.mrf.mxu2 }
 0x45d   : > { %v1276_v51 = vmul.f32 0.35355338, %v1258_v13  ;;  %v3256_v13 = vmul.f32 0.35355338, %v3148_v3 }
 0x45f   : > { %v1300_v11 = vadd.f32 %v6236_v47, %v1276_v51  ;;  %v3273_v47 = vld [vmem:[#allocation9 + $0xc8] sm:$0xff] }
 0x461   : > { %4291 = vmatmul.msk.bf16.vlgmr.msra.gmra.mxu2 %vm1126_vm7, %v6051_v15  ;;  %v6480_v44 = vadd.f32 %v1300_v11, %v6474_v22  ;;  %v1367_v15 = vsub.f32 %v6175_v63, %v1323_v45  ;;  %v3281_v11 = vadd.f32 %v3273_v47, %v3256_v13  ;;  %v1948_v29 = vpop.xlane.xlu0 %1947  ;;  %v1326_v13 = vpop.xlane.xlu2 %1325 }
 0x463   : > { %7763 = vst [vmem:[#allocation55_spill] sm:$0xff] %v6480_v44  ;;  %v1363_v27 = vsel %vm1317_vm4, %v6480_v44, -inf  ;;  %v6496_v3 = vadd.f32 %v3281_v11, %v6148_v52  ;;  %v6515_v11 = vld [vmem:[#allocation9 + $0xd0] sm:$0xff] }
 0x464   : > { %v1863_v6 = vpop.f32.mrf.mxu2  ;;  %1364 = vmax.xlane.f32.xlu0 %v1363_v27  ;;  %v1384_v27 = vmul.f32 1.442695, %v1367_v15  ;;  %7767 = vst [vmem:[#allocation59_spill] sm:$0xff] %v6515_v11 }
 0x465   : > { %v1891_v58 = vmul.f32 0.35355338, %v1863_v6  ;;  %7764 = vst [vmem:[#allocation56_spill] sm:$0xff] %v6496_v3  ;;  %v3315_v63 = vsel %vm1317_vm4, %v6496_v3, -inf }
 0x466   : > { %4606 = vpow2.f32 %v1384_v27  ;;  %v4861_v27 = vld [vmem:[#allocation2 + $0x8] sm:$0xff] }
 0x467   : > { %v1916_v50 = vadd.f32 %v6116_v56, %v1891_v58  ;;  %v1990_v56 = vsub.f32 %v6178_v0, %v1948_v29  ;;  %v4860_v58 = vld [vmem:[#allocation2 + $0x20] sm:$0xff]  ;;  %v3151_v0 = vpop.f32.mrf.mxu1 }
 0x468   : > { %v3257_v47 = vmul.f32 0.35355338, %v3151_v0  ;;  %v1951_v0 = vpop.xlane.xlu1 %1950 }
 0x469   : > { %v6488_v51 = vadd.f32 %v1916_v50, %v6362_v9  ;;  %v2008_v50 = vmul.f32 1.442695, %v1990_v56  ;;  %v6506_v6 = vpop.xlane.xlu0 %1328 }
 0x46b   : > { %v1964_v25 = vsel %vm1317_vm4, %v6488_v51, -inf  ;;  %4608 = vpow2.f32 %v2008_v50 }
 0x46c   : > { %1965 = vmax.xlane.f32.xlu2 %v1964_v25  ;;  %v6493_v44 = vpop.f32.mrf.mxu2  ;;  %v4859_v25 = vld [vmem:[#allocation2 + $0x18] sm:$0xff]  ;;  %v6508_v52 = vpop.eup %4606 }
 0x46d   : > { %7765 = vst [vmem:[#allocation57_spill] sm:$0xff] %v6508_v52 }
 0x471   : > { %4292 = vmatmul.msk.bf16.gmra.mxu2 %vm1126_vm7, %v6082_v46  ;;  %v1417_v46 = vsel %vm1317_vm4, %v6508_v52, 0.0  ;;  %v6513_v15 = vpop.eup %4608  ;;  %v1954_v56 = vpop.xlane.xlu0 %1953 }
 0x472   : > { %7766 = vst [vmem:[#allocation58_spill] sm:$0xff] %v6513_v15  ;;  %v2042_v50 = vsel %vm1317_vm4, %v6513_v15, 0.0  ;;  %v6530_v52 = vpop.f32.mrf.mxu1 }
 0x473   : > { %v3258_v32 = vmul.f32 0.35355338, %v6530_v52 }
 0x474   : > { %3316 = vmax.xlane.f32.xlu2 %v3315_v63  ;;  %v6503_v45 = vpop.f32.mrf.mxu2  ;;  %v1368_v63 = vsub.f32 %v6126_v49, %v1326_v13 }
 0x475   : > { %3530 = vrot.lane.b32.xlu1 %v4859_v25, %s5180_s18  ;;  %v3282_v25 = vadd.f32 %v6515_v11, %v3257_v47  ;;  %v1989_v47 = vsub.f32 %v6156_v21, %v6482_v28 }
 0x477   : > { %v6527_v3 = vadd.f32 %v3282_v25, %v6119_v18  ;;  %v2006_v18 = vmul.f32 1.442695, %v1989_v47  ;;  %v6551_v47 = vpop.xlane.xlu1 %1331 }
 0x478   : > { %2911 = vrot.lane.b32.xlu0 %v4860_v58, %s5179_s14  ;;  %s3928_s14 = sshll.u32 %s7499_s5, 4  ;;  %s3929_s14 = int_to_ptr.vmem [resolvable:$true] %s3928_s14 }
 0x479   : > { %7768 = vst [vmem:[#allocation60_spill] sm:$0xff] %v6527_v3  ;;  %v3318_v49 = vsel %vm1317_vm4, %v6527_v3, -inf }
 0x47a   : > { %v3156_v25 = vpop.f32.mrf.mxu1 }
 0x47c   : > { %1418 = vadd.xlane.f32.xlu2 %v1417_v46  ;;  %v1870_v29 = vpop.f32.mrf.mxu2  ;;  %v1386_v46 = vmul.f32 1.442695, %v1368_v63  ;;  %v6536_v63 = vpop.xlane.xlu2 %1334 }
 0x47e   : > { %4610 = vpow2.f32 %v1386_v46 }
 0x480   : > { %3526 = vrot.lane.b32.xlu0 %v4861_v27, %s5180_s18  ;;  %v1991_v27 = vsub.f32 %v6210_v43, %v1951_v0 }
 0x481   : > { %4293 = vmatmul.msk.bf16.gmra.mxu2 %vm1126_vm7, %v6096_v36  ;;  %v1957_v36 = vpop.xlane.xlu0 %1956 }
 0x482   : > { %v1993_v21 = vsub.f32 %v6255_v55, %v1957_v36  ;;  %v1892_v55 = vmul.f32 0.35355338, %v6493_v44  ;;  %v3158_v36 = vpop.f32.mrf.mxu1 }
 0x484   : > { %v6524_v58 = vpop.f32.mrf.mxu2  ;;  %2043 = vadd.xlane.f32.xlu2 %v2042_v50  ;;  %v2010_v50 = vmul.f32 1.442695, %v1991_v27  ;;  %v6538_v11 = vpop.eup %4610  ;;  %v1894_v27 = vmul.f32 0.35355338, %v1870_v29 }
 0x485   : > { %7769 = vst [vmem:[#allocation61_spill] sm:$0xff] %v6538_v11  ;;  %v1420_v43 = vsel %vm1317_vm4, %v6538_v11, 0.0  ;;  %v1963_v0 = vpop.xlane.xlu2 %1962 }
 0x486   : > { %4612 = vpow2.f32 %v2010_v50  ;;  %v1992_v50 = vsub.f32 %v6234_v1, %v1954_v56  ;;  %v1919_v11 = vadd.f32 %v6185_v12, %v1894_v27  ;;  %v1917_v56 = vadd.f32 %v6143_v60, %v1892_v55  ;;  %v6572_v27 = vpop.xlane.xlu1 %1340 }
 0x487   : > { %4614 = vpow2.f32 %v2006_v18 }
 0x488   : > { %v2012_v29 = vmul.f32 1.442695, %v1992_v50  ;;  %v6569_v12 = vadd.f32 %v1919_v11, %v6405_v31  ;;  %v6576_v50 = vld [vmem:[#allocation9 + $0xe8] sm:$0xff]  ;;  %v6584_v11 = vadd.f32 %v1917_v56, %v6371_v20 }
 0x489   : > { %v6547_v28 = vpop.xlane.xlu0 %1959  ;;  %7774 = vst [vmem:[#allocation66_spill] sm:$0xff] %v6576_v50 }
 0x48a   : > { %7772 = vst [vmem:[#allocation64_spill] sm:$0xff] %v6569_v12  ;;  %v1967_v56 = vsel %vm1317_vm4, %v6584_v11, -inf }
 0x48b   : > { %7775 = vst [vmem:[#allocation67_spill] sm:$0xff] %v6584_v11 }
 0x48c   : > { %v1875_v13 = vpop.f32.mrf.mxu2  ;;  %3319 = vmax.xlane.f32.xlu2 %v3318_v49  ;;  %v6549_v49 = vpop.eup %4612 }
 0x48d   : > { %7770 = vst [vmem:[#allocation62_spill] sm:$0xff] %v6549_v49  ;;  %v6554_v15 = vpop.eup %4614  ;;  %v2045_v18 = vsel %vm1317_vm4, %v6549_v49, 0.0  ;;  %v6566_v1 = vpop.xlane.xlu2 %2630 }
 0x48e   : > { %7771 = vst [vmem:[#allocation63_spill] sm:$0xff] %v6554_v15 }
 0x491   : > { %4294 = vmatmul.msk.bf16.gmra.mxu2 %vm1126_vm7, %v6343_v10  ;;  %v2014_v10 = vmul.f32 1.442695, %v1993_v21  ;;  %v2039_v21 = vsel %vm1317_vm4, %v6554_v15, 0.0  ;;  %v6564_v3 = vpop.xlane.xlu0 %1337 }
 0x493   : > { %4616 = vpow2.f32 %v2014_v10  ;;  %v3260_v10 = vmul.f32 0.35355338, %v3158_v36 }
 0x494   : > { %v6544_v46 = vpop.f32.mrf.mxu2  ;;  %1421 = vadd.xlane.f32.xlu2 %v1420_v43  ;;  %4618 = vpow2.f32 %v2012_v29  ;;  %v3259_v29 = vmul.f32 0.35355338, %v3156_v25 }
 0x495   : > { %v3285_v60 = vadd.f32 %v6576_v50, %v3260_v10  ;;  %v6595_v17 = vpop.xlane.xlu2 %2633  ;;  %v1896_v10 = vmul.f32 0.35355338, %v1875_v13  ;;  %v3275_v13 = vld [vmem:[#allocation9 + $0xd8] sm:$0xff] }
 0x496   : > { %v3283_v52 = vadd.f32 %v3275_v13, %v3258_v32 }
 0x497   : > { %v6603_v25 = vadd.f32 %v3285_v60, %v6190_v23  ;;  %v1895_v60 = vmul.f32 0.35355338, %v6524_v58 }
 0x499   : > { %v6574_v44 = vpop.eup %4616  ;;  %v3327_v23 = vsel %vm1317_vm4, %v6603_v25, -inf }
 0x49a   : > { %7773 = vst [vmem:[#allocation65_spill] sm:$0xff] %v6574_v44  ;;  %v2051_v55 = vsel %vm1317_vm4, %v6574_v44, 0.0  ;;  %v6591_v15 = vpop.eup %4618 }
 0x49b   : > { %v2048_v50 = vsel %vm1317_vm4, %v6591_v15, 0.0 }
 0x49c   : > { %v6559_v43 = vpop.f32.mrf.mxu2  ;;  %2046 = vadd.xlane.f32.xlu2 %v2045_v18  ;;  %v1973_v18 = vsel %vm1317_vm4, %v6569_v12, -inf  ;;  %v6593_v12 = vld [vmem:[#allocation9 + $0xe0] sm:$0xff] }
 0x49f   : > { %2040 = vadd.xlane.f32.xlu1 %v2039_v21  ;;  %v1893_v21 = vmul.f32 0.35355338, %v6503_v45  ;;  %v6589_v36 = vpop.xlane.xlu0 %1343 }
 0x4a1   : > { %v1918_v45 = vadd.f32 %v6163_v40, %v1893_v21  ;;  %v3161_v40 = vpop.f32.mrf.mxu1  ;;  %v1995_v21 = vsub.f32 %v6290_v24, %v1963_v0  ;;  %v1369_v24 = vsub.f32 %v6203_v2, %v6506_v6 }
 0x4a3   : > { %v6611_v11 = vadd.f32 %v1918_v45, %v6387_v54  ;;  %v2018_v0 = vmul.f32 1.442695, %v1995_v21  ;;  %v6624_v45 = vpop.xlane.xlu2 %2642  ;;  %v1388_v32 = vmul.f32 1.442695, %v1369_v24 }
 0x4a4   : > { %v6580_v49 = vpop.f32.mrf.mxu2  ;;  %1974 = vmax.xlane.f32.xlu2 %v1973_v18  ;;  %v6600_v18 = vpop.xlane.xlu1 %2627 }
 0x4a5   : > { %4620 = vpow2.f32 %v2018_v0  ;;  %v6658_v0 = vld [vmem:[#allocation9 + $0xf8] sm:$0xff] }
 0x4a6   : > { %4622 = vpow2.f32 %v1388_v32  ;;  %7778 = vst [vmem:[#allocation70_spill] sm:$0xff] %v6658_v0 }
 0x4a7   : > { %2052 = vadd.xlane.f32.xlu1 %v2051_v55  ;;  %v3284_v55 = vadd.f32 %v6593_v12, %v3259_v29 }
 0x4a9   : > { %v3163_v21 = vpop.f32.mrf.mxu1 }
 0x4aa   : > { %1968 = vmax.xlane.f32.xlu0 %v1967_v56  ;;  %v1921_v56 = vadd.f32 %v6242_v59, %v1896_v10  ;;  %v1970_v59 = vsel %vm1317_vm4, %v6611_v11, -inf  ;;  %v1371_v10 = vsub.f32 %v6200_v26, %v6536_v63  ;;  %v3262_v24 = vmul.f32 0.35355338, %v3163_v21 }
 0x4ab   : > { %v1994_v21 = vsub.f32 %v6276_v33, %v6547_v28 }
 0x4ac   : > { %v2551_v44 = vpop.f32.mrf.mxu2  ;;  %2049 = vadd.xlane.f32.xlu2 %v2048_v50  ;;  %v6620_v50 = vadd.f32 %v3284_v55, %v6224_v39  ;;  %v6630_v58 = vpop.xlane.xlu1 %1346  ;;  %v1920_v39 = vadd.f32 %v6219_v4, %v1895_v60  ;;  %v6641_v55 = vadd.f32 %v3283_v52, %v6193_v41  ;;  %v1392_v26 = vmul.f32 1.442695, %v1371_v10 }
 0x4ad   : > { %v6652_v60 = vpop.xlane.xlu2 %2648  ;;  %v6656_v52 = vpop.eup %4620  ;;  %v2016_v33 = vmul.f32 1.442695, %v1994_v21  ;;  %v1372_v21 = vsub.f32 %v6287_v53, %v6564_v3 }
 0x4ae   : > { %v3324_v2 = vsel %vm1317_vm4, %v6620_v50, -inf  ;;  %v6648_v4 = vadd.f32 %v1920_v39, %v6424_v37  ;;  %v3321_v41 = vsel %vm1317_vm4, %v6641_v55, -inf  ;;  %4624 = vpow2.f32 %v1392_v26  ;;  %7777 = vst [vmem:[#allocation69_spill] sm:$0xff] %v6656_v52 }
 0x4af   : > { %3328 = vmax.xlane.f32.xlu1 %v3327_v23  ;;  %v6617_v29 = vpop.xlane.xlu0 %1349  ;;  %v6633_v23 = vadd.f32 %v1921_v56, %v6442_v34  ;;  %v1370_v56 = vsub.f32 %v6231_v62, %v6551_v47  ;;  %v6664_v62 = vpop.eup %4622  ;;  %v3287_v47 = vadd.f32 %v6658_v0, %v3262_v24  ;;  %v2057_v32 = vsel %vm1317_vm4, %v6656_v52, 0.0 }
 0x4b0   : > { %7776 = vst [vmem:[#allocation68_spill] sm:$0xff] %v6648_v4  ;;  %v3261_v26 = vmul.f32 0.35355338, %v3161_v40 }
 0x4b1   : > { %v1979_v63 = vsel %vm1317_vm4, %v6633_v23, -inf  ;;  %v1390_v10 = vmul.f32 1.442695, %v1370_v56  ;;  %v6673_v56 = vld [vmem:[#allocation9 + $0xf0] sm:$0xff]  ;;  %v6680_v24 = vadd.f32 %v3287_v47, %v6246_v42  ;;  %v1897_v47 = vmul.f32 0.35355338, %v6544_v46 }
 0x4b2   : > { %1971 = vmax.xlane.f32.xlu0 %v1970_v59  ;;  %v1976_v59 = vsel %vm1317_vm4, %v6648_v4, -inf  ;;  %v2578_v4 = vmul.f32 0.35355338, %v2551_v44  ;;  %v3286_v40 = vadd.f32 %v6673_v56, %v3261_v26  ;;  %v7780_v46 = vld [vmem:[#allocation33_spill] sm:$0xff] }
 0x4b3   : > { %4626 = vpow2.f32 %v1390_v10  ;;  %7779 = vst [vmem:[#allocation71_spill] sm:$0xff] %v6680_v24  ;;  %v3333_v42 = vsel %vm1317_vm4, %v6680_v24, -inf }
 0x4b4   : > { %v6638_v6 = vpop.f32.mrf.mxu2  ;;  %3325 = vmax.xlane.f32.xlu2 %v3324_v2  ;;  %v6662_v39 = vpop.xlane.xlu1 %2636  ;;  %v2603_v52 = vadd.f32 %v6306_v30, %v2578_v4  ;;  %v6698_v26 = vadd.f32 %v3286_v40, %v6273_v61  ;;  %4628 = vpow2.f32 %v2016_v33  ;;  %v1373_v30 = vsub.f32 %v6252_v19, %v6572_v27 }
 0x4b5   : > { %v1394_v40 = vmul.f32 1.442695, %v1372_v21 }
 0x4b6   : > { %v6707_v24 = vadd.f32 %v2603_v52, %v6371_v20  ;;  %v3330_v61 = vsel %vm1317_vm4, %v6698_v26, -inf  ;;  %v1396_v27 = vmul.f32 1.442695, %v1373_v30 }
 0x4b7   : > { %1980 = vmax.xlane.f32.xlu1 %v1979_v63  ;;  %v6645_v13 = vpop.xlane.xlu0 %1352  ;;  %v6669_v63 = vpop.eup %4624  ;;  %4630 = vpow2.f32 %v1394_v40  ;;  %v7781_v40 = vld [vmem:[#allocation34_spill] sm:$0xff] }
 0x4b8   : > { %v1429_v10 = vsel %vm1317_vm4, %v6669_v63, 0.0  ;;  %v2653_v20 = vsel %vm1317_vm4, %v6707_v24, -inf  ;;  %4632 = vpow2.f32 %v1396_v27 }
 0x4b9   : > { %v6689_v0 = vpop.eup %4626 }
 0x4ba   : > { %3322 = vmax.xlane.f32.xlu0 %v3321_v41  ;;  %v6717_v19 = vpop.eup %4628 }
 0x4bc   : > { %v2556_v2 = vpop.f32.mrf.mxu2  ;;  %1977 = vmax.xlane.f32.xlu2 %v1976_v59  ;;  %v1423_v59 = vsel %vm1317_vm4, %v6664_v62, 0.0  ;;  %v6692_v44 = vpop.xlane.xlu1 %2639 }
 0x4bd   : > { %v2580_v4 = vmul.f32 0.35355338, %v2556_v2 }
 0x4bf   : > { %2058 = vadd.xlane.f32.xlu1 %v2057_v32  ;;  %v6675_v41 = vpop.xlane.xlu0 %1355  ;;  %v6683_v32 = vpop.xlane.xlu2 %2037  ;;  %v2605_v2 = vadd.f32 %v6374_v16, %v2580_v4  ;;  %v1898_v4 = vmul.f32 0.35355338, %v6559_v43 }
 0x4c1   : > { %v6732_v16 = vadd.f32 %v2605_v2, %v6405_v31  ;;  %v1374_v31 = vsub.f32 %v6366_v38, %v6589_v36 }
 0x4c2   : > { %1424 = vadd.xlane.f32.xlu0 %v1423_v59  ;;  %v1426_v59 = vsel %vm1317_vm4, %v6689_v0, 0.0 }
 0x4c4   : > { %v6687_v28 = vpop.f32.mrf.mxu2  ;;  %1430 = vadd.xlane.f32.xlu2 %v1429_v10 }
 0x4c7   : > { %3334 = vmax.xlane.f32.xlu1 %v3333_v42  ;;  %v1359_v10 = vpop.xlane.xlu0 %1358  ;;  %v1922_v42 = vadd.f32 %v7780_v46, %v1897_v47  ;;  %v6712_v53 = vpop.permute.xlu2 %2913 }
 0x4c8   : > { %v1379_v3 = vsub.f32 %v6452_v48, %v1359_v10  ;;  %v6725_v47 = vpop.xlane.xlu1 %2645  ;;  %v2054_v48 = vsel %vm1317_vm4, %v6717_v19, 0.0  ;;  %v6737_v10 = vpop.eup %4630 }
 0x4c9   : > { %v6723_v52 = vadd.f32 %v1922_v42, %v6459_v35  ;;  %v2659_v42 = vsel %vm1317_vm4, %v6732_v16, -inf  ;;  %v1432_v43 = vsel %vm1317_vm4, %v6737_v10, 0.0 }
 0x4ca   : > { %1427 = vadd.xlane.f32.xlu0 %v1426_v59  ;;  %v1408_v21 = vmul.f32 1.442695, %v1379_v3  ;;  %v2674_v59 = vsub.f32 %v6302_v7, %v6600_v18  ;;  %v6743_v18 = vpop.eup %4632  ;;  %v1923_v3 = vadd.f32 %v7781_v40, %v1898_v4  ;;  %v2577_v4 = vmul.f32 0.35355338, %v6580_v49  ;;  %v7784_v49 = vld [vmem:[#allocation35_spill] sm:$0xff] }
 0x4cb   : > { %v1982_v30 = vsel %vm1317_vm4, %v6723_v52, -inf }
 0x4cc   : > { %3331 = vmax.xlane.f32.xlu2 %v3330_v61  ;;  %v6715_v33 = vpop.f32.mrf.mxu2  ;;  %4634 = vpow2.f32 %v1408_v21  ;;  %v2690_v46 = vmul.f32 1.442695, %v2674_v59  ;;  %v1435_v21 = vsel %vm1317_vm4, %v6743_v18, 0.0  ;;  %v6756_v38 = vadd.f32 %v1923_v3, %v6474_v22 }
 0x4ce   : > { %4636 = vpow2.f32 %v2690_v46 }
 0x4cf   : > { %2654 = vmax.xlane.f32.xlu1 %v2653_v20  ;;  %v6741_v61 = vpop.permute.xlu2 %3528 }
 0x4d0   : > { %v3314_v27 = vpop.xlane.xlu1 %3313 }
 0x4d1   : > { %v3360_v59 = vsub.f32 %v6446_v8, %v3314_v27  ;;  %v1375_v8 = vsub.f32 %v6381_v5, %v6630_v58 }
 0x4d2   : > { %2055 = vadd.xlane.f32.xlu0 %v2054_v48  ;;  %v6750_v20 = vpop.eup %4634  ;;  %v1398_v48 = vmul.f32 1.442695, %v1374_v31 }
 0x4d3   : > { %v3376_v40 = vmul.f32 1.442695, %v3360_v59 }
 0x4d4   : > { %1983 = vmax.xlane.f32.xlu2 %v1982_v30  ;;  %v2564_v7 = vpop.f32.mrf.mxu2  ;;  %v1453_v30 = vsel %vm1317_vm4, %v6750_v20, 0.0  ;;  %4638 = vpow2.f32 %v1398_v48 }
 0x4d5   : > { %v2583_v2 = vmul.f32 0.35355338, %v2564_v7  ;;  %v7782_v7 = vld [vmem:[#allocation36_spill] sm:$0xff]  ;;  %4640 = vpow2.f32 %v3376_v40 }
 0x4d6   : > { %v2675_v31 = vsub.f32 %v7782_v7, %v6566_v1  ;;  %v1400_v1 = vmul.f32 1.442695, %v1375_v8 }
 0x4d7   : > { %2660 = vmax.xlane.f32.xlu1 %v2659_v42  ;;  %v2608_v36 = vadd.f32 %v6411_v57, %v2583_v2  ;;  %v6762_v42 = vpop.eup %4636  ;;  %v1985_v57 = vsel %vm1317_vm4, %v6756_v38, -inf }
 0x4d8   : > { %v2722_v27 = vsel %vm1317_vm4, %v6762_v42, 0.0  ;;  %v2692_v2 = vmul.f32 1.442695, %v2675_v31  ;;  %v1416_v59 = vpop.xlane.xlu1 %1415 }
 0x4d9   : > { %v6771_v3 = vadd.f32 %v2608_v36, %v6459_v35  ;;  %v1377_v35 = vsub.f32 %v6416_v14, %v6645_v13 }
 0x4da   : > { %1433 = vadd.xlane.f32.xlu0 %v1432_v43  ;;  %v2602_v43 = vadd.f32 %v7784_v49, %v2577_v4  ;;  %v6779_v58 = vpop.eup %4638  ;;  %4642 = vpow2.f32 %v2692_v2  ;;  %v7787_v2 = vld [vmem:[#allocation40_spill] sm:$0xff] }
 0x4db   : > { %7783 = vst [vmem:[#allocation33_spill] sm:$0xff] %v6771_v3  ;;  %v2668_v48 = vsel %vm1317_vm4, %v6771_v3, -inf  ;;  %4644 = vpow2.f32 %v1400_v1  ;;  %v6794_v31 = vpop.eup %4640  ;;  %v1404_v14 = vmul.f32 1.442695, %v1377_v35  ;;  %v2679_v1 = vsub.f32 %v7787_v2, %v6624_v45  ;;  %v7792_v2 = vld [vmem:[#allocation57_spill] sm:$0xff] }
 0x4dc   : > { %1436 = vadd.xlane.f32.xlu2 %v1435_v21  ;;  %v6776_v21 = vpop.f32.mrf.mxu2  ;;  %4646 = vrcp.f32 %v1416_v59  ;;  %7786 = vst [vmem:[#allocation34_spill] sm:$0xff] %v6794_v31 }
 0x4df   : > { %v1966_v46 = vpop.xlane.xlu2 %1965  ;;  %1454 = vadd.xlane.f32.xlu1 %v1453_v30  ;;  %v6788_v30 = vadd.f32 %v2602_v43, %v6362_v9 }
 0x4e0   : > { %v1996_v5 = vsub.f32 %v6488_v51, %v1966_v46  ;;  %v1438_v51 = vsel %vm1317_vm4, %v6779_v58, 0.0  ;;  %v7785_v46 = vld [vmem:[#allocation38_spill] sm:$0xff]  ;;  %v6798_v8 = vpop.eup %4642 }
 0x4e1   : > { %v2676_v7 = vsub.f32 %v7785_v46, %v6595_v17  ;;  %v2650_v13 = vsel %vm1317_vm4, %v6788_v30, -inf  ;;  %v6802_v49 = vpop.eup %4644  ;;  %v7790_v46 = vld [vmem:[#allocation52_spill] sm:$0xff] }
 0x4e2   : > { %1986 = vmax.xlane.f32.xlu0 %v1985_v57  ;;  %v2020_v4 = vmul.f32 1.442695, %v1996_v5  ;;  %v3408_v57 = vsel %vm1317_vm4, %v6794_v31, 0.0  ;;  %v2725_v5 = vsel %vm1317_vm4, %v6798_v8, 0.0 }
 0x4e3   : > { %v2694_v40 = vmul.f32 1.442695, %v2676_v7 }
 0x4e4   : > { %2723 = vadd.xlane.f32.xlu2 %v2722_v27  ;;  %4648 = vpow2.f32 %v2020_v4  ;;  %v3235_v17 = vpop.f32.mrf.mxu2  ;;  %v4647_v27 = vpop.eup %4646 }
 0x4e5   : > { %4650 = vpow2.f32 %v1404_v14  ;;  %v3263_v59 = vmul.f32 0.35355338, %v3235_v17  ;;  %v1478_v7 = vmul.f32 %v4647_v27, %v7790_v46  ;;  %v2700_v14 = vmul.f32 1.442695, %v2679_v1  ;;  %v6825_v27 = vpop.xlane.xlu0 %1361 }
 0x4e7   : > { %v6785_v36 = vpop.xlane.xlu2 %3316  ;;  %2669 = vmax.xlane.f32.xlu1 %v2668_v48  ;;  %v7788_v48 = vld [vmem:[#allocation46_spill] sm:$0xff] }
 0x4e8   : > { %v1376_v35 = vsub.f32 %v7788_v48, %v6617_v29  ;;  %v1494_v48 = vpack.c.bf16 %v1478_v7, %v1478_v7  ;;  %v2582_v7 = vmul.f32 0.35355338, %v6715_v33  ;;  %v7796_v33 = vld [vmem:[#allocation60_spill] sm:$0xff] }
 0x4ea   : > { %1439 = vadd.xlane.f32.xlu0 %v1438_v51  ;;  %v6810_v4 = vpop.eup %4648  ;;  %v1441_v51 = vsel %vm1317_vm4, %v6802_v49, 0.0  ;;  %v1518_v46 = vunpack.c.l.b16 %v1494_v48  ;;  %v7795_v48 = vld [vmem:[#allocation51_spill] sm:$0xff] }
 0x4eb   : > { %7789 = vst [vmem:[#allocation36_spill] sm:$0xff] %v6810_v4  ;;  %v6815_v45 = vpop.eup %4650  ;;  %v2060_v29 = vsel %vm1317_vm4, %v6810_v4, 0.0 }
 0x4ec   : > { %2651 = vmax.xlane.f32.xlu2 %v2650_v13  ;;  %v1447_v1 = vsel %vm1317_vm4, %v6815_v45, 0.0 }
 0x4ef   : > { %v1419_v43 = vpop.xlane.xlu2 %1418  ;;  %3409 = vadd.xlane.f32.xlu1 %v3408_v57  ;;  %v1402_v57 = vmul.f32 1.442695, %v1376_v35 }
 0x4f0   : > { %4652 = vrcp.f32 %v1419_v43  ;;  %v7791_v43 = vld [vmem:[#allocation49_spill] sm:$0xff] }
 0x4f1   : > { %4654 = vpow2.f32 %v2694_v40  ;;  %v3288_v40 = vadd.f32 %v7791_v43, %v3263_v59 }
 0x4f2   : > { %2726 = vadd.xlane.f32.xlu0 %v2725_v5  ;;  %4656 = vpow2.f32 %v2700_v14 }
 0x4f3   : > { %4658 = vpow2.f32 %v1402_v57  ;;  %v6830_v59 = vadd.f32 %v3288_v40, %v6362_v9  ;;  %v2579_v57 = vmul.f32 0.35355338, %v6638_v6  ;;  %v7798_v6 = vld [vmem:[#allocation44_spill] sm:$0xff] }
 0x4f4   : > { %1442 = vadd.xlane.f32.xlu2 %v1441_v51 }
 0x4f5   : > { %7793 = vst [vmem:[#allocation35_spill] sm:$0xff] %v6830_v59 }
 0x4f6   : > { %v4653_v13 = vpop.eup %4652 }
 0x4f7   : > { %v6820_v17 = vpop.xlane.xlu2 %2043  ;;  %2061 = vadd.xlane.f32.xlu1 %v2060_v29  ;;  %v1479_v5 = vmul.f32 %v4653_v13, %v7792_v2  ;;  %v6823_v31 = vpop.eup %4654  ;;  %v3336_v29 = vsel %vm1317_vm4, %v6830_v59, -inf  ;;  %v7794_v2 = vld [vmem:[#allocation48_spill] sm:$0xff] }
 0x4f8   : > { %v2728_v51 = vsel %vm1317_vm4, %v6823_v31, 0.0  ;;  %v6835_v43 = vpop.eup %4656  ;;  %v1365_v59 = vpop.xlane.xlu0 %1364 }
 0x4f9   : > { %v1495_v35 = vpack.c.bf16 %v1479_v5, %v1479_v5  ;;  %v6841_v40 = vpop.eup %4658  ;;  %v2680_v5 = vsub.f32 %v7794_v2, %v6725_v47 }
 0x4fa   : > { %1448 = vadd.xlane.f32.xlu0 %v1447_v1  ;;  %v1444_v47 = vsel %vm1317_vm4, %v6841_v40, 0.0 }
 0x4fb   : > { %v1519_v13 = vunpack.c.l.b16 %v1495_v35  ;;  %v7797_v35 = vld [vmem:[#allocation39_spill] sm:$0xff]  ;;  %v2702_v2 = vmul.f32 1.442695, %v2680_v5 }
 0x4fc   : > { %2729 = vadd.xlane.f32.xlu2 %v2728_v51  ;;  %v2607_v51 = vadd.f32 %v7797_v35, %v2582_v7  ;;  %v7803_v35 = vld [vmem:[#allocation29_spill] sm:$0xff] }
 0x4fd   : > { %v1526_v14 = vpack.c.b16 %v1519_v13, %v1518_v46  ;;  %v2737_v46 = vsel %vm1317_vm4, %v6835_v43, 0.0  ;;  %v2677_v13 = vsub.f32 %v7798_v6, %v6662_v39  ;;  %v6872_v6 = vpop.permute.xlu1 %3530 }
 0x4fe   : > { %v6857_v7 = vadd.f32 %v2607_v51, %v6442_v34  ;;  %v7805_v34 = vld [vmem:[#allocation47_spill] sm:$0xff] }
 0x4ff   : > { %4151 = vmatmul.msk.bf16.vlgmr.msra.gmra.mxu3 %vm1317_vm4, %v1526_v14  ;;  %v3320_v9 = vpop.xlane.xlu2 %3319  ;;  %3337 = vmax.xlane.f32.xlu1 %v3336_v29  ;;  %v7799_v29 = vld [vmem:[#allocation37_spill] sm:$0xff]  ;;  %v2678_v51 = vsub.f32 %v7805_v34, %v6692_v44 }
 0x500   : > { %2253 = vmatpush.bf16.msra.mxu3 %v7795_v48  ;;  %v3362_v1 = vsub.f32 %v7796_v33, %v3320_v9  ;;  %v2604_v4 = vadd.f32 %v7799_v29, %v2579_v57  ;;  %v7800_v48 = vld [vmem:[#allocation31_spill] sm:$0xff]  ;;  %7801 = vst [vmem:[#allocation38_spill] sm:$0xff] %v6857_v7  ;;  %v2696_v9 = vmul.f32 1.442695, %v2677_v13  ;;  %v2665_v5 = vsel %vm1317_vm4, %v6857_v7, -inf  ;;  %v6874_v13 = vpop.permute.xlu0 %2911 }
 0x501   : > { %v7802_v57 = vld [vmem:[#allocation55_spill] sm:$0xff]  ;;  %v2698_v44 = vmul.f32 1.442695, %v2678_v51 }
 0x502   : > { %v3380_v14 = vmul.f32 1.442695, %v3362_v1  ;;  %2738 = vadd.xlane.f32.xlu0 %v2737_v46  ;;  %v6862_v39 = vadd.f32 %v2604_v4, %v6387_v54  ;;  %v1381_v1 = vsub.f32 %v7802_v57, %v1365_v59  ;;  %v7813_v7 = vld [vmem:[#allocation63_spill] sm:$0xff] }
 0x504   : > { %4660 = vpow2.f32 %v3380_v14  ;;  %2254 = vmatpush.bf16.msra.mxu3 %v7800_v48  ;;  %1445 = vadd.xlane.f32.xlu2 %v1444_v47  ;;  %v2656_v54 = vsel %vm1317_vm4, %v6862_v39, -inf  ;;  %v1412_v59 = vmul.f32 1.442695, %v1381_v1  ;;  %v7806_v14 = vld [vmem:[#allocation30_spill] sm:$0xff] }
 0x505   : > { %4662 = vpow2.f32 %v2702_v2 }
 0x506   : > { %4664 = vpow2.f32 %v2696_v9  ;;  %v7808_v9 = vld [vmem:[#allocation50_spill] sm:$0xff] }
 0x507   : > { %v6859_v33 = vpop.xlane.xlu2 %1421  ;;  %4666 = vrcp.f32 %v6683_v32  ;;  %v1378_v57 = vsub.f32 %v7808_v9, %v6675_v41  ;;  %v7811_v41 = vld [vmem:[#allocation56_spill] sm:$0xff] }
 0x508   : > { %2255 = vmatpush.bf16.msra.mxu3 %v7803_v35  ;;  %4668 = vpow2.f32 %v1412_v59  ;;  %v6893_v34 = vpop.permute.xlu0 %3526 }
 0x509   : > { %4670 = vpow2.f32 %v2698_v44  ;;  %v1406_v59 = vmul.f32 1.442695, %v1378_v57 }
 0x50a   : > { %v6868_v46 = vpop.eup %4660  ;;  %2666 = vmax.xlane.f32.xlu0 %v2665_v5  ;;  %v2584_v5 = vmul.f32 0.35355338, %v6776_v21 }
 0x50b   : > { %7804 = vst [vmem:[#allocation40_spill] sm:$0xff] %v6868_v46  ;;  %v3414_v4 = vsel %vm1317_vm4, %v6868_v46, 0.0  ;;  %v6882_v29 = vpop.eup %4662 }
 0x50c   : > { %2256 = vmatpush.bf16.msra.mxu3 %v7806_v14  ;;  %2657 = vmax.xlane.f32.xlu2 %v2656_v54  ;;  %7807 = vst [vmem:[#allocation46_spill] sm:$0xff] %v6882_v29  ;;  %v6884_v2 = vpop.eup %4664  ;;  %v2740_v48 = vsel %vm1317_vm4, %v6882_v29, 0.0  ;;  %v7810_v54 = vld [vmem:[#allocation43_spill] sm:$0xff]  ;;  %v6903_v29 = vpop.f32.mrf.mxu2 }
 0x50d   : > { %3415 = vadd.xlane.f32.xlu1 %v3414_v4  ;;  %v4667_v35 = vpop.eup %4666  ;;  %v2731_v32 = vsel %vm1317_vm4, %v6884_v2, 0.0 }
 0x50e   : > { %v6895_v51 = vpop.eup %4668  ;;  %v2100_v4 = vmul.f32 %v4667_v35, %v7810_v54 }
 0x50f   : > { %v2047_v47 = vpop.xlane.xlu2 %2046  ;;  %7809 = vst [vmem:[#allocation52_spill] sm:$0xff] %v6895_v51  ;;  %v6898_v44 = vpop.eup %4670  ;;  %v1459_v21 = vsel %vm1317_vm4, %v6895_v51, 0.0 }
 0x510   : > { %v2734_v57 = vsel %vm1317_vm4, %v6898_v44, 0.0 }
 0x512   : > { %v2041_v1 = vpop.xlane.xlu1 %2040  ;;  %2741 = vadd.xlane.f32.xlu0 %v2740_v48  ;;  %v3361_v48 = vsub.f32 %v7811_v41, %v6785_v36 }
 0x513   : > { %4672 = vrcp.f32 %v2041_v1  ;;  %v7812_v1 = vld [vmem:[#allocation41_spill] sm:$0xff] }
 0x514   : > { %2732 = vadd.xlane.f32.xlu2 %v2731_v32  ;;  %v2609_v46 = vadd.f32 %v7812_v1, %v2584_v5  ;;  %v2116_v32 = vpack.c.bf16 %v2100_v4, %v2100_v4  ;;  %4674 = vpow2.f32 %v1406_v59  ;;  %v3378_v54 = vmul.f32 1.442695, %v3361_v48 }
 0x515   : > { %4676 = vrcp.f32 %v2047_v47  ;;  %v7814_v47 = vld [vmem:[#allocation64_spill] sm:$0xff] }
 0x516   : > { %4678 = vrcp.f32 %v6820_v17  ;;  %v6914_v41 = vadd.f32 %v2609_v46, %v6474_v22  ;;  %v2140_v59 = vunpack.c.l.b16 %v2116_v32  ;;  %v7816_v46 = vld [vmem:[#allocation45_spill] sm:$0xff] }
 0x517   : > { %v1975_v14 = vpop.xlane.xlu2 %1974  ;;  %4680 = vpow2.f32 %v3378_v54 }
 0x518   : > { %v2671_v17 = vsel %vm1317_vm4, %v6914_v41, -inf }
 0x519   : > { %v4673_v9 = vpop.eup %4672 }
 0x51a   : > { %v2101_v3 = vmul.f32 %v4673_v9, %v7813_v7  ;;  %v2053_v35 = vpop.xlane.xlu1 %2052  ;;  %1460 = vadd.xlane.f32.xlu0 %v1459_v21  ;;  %v2581_v7 = vmul.f32 0.35355338, %v6687_v28  ;;  %v6917_v1 = vpop.eup %4674  ;;  %v1999_v21 = vsub.f32 %v7814_v47, %v1975_v14 }
 0x51b   : > { %v1450_v14 = vsel %vm1317_vm4, %v6917_v1, 0.0 }
 0x51c   : > { %v2117_v36 = vpack.c.bf16 %v2101_v3, %v2101_v3  ;;  %2735 = vadd.xlane.f32.xlu2 %v2734_v57  ;;  %v4677_v3 = vpop.eup %4676  ;;  %v7815_v57 = vld [vmem:[#allocation53_spill] sm:$0xff]  ;;  %v2606_v32 = vadd.f32 %v7816_v46, %v2581_v7  ;;  %v2026_v54 = vmul.f32 1.442695, %v1999_v21  ;;  %v7819_v21 = vld [vmem:[#allocation42_spill] sm:$0xff] }
 0x51d   : > { %v6911_v5 = vpop.xlane.xlu0 %1968  ;;  %v1380_v51 = vsub.f32 %v7815_v57, %v6825_v27  ;;  %v4679_v28 = vpop.eup %4678  ;;  %v7818_v57 = vld [vmem:[#allocation58_spill] sm:$0xff] }
 0x51e   : > { %v2141_v4 = vunpack.c.l.b16 %v2117_v36  ;;  %v3240_v36 = vpop.f32.mrf.mxu2  ;;  %v6934_v27 = vpop.eup %4680  ;;  %v6939_v46 = vadd.f32 %v2606_v32, %v6424_v37  ;;  %4682 = vpow2.f32 %v2026_v54 }
 0x51f   : > { %v2050_v9 = vpop.xlane.xlu2 %2049 }
 0x520   : > { %v2148_v48 = vpack.c.b16 %v2141_v4, %v2140_v59  ;;  %v7817_v4 = vld [vmem:[#allocation62_spill] sm:$0xff]  ;;  %v2662_v37 = vsel %vm1317_vm4, %v6939_v46, -inf }
 0x521   : > { %v2103_v59 = vmul.f32 %v4677_v3, %v7817_v4  ;;  %v3411_v3 = vsel %vm1317_vm4, %v6934_v27, 0.0 }
 0x522   : > { %4199 = vmatmul.msk.bf16.vlgmr.msrb.gmra.mxu0 %vm1317_vm4, %v2148_v48  ;;  %v6925_v22 = vpop.xlane.xlu1 %3328  ;;  %2672 = vmax.xlane.f32.xlu0 %v2671_v17  ;;  %v1410_v48 = vmul.f32 1.442695, %v1380_v51  ;;  %v2102_v17 = vmul.f32 %v4679_v28, %v7818_v57 }
 0x523   : > { %3552 = vmatpush.bf16.msrb.mxu0 %v6872_v6  ;;  %v2119_v6 = vpack.c.bf16 %v2103_v59, %v2103_v59 }
 0x524   : > { %1451 = vadd.xlane.f32.xlu2 %v1450_v14  ;;  %v2681_v14 = vsub.f32 %v7819_v21, %v6652_v60  ;;  %4684 = vpow2.f32 %v1410_v48  ;;  %v2118_v51 = vpack.c.bf16 %v2102_v17, %v2102_v17  ;;  %v6951_v48 = vpop.eup %4682 }
 0x525   : > { %v6932_v47 = vpop.xlane.xlu0 %1971  ;;  %4686 = vrcp.f32 %v2050_v9 }
 0x526   : > { %v2704_v32 = vmul.f32 1.442695, %v2681_v14  ;;  %v6949_v54 = vpop.f32.mrf.mxu2  ;;  %4688 = vrcp.f32 %v2053_v35  ;;  %v2142_v9 = vunpack.c.l.b16 %v2118_v51  ;;  %v2069_v35 = vsel %vm1317_vm4, %v6951_v48, 0.0 }
 0x527   : > { %3553 = vmatpush.bf16.msrb.mxu0 %v6741_v61  ;;  %v3326_v7 = vpop.xlane.xlu2 %3325  ;;  %v2143_v61 = vunpack.c.l.b16 %v2119_v6  ;;  %4690 = vrcp.f32 %v6859_v33 }
 0x528   : > { %v3364_v17 = vsub.f32 %v6620_v50, %v3326_v7 }
 0x529   : > { %v2149_v21 = vpack.c.b16 %v2143_v61, %v2142_v9  ;;  %v3265_v61 = vmul.f32 0.35355338, %v3240_v36 }
 0x52a   : > { %v1981_v4 = vpop.xlane.xlu1 %1980  ;;  %3412 = vadd.xlane.f32.xlu0 %v3411_v3  ;;  %v7820_v3 = vld [vmem:[#allocation67_spill] sm:$0xff]  ;;  %v3384_v50 = vmul.f32 1.442695, %v3364_v17 }
 0x52b   : > { %v2001_v28 = vsub.f32 %v6633_v23, %v1981_v4  ;;  %3554 = vmatpush.bf16.msrb.mxu0 %v6893_v34  ;;  %v6957_v34 = vpop.eup %4684 }
 0x52c   : > { %2663 = vmax.xlane.f32.xlu2 %v2662_v37  ;;  %v4687_v14 = vpop.eup %4686  ;;  %v1456_v4 = vsel %vm1317_vm4, %v6957_v34, 0.0 }
 0x52d   : > { %v2030_v60 = vmul.f32 1.442695, %v2001_v28  ;;  %v3323_v59 = vpop.xlane.xlu0 %3322  ;;  %v4689_v33 = vpop.eup %4688  ;;  %v2104_v7 = vmul.f32 %v4687_v14, %v6591_v15  ;;  %v3365_v15 = vsub.f32 %v6603_v25, %v6925_v22  ;;  %v7823_v14 = vld [vmem:[#allocation61_spill] sm:$0xff] }
 0x52e   : > { %v3363_v57 = vsub.f32 %v6641_v55, %v3323_v59  ;;  %v1997_v55 = vsub.f32 %v7820_v3, %v6911_v5  ;;  %v4691_v51 = vpop.eup %4690  ;;  %v7821_v5 = vld [vmem:[#allocation65_spill] sm:$0xff]  ;;  %v7824_v3 = vld [vmem:[#allocation59_spill] sm:$0xff] }
 0x52f   : > { %v6955_v23 = vpop.xlane.xlu2 %1977  ;;  %4692 = vpow2.f32 %v2030_v60  ;;  %v2105_v60 = vmul.f32 %v4689_v33, %v7821_v5  ;;  %v2120_v17 = vpack.c.bf16 %v2104_v7, %v2104_v7 }
 0x530   : > { %v3382_v6 = vmul.f32 1.442695, %v3363_v57  ;;  %4694 = vpow2.f32 %v2704_v32  ;;  %v2022_v32 = vmul.f32 1.442695, %v1997_v55  ;;  %v3245_v57 = vpop.f32.mrf.mxu2  ;;  %v3290_v55 = vadd.f32 %v7824_v3, %v3265_v61 }
 0x531   : > { %v3267_v22 = vmul.f32 0.35355338, %v3245_v57  ;;  %v2144_v7 = vunpack.c.l.b16 %v2120_v17 }
 0x532   : > { %4696 = vpow2.f32 %v3382_v6  ;;  %4200 = vmatmul.msk.bf16.gmra.mxu0 %vm1317_vm4, %v2149_v21  ;;  %2070 = vadd.xlane.f32.xlu0 %v2069_v35  ;;  %v1480_v35 = vmul.f32 %v4691_v51, %v7823_v14  ;;  %v2059_v33 = vpop.xlane.xlu1 %2058 }
 0x533   : > { %v3292_v17 = vadd.f32 %v6593_v12, %v3267_v22 }
 0x534   : > { %1457 = vadd.xlane.f32.xlu2 %v1456_v4  ;;  %v2121_v4 = vpack.c.bf16 %v2105_v60, %v2105_v60  ;;  %v1496_v51 = vpack.c.bf16 %v1480_v35, %v1480_v35  ;;  %v3264_v60 = vmul.f32 0.35355338, %v6903_v29  ;;  %v1998_v29 = vsub.f32 %v6611_v11, %v6932_v47 }
 0x535   : > { %v1425_v28 = vpop.xlane.xlu0 %1424  ;;  %v6968_v37 = vpop.eup %4692 }
 0x536   : > { %4698 = vrcp.f32 %v1425_v28  ;;  %v6971_v59 = vpop.eup %4694  ;;  %v2075_v21 = vsel %vm1317_vm4, %v6968_v37, 0.0  ;;  %v3386_v28 = vmul.f32 1.442695, %v3365_v15  ;;  %v2145_v61 = vunpack.c.l.b16 %v2121_v4 }
 0x537   : > { %v1431_v9 = vpop.xlane.xlu2 %1430  ;;  %4700 = vpow2.f32 %v3384_v50  ;;  %v2743_v50 = vsel %vm1317_vm4, %v6971_v59, 0.0 }
 0x538   : > { %v6973_v6 = vpop.eup %4696  ;;  %4702 = vpow2.f32 %v2022_v32  ;;  %v4862_v32 = vld [vmem:[%s5431_s24 + $0x50] sm:$0xff]  ;;  %v2150_v15 = vpack.c.b16 %v2145_v61, %v2144_v7  ;;  %v3247_v35 = vpop.f32.mrf.mxu2 }
 0x539   : > { %7822 = vst [vmem:[#allocation49_spill] sm:$0xff] %v6973_v6  ;;  %v3417_v36 = vsel %vm1317_vm4, %v6973_v6, 0.0  ;;  %v3268_v61 = vmul.f32 0.35355338, %v3247_v35  ;;  %v7826_v35 = vld [vmem:[#allocation66_spill] sm:$0xff] }
 0x53a   : > { %2076 = vadd.xlane.f32.xlu0 %v2075_v21  ;;  %3418 = vadd.xlane.f32.xlu1 %v3417_v36  ;;  %v6989_v21 = vadd.f32 %v4862_v32, %v3290_v55  ;;  %v1520_v55 = vunpack.c.l.b16 %v1496_v51  ;;  %v7005_v22 = vpop.xlane.xlu1 %3334  ;;  %v2024_v32 = vmul.f32 1.442695, %v1998_v29 }
 0x53b   : > { %v3293_v29 = vadd.f32 %v7826_v35, %v3268_v61 }
 0x53c   : > { %v4699_v25 = vpop.eup %4698  ;;  %2744 = vadd.xlane.f32.xlu2 %v2743_v50  ;;  %v3342_v12 = vsel %vm1317_vm4, %v6989_v21, -inf }
 0x53d   : > { %v1428_v5 = vpop.xlane.xlu0 %1427  ;;  %v1481_v6 = vmul.f32 %v4699_v25, %v6664_v62  ;;  %v6986_v14 = vpop.eup %4700 }
 0x53e   : > { %4704 = vrcp.f32 %v1428_v5  ;;  %v6992_v57 = vpop.eup %4702  ;;  %v3420_v4 = vsel %vm1317_vm4, %v6986_v14, 0.0 }
 0x53f   : > { %4706 = vrcp.f32 %v2059_v33  ;;  %v3332_v36 = vpop.xlane.xlu2 %3331  ;;  %v1497_v3 = vpack.c.bf16 %v1481_v6, %v1481_v6  ;;  %v2063_v6 = vsel %vm1317_vm4, %v6992_v57, 0.0 }
 0x540   : > { %4708 = vrcp.f32 %v1431_v9  ;;  %v3366_v62 = vsub.f32 %v6698_v26, %v3332_v36  ;;  %v4863_v9 = vld [vmem:[#allocation9 + $0xc8] sm:$0xff] }
 0x541   : > { %4710 = vpow2.f32 %v3386_v28  ;;  %v1521_v50 = vunpack.c.l.b16 %v1497_v3  ;;  %v3289_v26 = vadd.f32 %v4863_v9, %v3264_v60  ;;  %v4864_v28 = vld [vmem:[%s5431_s24 + $0x60] sm:$0xff]  ;;  %v4865_v3 = vld [vmem:[%s5431_s24 + $0x48] sm:$0xff] }
 0x542   : > { %4201 = vmatmul.msk.bf16.gmra.mxu0 %vm1317_vm4, %v2150_v15  ;;  %3421 = vadd.xlane.f32.xlu0 %v3420_v4  ;;  %v3388_v7 = vmul.f32 1.442695, %v3366_v62  ;;  %v7009_v5 = vadd.f32 %v4864_v28, %v3292_v17  ;;  %v7825_v4 = vld [vmem:[#allocation69_spill] sm:$0xff]  ;;  %v2655_v61 = vpop.xlane.xlu1 %2654 }
 0x543   : > { %3343 = vmax.xlane.f32.xlu1 %v3342_v12  ;;  %v1527_v33 = vpack.c.b16 %v1521_v50, %v1520_v55  ;;  %v7016_v15 = vadd.f32 %v4865_v3, %v3289_v26  ;;  %v7827_v12 = vld [vmem:[#allocation68_spill] sm:$0xff] }
 0x544   : > { %v4705_v25 = vpop.eup %4704  ;;  %2064 = vadd.xlane.f32.xlu2 %v2063_v6  ;;  %v3348_v17 = vsel %vm1317_vm4, %v7009_v5, -inf  ;;  %v2000_v9 = vsub.f32 %v7827_v12, %v6955_v23 }
 0x545   : > { %v4707_v11 = vpop.eup %4706  ;;  %4152 = vmatmul.msk.bf16.gmra.mxu3 %vm1317_vm4, %v1527_v33  ;;  %v2056_v47 = vpop.xlane.xlu0 %2055  ;;  %v1482_v62 = vmul.f32 %v4705_v25, %v6689_v0  ;;  %v3339_v6 = vsel %vm1317_vm4, %v7016_v15, -inf }
 0x546   : > { %v4709_v51 = vpop.eup %4708  ;;  %4712 = vrcp.f32 %v2056_v47  ;;  %v2107_v55 = vmul.f32 %v4707_v11, %v7825_v4  ;;  %v3250_v0 = vpop.f32.mrf.mxu2 }
 0x547   : > { %v7011_v60 = vpop.eup %4710  ;;  %v7013_v36 = vpop.xlane.xlu2 %1983  ;;  %4714 = vpow2.f32 %v3388_v7  ;;  %v1483_v50 = vmul.f32 %v4709_v51, %v6669_v63  ;;  %v1498_v33 = vpack.c.bf16 %v1482_v62, %v1482_v62  ;;  %v3269_v23 = vmul.f32 0.35355338, %v3250_v0 }
 0x548   : > { %4716 = vpow2.f32 %v2024_v32  ;;  %v3423_v26 = vsel %vm1317_vm4, %v7011_v60, 0.0  ;;  %v2123_v63 = vpack.c.bf16 %v2107_v55, %v2107_v55  ;;  %v2028_v51 = vmul.f32 1.442695, %v2000_v9  ;;  %v4866_v32 = vld [vmem:[%s5431_s24 + $0x68] sm:$0xff] }
 0x549   : > { %v1499_v11 = vpack.c.bf16 %v1483_v50, %v1483_v50  ;;  %v7034_v3 = vadd.f32 %v4866_v32, %v3293_v29  ;;  %v2683_v50 = vsub.f32 %v6707_v24, %v2655_v61  ;;  %v3294_v9 = vadd.f32 %v6673_v56, %v3269_v23 }
 0x54a   : > { %3349 = vmax.xlane.f32.xlu0 %v3348_v17  ;;  %v1522_v17 = vunpack.c.l.b16 %v1498_v33  ;;  %v2147_v55 = vunpack.c.l.b16 %v2123_v63 }
 0x54b   : > { %3424 = vadd.xlane.f32.xlu1 %v3423_v26  ;;  %v1523_v12 = vunpack.c.l.b16 %v1499_v11  ;;  %v3351_v29 = vsel %vm1317_vm4, %v7034_v3, -inf  ;;  %v4867_v11 = vld [vmem:[%s5431_s24 + $0x70] sm:$0xff] }
 0x54c   : > { %v4713_v25 = vpop.eup %4712  ;;  %3340 = vmax.xlane.f32.xlu2 %v3339_v6 }
 0x54d   : > { %v1434_v7 = vpop.xlane.xlu0 %1433  ;;  %v2106_v47 = vmul.f32 %v4713_v25, %v6717_v19  ;;  %v7031_v28 = vpop.eup %4714  ;;  %v1528_v6 = vpack.c.b16 %v1523_v12, %v1522_v17  ;;  %v2708_v25 = vmul.f32 1.442695, %v2683_v50 }
 0x54e   : > { %4718 = vrcp.f32 %v1434_v7  ;;  %v7036_v62 = vpop.eup %4716  ;;  %v3426_v19 = vsel %vm1317_vm4, %v7031_v28, 0.0  ;;  %v3252_v17 = vpop.f32.mrf.mxu2 }
 0x54f   : > { %v1437_v4 = vpop.xlane.xlu2 %1436  ;;  %v2122_v35 = vpack.c.bf16 %v2106_v47, %v2106_v47  ;;  %v2066_v0 = vsel %vm1317_vm4, %v7036_v62, 0.0  ;;  %v7050_v47 = vadd.f32 %v4867_v11, %v3294_v9  ;;  %v3270_v50 = vmul.f32 0.35355338, %v3252_v17 }
 0x550   : > { %4720 = vrcp.f32 %v1437_v4 }
 0x551   : > { %v2146_v26 = vunpack.c.l.b16 %v2122_v35  ;;  %4722 = vpow2.f32 %v2028_v51  ;;  %v3354_v35 = vsel %vm1317_vm4, %v7050_v47, -inf }
 0x552   : > { %3427 = vadd.xlane.f32.xlu0 %v3426_v19  ;;  %4724 = vpow2.f32 %v2708_v25 }
 0x553   : > { %3352 = vmax.xlane.f32.xlu1 %v3351_v29  ;;  %v2151_v33 = vpack.c.b16 %v2147_v55, %v2146_v26  ;;  %v7828_v29 = vld [vmem:[#allocation70_spill] sm:$0xff] }
 0x554   : > { %2067 = vadd.xlane.f32.xlu2 %v2066_v0  ;;  %v4719_v24 = vpop.eup %4718  ;;  %v3295_v0 = vadd.f32 %v7828_v29, %v3270_v50 }
 0x555   : > { %4153 = vmatmul.msk.bf16.gmra.mxu3 %vm1317_vm4, %v1528_v6  ;;  %4202 = vmatmul.msk.bf16.gmra.mxu0 %vm1317_vm4, %v2151_v33  ;;  %v1987_v56 = vpop.xlane.xlu0 %1986  ;;  %v1484_v4 = vmul.f32 %v4719_v24, %v6737_v10 }
 0x556   : > { %v4721_v63 = vpop.eup %4720  ;;  %v2003_v7 = vsub.f32 %v6756_v38, %v1987_v56 }
 0x557   : > { %v2724_v23 = vpop.xlane.xlu2 %2723  ;;  %v1485_v51 = vmul.f32 %v4721_v63, %v6743_v18  ;;  %v7053_v61 = vpop.eup %4722  ;;  %v1500_v18 = vpack.c.bf16 %v1484_v4, %v1484_v4  ;;  %v4868_v63 = vld [vmem:[%s5431_s24 + $0x78] sm:$0xff] }
 0x558   : > { %v2034_v32 = vmul.f32 1.442695, %v2003_v7  ;;  %v2072_v38 = vsel %vm1317_vm4, %v7053_v61, 0.0  ;;  %v7060_v12 = vpop.eup %4724  ;;  %v7073_v7 = vadd.f32 %v4868_v63, %v3295_v0  ;;  %v7081_v63 = vpop.xlane.xlu1 %2660 }
 0x559   : > { %v1501_v55 = vpack.c.bf16 %v1485_v51, %v1485_v51  ;;  %v1524_v33 = vunpack.c.l.b16 %v1500_v18  ;;  %v2749_v24 = vsel %vm1317_vm4, %v7060_v12, 0.0 }
 0x55a   : > { %4726 = vpow2.f32 %v2034_v32  ;;  %v3357_v4 = vsel %vm1317_vm4, %v7073_v7, -inf }
 0x55b   : > { %3355 = vmax.xlane.f32.xlu1 %v3354_v35  ;;  %v1525_v10 = vunpack.c.l.b16 %v1501_v55  ;;  %4728 = vrcp.f32 %v2724_v23 }
 0x55c   : > { %2073 = vadd.xlane.f32.xlu2 %v2072_v38 }
 0x55d   : > { %v1440_v19 = vpop.xlane.xlu0 %1439  ;;  %v1529_v25 = vpack.c.b16 %v1525_v10, %v1524_v33 }
 0x55e   : > { %4730 = vrcp.f32 %v1440_v19 }
 0x55f   : > { %v7062_v26 = vpop.xlane.xlu2 %2651 }
 0x560   : > { %v7064_v9 = vpop.eup %4726 }
 0x561   : > { %v2081_v6 = vsel %vm1317_vm4, %v7064_v9, 0.0  ;;  %v4729_v11 = vpop.eup %4728 }
 0x562   : > { %2082 = vadd.xlane.f32.xlu0 %v2081_v6  ;;  %v2786_v32 = vmul.f32 %v4729_v11, %v6762_v42 }
 0x563   : > { %2750 = vadd.xlane.f32.xlu1 %v2749_v24 }
 0x564   : > { %v4731_v51 = vpop.eup %4730  ;;  %v2802_v38 = vpack.c.bf16 %v2786_v32, %v2786_v32 }
 0x565   : > { %4154 = vmatmul.msk.bf16.gmra.mxu3 %vm1317_vm4, %v1529_v25  ;;  %v2727_v56 = vpop.xlane.xlu0 %2726  ;;  %v1486_v17 = vmul.f32 %v4731_v51, %v6779_v58  ;;  %v4869_v58 = vld [vmem:[#allocation2] sm:$0xff]  ;;  %v7829_v51 = vld [vmem:[#allocation54_spill] sm:$0xff] }
 0x566   : > { %4732 = vrcp.f32 %v2727_v56  ;;  %v2826_v6 = vunpack.c.l.b16 %v2802_v38  ;;  %v1455_v38 = vpop.xlane.xlu1 %1454 }
 0x567   : > { %v1443_v23 = vpop.xlane.xlu2 %1442  ;;  %v1502_v18 = vpack.c.bf16 %v1486_v17, %v1486_v17 }
 0x568   : > { %4734 = vrcp.f32 %v1443_v23 }
 0x569   : > { %v1591_v24 = vunpack.c.l.b16 %v1502_v18 }
 0x56a   : > { %3358 = vmax.xlane.f32.xlu0 %v3357_v4  ;;  %v7830_v4 = vld [vmem:[#allocation32_spill] sm:$0xff] }
 0x56c   : > { %v4733_v35 = vpop.eup %4732 }
 0x56d   : > { %v2787_v55 = vmul.f32 %v4733_v35, %v6798_v8  ;;  %v1449_v50 = vpop.xlane.xlu0 %1448 }
 0x56e   : > { %v4735_v19 = vpop.eup %4734  ;;  %4736 = vrcp.f32 %v1449_v50 }
 0x56f   : > { %v2803_v10 = vpack.c.bf16 %v2787_v55, %v2787_v55  ;;  %v1487_v29 = vmul.f32 %v4735_v19, %v6802_v49  ;;  %v2730_v0 = vpop.xlane.xlu2 %2729  ;;  %v4870_v55 = vld [vmem:[#allocation2 + $0x38] sm:$0xff] }
 0x571   : > { %v2827_v33 = vunpack.c.l.b16 %v2803_v10  ;;  %v1503_v42 = vpack.c.bf16 %v1487_v29, %v1487_v29 }
 0x573   : > { %v2834_v25 = vpack.c.b16 %v2827_v33, %v2826_v6  ;;  %v1592_v56 = vunpack.c.l.b16 %v1503_v42 }
 0x574   : > { %3524 = vrot.lane.b32.xlu2 %v4869_v58, %s5180_s18  ;;  %v4737_v49 = vpop.eup %4736 }
 0x575   : > { %4247 = vmatmul.msk.bf16.vlgmr.msra.gmra.mxu0 %vm1317_vm4, %v2834_v25  ;;  %v2739_v8 = vpop.xlane.xlu0 %2738  ;;  %v1599_v11 = vpack.c.b16 %v1592_v56, %v1591_v24  ;;  %v1489_v32 = vmul.f32 %v4737_v49, %v6815_v45 }
 0x577   : > { %v1446_v23 = vpop.xlane.xlu2 %1445  ;;  %4155 = vmatmul.msk.bf16.vlgmr.msrb.gmra.mxu3 %vm1317_vm4, %v1599_v11  ;;  %v1505_v18 = vpack.c.bf16 %v1489_v32, %v1489_v32  ;;  %v2002_v11 = vsub.f32 %v6723_v52, %v7013_v36 }
 0x578   : > { %4738 = vrcp.f32 %v1446_v23  ;;  %2939 = vmatpush.bf16.msrb.mxu3 %v7829_v51 }
 0x579   : > { %4740 = vrcp.f32 %v2730_v0  ;;  %v1594_v24 = vunpack.c.l.b16 %v1505_v18  ;;  %v2032_v32 = vmul.f32 1.442695, %v2002_v11 }
 0x57c   : > { %2940 = vmatpush.bf16.msrb.mxu3 %v7830_v4 }
 0x57d   : > { %v7089_v17 = vpop.xlane.xlu0 %2666 }
 0x57e   : > { %v4739_v35 = vpop.eup %4738  ;;  %3603 = vrot.lane.b32.xlu0 %v4870_v55, %s5180_s18 }
 0x57f   : > { %v2658_v50 = vpop.xlane.xlu2 %2657  ;;  %v1488_v19 = vmul.f32 %v4739_v35, %v6841_v40 }
 0x580   : > { %v2684_v10 = vsub.f32 %v6862_v39, %v2658_v50  ;;  %2941 = vmatpush.bf16.msrb.mxu3 %v6712_v53  ;;  %v4741_v53 = vpop.eup %4740  ;;  %v2670_v39 = vpop.xlane.xlu1 %2669 }
 0x581   : > { %v1504_v29 = vpack.c.bf16 %v1488_v19, %v1488_v19  ;;  %v2788_v23 = vmul.f32 %v4741_v53, %v6823_v31 }
 0x582   : > { %v2710_v45 = vmul.f32 1.442695, %v2684_v10  ;;  %v1563_v6 = vpop.f32.mrf.mxu3 }
 0x583   : > { %v1656_v33 = vpack.c.bf16 %v1563_v6, %v1563_v6  ;;  %v1593_v42 = vunpack.c.l.b16 %v1504_v29  ;;  %v2804_v4 = vpack.c.bf16 %v2788_v23, %v2788_v23  ;;  %v2685_v29 = vsub.f32 %v6732_v16, %v7081_v63  ;;  %v7831_v23 = vld [vmem:[#allocation33_spill] sm:$0xff] }
 0x584   : > { %4742 = vpow2.f32 %v2710_v45  ;;  %2942 = vmatpush.bf16.msrb.mxu3 %v6874_v13 }
 0x585   : > { %1673 = vst.msk [vmem:[#allocation3] sm:$0xf] %vm1672_vm8, %v1656_v33  ;;  %v1600_v25 = vpack.c.b16 %v1594_v24, %v1593_v42  ;;  %v7097_v40 = vpop.xlane.xlu0 %2741  ;;  %v2828_v31 = vunpack.c.l.b16 %v2804_v4  ;;  %v3266_v33 = vmul.f32 0.35355338, %v6949_v54  ;;  %v2712_v42 = vmul.f32 1.442695, %v2685_v29 }
 0x587   : > { %v2733_v56 = vpop.xlane.xlu2 %2732  ;;  %4156 = vmatmul.msk.bf16.gmra.mxu3 %vm1317_vm4, %v1600_v25  ;;  %v2682_v25 = vsub.f32 %v6788_v30, %v7062_v26 }
 0x588   : > { %4744 = vrcp.f32 %v2733_v56  ;;  %v7109_v52 = vpop.xlane.xlu1 %3409  ;;  %v4871_v56 = vld [vmem:[#allocation9 + $0xd8] sm:$0xff] }
 0x589   : > { %v3291_v53 = vadd.f32 %v4871_v56, %v3266_v33  ;;  %v7834_v56 = vld [vmem:[#allocation35_spill] sm:$0xff] }
 0x58a   : > { %v7100_v0 = vpop.eup %4742  ;;  %v1565_v58 = vpop.f32.mrf.mxu3 }
 0x58b   : > { %v1657_v13 = vpack.c.bf16 %v1565_v58, %v1565_v58  ;;  %v2752_v49 = vsel %vm1317_vm4, %v7100_v0, 0.0 }
 0x58c   : > { %2753 = vadd.xlane.f32.xlu1 %v2752_v49  ;;  %v2706_v49 = vmul.f32 1.442695, %v2682_v25 }
 0x58d   : > { %1674 = vst.msk [vmem:[#allocation3 + $0x4] sm:$0xf] %vm1672_vm8, %v1657_v13  ;;  %v1461_v50 = vpop.xlane.xlu0 %1460  ;;  %v2688_v13 = vsub.f32 %v7831_v23, %v2670_v39  ;;  %v7835_v23 = vld [vmem:[#allocation52_spill] sm:$0xff] }
 0x58e   : > { %v4745_v51 = vpop.eup %4744 }
 0x58f   : > { %v2789_v35 = vmul.f32 %v4745_v51, %v6884_v2  ;;  %v2736_v55 = vpop.xlane.xlu2 %2735  ;;  %v2718_v39 = vmul.f32 1.442695, %v2688_v13 }
 0x590   : > { %4746 = vrcp.f32 %v2736_v55  ;;  %v2062_v58 = vpop.xlane.xlu1 %2061 }
 0x591   : > { %4748 = vrcp.f32 %v1455_v38  ;;  %v2805_v19 = vpack.c.bf16 %v2789_v35, %v2789_v35  ;;  %v7832_v35 = vld [vmem:[#allocation38_spill] sm:$0xff] }
 0x592   : > { %4750 = vrcp.f32 %v2739_v8  ;;  %v2687_v55 = vsub.f32 %v7832_v35, %v7089_v17 }
 0x593   : > { %4752 = vpow2.f32 %v2032_v32  ;;  %v2829_v36 = vunpack.c.l.b16 %v2805_v19  ;;  %v4872_v32 = vld [vmem:[%s5431_s24 + $0x58] sm:$0xff]  ;;  %s5182_s24 = smov 16  }
 0x594   : > { %v7130_v4 = vadd.f32 %v4872_v32, %v3291_v53 }
 0x595   : > { %v2835_v18 = vpack.c.b16 %v2829_v36, %v2828_v31  ;;  %v7118_v24 = vpop.xlane.xlu0 %2672  ;;  %v7833_v36 = vld [vmem:[#allocation71_spill] sm:$0xff] }
 0x596   : > { %v4747_v10 = vpop.eup %4746  ;;  %v3345_v17 = vsel %vm1317_vm4, %v7130_v4, -inf }
 0x597   : > { %v4749_v45 = vpop.eup %4748  ;;  %v1452_v6 = vpop.xlane.xlu2 %1451  ;;  %4248 = vmatmul.msk.bf16.gmra.mxu0 %vm1317_vm4, %v2835_v18  ;;  %v2790_v8 = vmul.f32 %v4747_v10, %v6898_v44  ;;  %v3367_v18 = vsub.f32 %v7833_v36, %v7005_v22  ;;  %v7836_v36 = vld [vmem:[#allocation46_spill] sm:$0xff] }
 0x598   : > { %v4751_v2 = vpop.eup %4750  ;;  %4754 = vrcp.f32 %v1452_v6  ;;  %v1491_v63 = vmul.f32 %v4749_v45, %v6750_v20  ;;  %v3338_v22 = vpop.xlane.xlu1 %3337 }
 0x599   : > { %v7115_v38 = vpop.eup %4752  ;;  %v2791_v16 = vmul.f32 %v4751_v2, %v6835_v43  ;;  %v2806_v11 = vpack.c.bf16 %v2790_v8, %v2790_v8  ;;  %4756 = vpow2.f32 %v2712_v42  ;;  %v2716_v2 = vmul.f32 1.442695, %v2687_v55 }
 0x59a   : > { %v2078_v54 = vsel %vm1317_vm4, %v7115_v38, 0.0  ;;  %v1507_v26 = vpack.c.bf16 %v1491_v63, %v1491_v63  ;;  %4758 = vrcp.f32 %v1461_v50  ;;  %v3390_v50 = vmul.f32 1.442695, %v3367_v18 }
 0x59b   : > { %v2807_v51 = vpack.c.bf16 %v2791_v16, %v2791_v16  ;;  %v2830_v19 = vunpack.c.l.b16 %v2806_v11  ;;  %4760 = vpow2.f32 %v2706_v49  ;;  %v3368_v53 = vsub.f32 %v7834_v56, %v3338_v22 }
 0x59c   : > { %v1596_v45 = vunpack.c.l.b16 %v1507_v26  ;;  %v2689_v11 = vsub.f32 %v6914_v41, %v7118_v24 }
 0x59d   : > { %2079 = vadd.xlane.f32.xlu2 %v2078_v54  ;;  %v2831_v29 = vunpack.c.l.b16 %v2807_v51 }
 0x59e   : > { %v4755_v44 = vpop.eup %4754  ;;  %v2720_v26 = vmul.f32 1.442695, %v2689_v11 }
 0x59f   : > { %v2664_v30 = vpop.xlane.xlu2 %2663  ;;  %v1490_v43 = vmul.f32 %v4755_v44, %v6917_v1  ;;  %v7136_v6 = vpop.eup %4756  ;;  %v2836_v8 = vpack.c.b16 %v2831_v29, %v2830_v19 }
 0x5a0   : > { %v2686_v20 = vsub.f32 %v6939_v46, %v2664_v30  ;;  %v7138_v46 = vpop.xlane.xlu0 %3412  ;;  %v2755_v25 = vsel %vm1317_vm4, %v7136_v6, 0.0  ;;  %v4759_v16 = vpop.eup %4758  ;;  %v3392_v30 = vmul.f32 1.442695, %v3368_v53 }
 0x5a1   : > { %v1506_v31 = vpack.c.bf16 %v1490_v43, %v1490_v43  ;;  %v7146_v63 = vpop.eup %4760  ;;  %v1493_v13 = vmul.f32 %v4759_v16, %v7835_v23 }
 0x5a2   : > { %v2714_v10 = vmul.f32 1.442695, %v2686_v20  ;;  %v2746_v51 = vsel %vm1317_vm4, %v7146_v63, 0.0 }
 0x5a3   : > { %v1595_v1 = vunpack.c.l.b16 %v1506_v31  ;;  %v1509_v35 = vpack.c.bf16 %v1493_v13, %v1493_v13 }
 0x5a4   : > { %4762 = vpow2.f32 %v2714_v10 }
 0x5a5   : > { %3346 = vmax.xlane.f32.xlu2 %v3345_v17  ;;  %v1601_v33 = vpack.c.b16 %v1596_v45, %v1595_v1  ;;  %4764 = vpow2.f32 %v2718_v39  ;;  %v1598_v10 = vunpack.c.l.b16 %v1509_v35 }
 0x5a7   : > { %v1458_v42 = vpop.xlane.xlu2 %1457  ;;  %4157 = vmatmul.msk.bf16.gmra.mxu3 %vm1317_vm4, %v1601_v33  ;;  %4249 = vmatmul.msk.bf16.gmra.mxu0 %vm1317_vm4, %v2836_v8 }
 0x5a8   : > { %4766 = vrcp.f32 %v1458_v42  ;;  %2756 = vadd.xlane.f32.xlu0 %v2755_v25  ;;  %v7837_v25 = vld [vmem:[#allocation36_spill] sm:$0xff] }
 0x5a9   : > { %4768 = vpow2.f32 %v2716_v2 }
 0x5aa   : > { %v7149_v54 = vpop.eup %4762  ;;  %4770 = vrcp.f32 %v7097_v40  ;;  %v2071_v40 = vpop.xlane.xlu0 %2070 }
 0x5ab   : > { %4772 = vpow2.f32 %v3390_v50  ;;  %v2758_v44 = vsel %vm1317_vm4, %v7149_v54, 0.0  ;;  %v7157_v49 = vpop.eup %4764 }
 0x5ac   : > { %2759 = vadd.xlane.f32.xlu1 %v2758_v44  ;;  %4774 = vrcp.f32 %v2062_v58  ;;  %v2764_v24 = vsel %vm1317_vm4, %v7157_v49, 0.0 }
 0x5ad   : > { %2747 = vadd.xlane.f32.xlu2 %v2746_v51 }
 0x5ae   : > { %v4767_v43 = vpop.eup %4766 }
 0x5af   : > { %v7161_v20 = vpop.eup %4768  ;;  %v2745_v41 = vpop.xlane.xlu2 %2744  ;;  %v1492_v32 = vmul.f32 %v4767_v43, %v6957_v34 }
 0x5b0   : > { %v4771_v55 = vpop.eup %4770  ;;  %4776 = vrcp.f32 %v2745_v41  ;;  %2765 = vadd.xlane.f32.xlu0 %v2764_v24  ;;  %v2761_v58 = vsel %vm1317_vm4, %v7161_v20, 0.0  ;;  %v7187_v41 = vpop.f32.mrf.mxu0 }
 0x5b1   : > { %v7166_v19 = vpop.eup %4772  ;;  %4778 = vpow2.f32 %v3392_v30  ;;  %v1508_v31 = vpack.c.bf16 %v1492_v32, %v1492_v32  ;;  %v2792_v18 = vmul.f32 %v4771_v55, %v7836_v36 }
 0x5b2   : > { %4780 = vpow2.f32 %v2720_v26  ;;  %v3429_v34 = vsel %vm1317_vm4, %v7166_v19, 0.0  ;;  %v4775_v29 = vpop.eup %4774  ;;  %v2077_v50 = vpop.xlane.xlu0 %2076 }
 0x5b3   : > { %v1597_v39 = vunpack.c.l.b16 %v1508_v31  ;;  %v2808_v2 = vpack.c.bf16 %v2792_v18, %v2792_v18  ;;  %v2108_v16 = vmul.f32 %v4775_v29, %v7837_v25  ;;  %v4873_v31 = vld [vmem:[#allocation2 + $0x20] sm:$0xff] }
 0x5b4   : > { %2762 = vadd.xlane.f32.xlu1 %v2761_v58 }
 0x5b5   : > { %3430 = vadd.xlane.f32.xlu2 %v3429_v34  ;;  %v1602_v1 = vpack.c.b16 %v1598_v10, %v1597_v39  ;;  %v2832_v56 = vunpack.c.l.b16 %v2808_v2  ;;  %v2124_v13 = vpack.c.bf16 %v2108_v16, %v2108_v16 }
 0x5b6   : > { %v4777_v45 = vpop.eup %4776 }
 0x5b7   : > { %v7173_v17 = vpop.eup %4778  ;;  %v2793_v33 = vmul.f32 %v4777_v45, %v6971_v59  ;;  %v2065_v8 = vpop.xlane.xlu2 %2064  ;;  %4158 = vmatmul.msk.bf16.gmra.mxu3 %vm1317_vm4, %v1602_v1  ;;  %v2213_v35 = vunpack.c.l.b16 %v2124_v13 }
 0x5b8   : > { %v7177_v22 = vpop.eup %4780  ;;  %4782 = vrcp.f32 %v2065_v8  ;;  %v3432_v44 = vsel %vm1317_vm4, %v7173_v17, 0.0  ;;  %v7201_v1 = vpop.f32.mrf.mxu0  ;;  %v7838_v8 = vld [vmem:[#allocation34_spill] sm:$0xff] }
 0x5b9   : > { %v2809_v42 = vpack.c.bf16 %v2793_v33, %v2793_v33  ;;  %v2767_v11 = vsel %vm1317_vm4, %v7177_v22, 0.0  ;;  %4784 = vrcp.f32 %v2071_v40 }
 0x5ba   : > { %v7189_v24 = vpop.xlane.xlu0 %3421  ;;  %4786 = vrcp.f32 %v7138_v46 }
 0x5bb   : > { %v2833_v53 = vunpack.c.l.b16 %v2809_v42 }
 0x5bc   : > { %2768 = vadd.xlane.f32.xlu1 %v2767_v11 }
 0x5bd   : > { %3433 = vadd.xlane.f32.xlu2 %v3432_v44  ;;  %v2837_v59 = vpack.c.b16 %v2833_v53, %v2832_v56 }
 0x5be   : > { %v4783_v23 = vpop.eup %4782 }
 0x5bf   : > { %v2109_v51 = vmul.f32 %v4783_v23, %v6992_v57  ;;  %v3341_v30 = vpop.xlane.xlu2 %3340  ;;  %4250 = vmatmul.msk.bf16.gmra.mxu0 %vm1317_vm4, %v2837_v59  ;;  %v3416_v57 = vpop.xlane.xlu1 %3415 }
 0x5c0   : > { %v3369_v43 = vsub.f32 %v7016_v15, %v3341_v30  ;;  %v4785_v18 = vpop.eup %4784 }
 0x5c1   : > { %v2125_v26 = vpack.c.bf16 %v2109_v51, %v2109_v51  ;;  %v4787_v58 = vpop.eup %4786  ;;  %v2111_v34 = vmul.f32 %v4785_v18, %v6951_v48  ;;  %v4874_v51 = vld [vmem:[#allocation2 + $0x30] sm:$0xff] }
 0x5c2   : > { %v3394_v32 = vmul.f32 1.442695, %v3369_v43  ;;  %v3473_v45 = vmul.f32 %v4787_v58, %v6934_v27 }
 0x5c3   : > { %v2214_v55 = vunpack.c.l.b16 %v2125_v26  ;;  %v2127_v56 = vpack.c.bf16 %v2111_v34, %v2111_v34 }
 0x5c4   : > { %4788 = vpow2.f32 %v3394_v32  ;;  %3597 = vrot.lane.b32.xlu0 %v4873_v31, %s5180_s18  ;;  %v3489_v11 = vpack.c.bf16 %v3473_v45, %v3473_v45  ;;  %v7840_v45 = vld [vmem:[#allocation40_spill] sm:$0xff] }
 0x5c5   : > { %v2221_v36 = vpack.c.b16 %v2214_v55, %v2213_v35  ;;  %4790 = vrcp.f32 %v7109_v52  ;;  %v7203_v52 = vpop.xlane.xlu0 %3349  ;;  %v2216_v13 = vunpack.c.l.b16 %v2127_v56 }
 0x5c6   : > { %v3513_v27 = vunpack.c.l.b16 %v3489_v11 }
 0x5c7   : > { %v2068_v15 = vpop.xlane.xlu2 %2067  ;;  %4203 = vmatmul.msk.bf16.vlgmr.msra.gmra.mxu3 %vm1317_vm4, %v2221_v36  ;;  %v3419_v2 = vpop.xlane.xlu1 %3418 }
 0x5c8   : > { %4792 = vrcp.f32 %v2068_v15  ;;  %v1568_v40 = vpop.f32.mrf.mxu3 }
 0x5c9   : > { %v1658_v39 = vpack.c.bf16 %v1568_v40, %v1568_v40 }
 0x5ca   : > { %v7195_v10 = vpop.eup %4788 }
 0x5cb   : > { %1675 = vst.msk [vmem:[#allocation3 + $0x8] sm:$0xf] %vm1672_vm8, %v1658_v39  ;;  %v3435_v46 = vsel %vm1317_vm4, %v7195_v10, 0.0  ;;  %v4791_v29 = vpop.eup %4790  ;;  %v7839_v39 = vld [vmem:[#allocation49_spill] sm:$0xff] }
 0x5cc   : > { %3436 = vadd.xlane.f32.xlu1 %v3435_v46  ;;  %v3472_v42 = vmul.f32 %v4791_v29, %v7838_v8 }
 0x5cd   : > { %v7212_v26 = vpop.xlane.xlu0 %3427 }
 0x5ce   : > { %v4793_v33 = vpop.eup %4792  ;;  %v3488_v59 = vpack.c.bf16 %v3472_v42, %v3472_v42 }
 0x5cf   : > { %v2074_v25 = vpop.xlane.xlu2 %2073  ;;  %v2110_v16 = vmul.f32 %v4793_v33, %v7036_v62  ;;  %v7210_v62 = vpop.f32.mrf.mxu0 }
 0x5d0   : > { %4794 = vrcp.f32 %v2074_v25  ;;  %v1570_v53 = vpop.f32.mrf.mxu3  ;;  %v3512_v32 = vunpack.c.l.b16 %v3488_v59  ;;  %v3344_v35 = vpop.xlane.xlu1 %3343 }
 0x5d1   : > { %v1659_v48 = vpack.c.bf16 %v1570_v53, %v1570_v53  ;;  %v2126_v44 = vpack.c.bf16 %v2110_v16, %v2110_v16  ;;  %4796 = vrcp.f32 %v2077_v50 }
 0x5d2   : > { %4798 = vrcp.f32 %v3419_v2  ;;  %v3520_v36 = vpack.c.b16 %v3513_v27, %v3512_v32 }
 0x5d3   : > { %1676 = vst.msk [vmem:[#allocation3 + $0xc] sm:$0xf] %vm1672_vm8, %v1659_v48  ;;  %v2215_v23 = vunpack.c.l.b16 %v2126_v44  ;;  %4800 = vrcp.f32 %v3416_v57  ;;  %v4875_v48 = vld [vmem:[#allocation2 + $0x28] sm:$0xff] }
 0x5d5   : > { %3601 = vrot.lane.b32.xlu2 %v4874_v51, %s5180_s18  ;;  %v2222_v30 = vpack.c.b16 %v2216_v13, %v2215_v23  ;;  %v7220_v29 = vpop.xlane.xlu0 %2082 }
 0x5d6   : > { %v4795_v43 = vpop.eup %4794 }
 0x5d7   : > { %v3525_v50 = vpop.permute.xlu2 %3524  ;;  %4204 = vmatmul.msk.bf16.gmra.mxu3 %vm1317_vm4, %v2222_v30  ;;  %v4797_v55 = vpop.eup %4796  ;;  %v2112_v18 = vmul.f32 %v4795_v43, %v7053_v61 }
 0x5d8   : > { %v1573_v31 = vpop.f32.mrf.mxu3  ;;  %3555 = vmatpush.bf16.msrb.mxu0 %v3525_v50  ;;  %v4799_v40 = vpop.eup %4798  ;;  %v2113_v57 = vmul.f32 %v4797_v55, %v6968_v37  ;;  %v3370_v50 = vsub.f32 %v6989_v21, %v3344_v35 }
 0x5d9   : > { %v1660_v15 = vpack.c.bf16 %v1573_v31, %v1573_v31  ;;  %v4801_v58 = vpop.eup %4800  ;;  %v3475_v46 = vmul.f32 %v4799_v40, %v7839_v39  ;;  %v2128_v34 = vpack.c.bf16 %v2112_v18, %v2112_v18  ;;  %v7223_v8 = vpop.f32.mrf.mxu0 }
 0x5da   : > { %v3474_v2 = vmul.f32 %v4801_v58, %v7840_v45  ;;  %v2129_v33 = vpack.c.bf16 %v2113_v57, %v2113_v57  ;;  %v3425_v25 = vpop.xlane.xlu1 %3424  ;;  %v3396_v31 = vmul.f32 1.442695, %v3370_v50 }
 0x5db   : > { %1677 = vst.msk [vmem:[#allocation3 + $0x10] sm:$0xf] %vm1672_vm8, %v1660_v15  ;;  %4295 = vmatmul.msk.bf16.vlgmr.msrb.gmra.mxu0 %vm1317_vm4, %v3520_v36  ;;  %v3491_v61 = vpack.c.bf16 %v3475_v46, %v3475_v46  ;;  %v2217_v56 = vunpack.c.l.b16 %v2128_v34  ;;  %4802 = vrcp.f32 %v3425_v25 }
 0x5dc   : > { %v3490_v53 = vpack.c.bf16 %v3474_v2, %v3474_v2  ;;  %v2218_v37 = vunpack.c.l.b16 %v2129_v33  ;;  %4804 = vrcp.f32 %v7189_v24 }
 0x5dd   : > { %v3515_v11 = vunpack.c.l.b16 %v3491_v61  ;;  %v3359_v23 = vpop.xlane.xlu0 %3358  ;;  %4806 = vpow2.f32 %v3396_v31 }
 0x5de   : > { %v2223_v44 = vpack.c.b16 %v2218_v37, %v2217_v56  ;;  %v3514_v59 = vunpack.c.l.b16 %v3490_v53  ;;  %v3375_v53 = vsub.f32 %v7073_v7, %v3359_v23 }
 0x5e0   : > { %v1575_v42 = vpop.f32.mrf.mxu3  ;;  %v3521_v51 = vpack.c.b16 %v3515_v11, %v3514_v59 }
 0x5e1   : > { %v1661_v16 = vpack.c.bf16 %v1575_v42, %v1575_v42  ;;  %v4803_v30 = vpop.eup %4802  ;;  %v7229_v43 = vpop.f32.mrf.mxu0  ;;  %v3372_v42 = vsub.f32 %v7009_v5, %v7203_v52  ;;  %v3406_v52 = vmul.f32 1.442695, %v3375_v53 }
 0x5e2   : > { %v4805_v32 = vpop.eup %4804  ;;  %v3477_v55 = vmul.f32 %v4803_v30, %v7011_v60  ;;  %v3353_v40 = vpop.xlane.xlu1 %3352 }
 0x5e3   : > { %1678 = vst.msk [vmem:[#allocation3 + $0x14] sm:$0xf] %vm1672_vm8, %v1661_v16  ;;  %v3476_v24 = vmul.f32 %v4805_v32, %v6986_v14  ;;  %v3373_v39 = vsub.f32 %v7034_v3, %v3353_v40  ;;  %v7240_v14 = vpop.eup %4806  ;;  %v3400_v61 = vmul.f32 1.442695, %v3372_v42 }
 0x5e4   : > { %v3493_v18 = vpack.c.bf16 %v3477_v55, %v3477_v55  ;;  %v3438_v3 = vsel %vm1317_vm4, %v7240_v14, 0.0 }
 0x5e5   : > { %3599 = vrot.lane.b32.xlu1 %v4875_v48, %s5180_s18  ;;  %v3492_v58 = vpack.c.bf16 %v3476_v24, %v3476_v24  ;;  %v3402_v60 = vmul.f32 1.442695, %v3373_v39  ;;  %v2278_v39 = vpack.c.bf16 %v7187_v41, %v7187_v41  ;;  %s3930_s18 = sshll.u32 %s3927_s0, 4  ;;  %s3931_s18 = int_to_ptr.hbm [resolvable:$true] %s3930_s18 }
 0x5e6   : > { %v3517_v21 = vunpack.c.l.b16 %v3493_v18 }
 0x5e7   : > { %4205 = vmatmul.msk.bf16.gmra.mxu3 %vm1317_vm4, %v2223_v44  ;;  %v3516_v35 = vunpack.c.l.b16 %v3492_v58  ;;  %4808 = vpow2.f32 %v3402_v60 }
 0x5e8   : > { %v1578_v13 = vpop.f32.mrf.mxu3  ;;  %4810 = vpow2.f32 %v3400_v61 }
 0x5e9   : > { %v1662_v27 = vpack.c.bf16 %v1578_v13, %v1578_v13  ;;  %v7238_v46 = vpop.f32.mrf.mxu0  ;;  %v3522_v34 = vpack.c.b16 %v3517_v21, %v3516_v35  ;;  %4812 = vrcp.f32 %v7220_v29 }
 0x5ea   : > { %v3356_v59 = vpop.xlane.xlu1 %3355  ;;  %4814 = vpow2.f32 %v3406_v52 }
 0x5eb   : > { %1679 = vst.msk [vmem:[#allocation3 + $0x18] sm:$0xf] %vm1672_vm8, %v1662_v27  ;;  %4296 = vmatmul.msk.bf16.gmra.mxu0 %vm1317_vm4, %v3521_v51  ;;  %v3374_v58 = vsub.f32 %v7050_v47, %v3356_v59 }
 0x5ed   : > { %v7250_v25 = vpop.eup %4808 }
 0x5ee   : > { %v3447_v37 = vsel %vm1317_vm4, %v7250_v25, 0.0  ;;  %v7258_v48 = vpop.eup %4810 }
 0x5ef   : > { %v3444_v23 = vsel %vm1317_vm4, %v7258_v48, 0.0  ;;  %v4813_v27 = vpop.eup %4812 }
 0x5f0   : > { %v1580_v36 = vpop.f32.mrf.mxu3  ;;  %v3604_v15 = vpop.permute.xlu0 %3603  ;;  %v2115_v29 = vmul.f32 %v4813_v27, %v7064_v9 }
 0x5f1   : > { %v1663_v57 = vpack.c.bf16 %v1580_v36, %v1580_v36  ;;  %3625 = vmatpush.bf16.msra.mxu3 %v3604_v15  ;;  %v7243_v33 = vpop.f32.mrf.mxu0  ;;  %v7266_v30 = vpop.eup %4814 }
 0x5f2   : > { %v3453_v50 = vsel %vm1317_vm4, %v7266_v30, 0.0  ;;  %v2751_v24 = vpop.xlane.xlu1 %2750  ;;  %v2131_v18 = vpack.c.bf16 %v2115_v29, %v2115_v29 }
 0x5f3   : > { %1680 = vst.msk [vmem:[#allocation3 + $0x1c] sm:$0xf] %vm1672_vm8, %v1663_v57 }
 0x5f4   : > { %v2220_v35 = vunpack.c.l.b16 %v2131_v18 }
 0x5f9   : > { %v7256_v5 = vpop.f32.mrf.mxu0 }
 0x5fa   : > { %v1636_v45 = vpop.f32.mrf.mxu3 }
 0x5fb   : > { %v1664_v2 = vpack.c.bf16 %v1636_v45, %v1636_v45  ;;  %4297 = vmatmul.msk.bf16.gmra.mxu0 %vm1317_vm4, %v3522_v34  ;;  %v3404_v34 = vmul.f32 1.442695, %v3374_v58 }
 0x5fd   : > { %1681 = vst.msk [vmem:[#allocation3 + $0x20] sm:$0xf] %vm1672_vm8, %v1664_v2 }
 0x5fe   : > { %3439 = vadd.xlane.f32.xlu2 %v3438_v3 }
 0x5ff   : > { %v2754_v2 = vpop.xlane.xlu1 %2753 }
 0x601   : > { %v7262_v7 = vpop.f32.mrf.mxu0 }
 0x602   : > { %v1638_v16 = vpop.f32.mrf.mxu3 }
 0x603   : > { %v1665_v56 = vpack.c.bf16 %v1638_v16, %v1638_v16 }
 0x605   : > { %1682 = vst.msk [vmem:[#allocation3 + $0x24] sm:$0xf] %vm1672_vm8, %v1665_v56 }
 0x606   : > { %3448 = vadd.xlane.f32.xlu2 %v3447_v37 }
 0x609   : > { %v7272_v31 = vpop.f32.mrf.mxu0 }
 0x60a   : > { %v1641_v11 = vpop.f32.mrf.mxu3 }
 0x60b   : > { %v1666_v44 = vpack.c.bf16 %v1641_v11, %v1641_v11 }
 0x60d   : > { %1683 = vst.msk [vmem:[#allocation3 + $0x28] sm:$0xf] %vm1672_vm8, %v1666_v44 }
 0x60f   : > { %3445 = vadd.xlane.f32.xlu1 %v3444_v23 }
 0x610   : > { %v2080_v13 = vpop.xlane.xlu2 %2079 }
 0x611   : > { %4816 = vrcp.f32 %v2080_v13 }
 0x612   : > { %v1643_v51 = vpop.f32.mrf.mxu3  ;;  %4818 = vrcp.f32 %v2751_v24 }
 0x613   : > { %v1667_v32 = vpack.c.bf16 %v1643_v51, %v1643_v51 }
 0x615   : > { %1684 = vst.msk [vmem:[#allocation3 + $0x2c] sm:$0xf] %vm1672_vm8, %v1667_v32  ;;  %v2964_v32 = vpack.c.bf16 %v7262_v7, %v7262_v7 }
 0x617   : > { %v4817_v55 = vpop.eup %4816  ;;  %3454 = vadd.xlane.f32.xlu1 %v3453_v50 }
 0x618   : > { %v3347_v36 = vpop.xlane.xlu2 %3346  ;;  %v2114_v15 = vmul.f32 %v4817_v55, %v7115_v38  ;;  %v7280_v38 = vpop.f32.mrf.mxu0 }
 0x619   : > { %v3371_v40 = vsub.f32 %v7130_v4, %v3347_v36  ;;  %v4819_v4 = vpop.eup %4818 }
 0x61a   : > { %v2130_v57 = vpack.c.bf16 %v2114_v15, %v2114_v15  ;;  %v2795_v41 = vmul.f32 %v4819_v4, %v7060_v12 }
 0x61b   : > { %v3398_v9 = vmul.f32 1.442695, %v3371_v40  ;;  %v2757_v3 = vpop.xlane.xlu0 %2756 }
 0x61c   : > { %v2219_v21 = vunpack.c.l.b16 %v2130_v57  ;;  %v2811_v56 = vpack.c.bf16 %v2795_v41, %v2795_v41 }
 0x61d   : > { %4820 = vpow2.f32 %v3398_v9 }
 0x61e   : > { %2310 = vrot.lane.b32.xlu2 %v2278_v39, %s5181_s22  ;;  %v2224_v60 = vpack.c.b16 %v2220_v35, %v2219_v21  ;;  %v2900_v23 = vunpack.c.l.b16 %v2811_v56 }
 0x61f   : > { %v2760_v13 = vpop.xlane.xlu1 %2759 }
 0x620   : > { %v2748_v45 = vpop.xlane.xlu2 %2747  ;;  %4206 = vmatmul.msk.bf16.gmra.mxu3 %vm1317_vm4, %v2224_v60 }
 0x621   : > { %4822 = vrcp.f32 %v2748_v45 }
 0x622   : > { %4824 = vrcp.f32 %v7212_v26  ;;  %v7292_v26 = vpop.f32.mrf.mxu0 }
 0x623   : > { %v7284_v47 = vpop.eup %4820  ;;  %4826 = vpow2.f32 %v3404_v34 }
 0x624   : > { %v3441_v42 = vsel %vm1317_vm4, %v7284_v47, 0.0  ;;  %4828 = vrcp.f32 %v2757_v3  ;;  %v2279_v3 = vpack.c.bf16 %v7201_v1, %v7201_v1  ;;  %v2965_v1 = vpack.c.bf16 %v7272_v31, %v7272_v31 }
 0x625   : > { %3442 = vadd.xlane.f32.xlu0 %v3441_v42 }
 0x627   : > { %v4823_v61 = vpop.eup %4822  ;;  %v2763_v21 = vpop.xlane.xlu1 %2762 }
 0x628   : > { %v4825_v16 = vpop.eup %4824  ;;  %v2794_v53 = vmul.f32 %v4823_v61, %v7146_v63  ;;  %v3431_v37 = vpop.xlane.xlu2 %3430 }
 0x629   : > { %v7290_v52 = vpop.eup %4826  ;;  %4830 = vrcp.f32 %v3431_v37  ;;  %v3478_v59 = vmul.f32 %v4825_v16, %v7031_v28 }
 0x62a   : > { %v2810_v11 = vpack.c.bf16 %v2794_v53, %v2794_v53  ;;  %v1646_v12 = vpop.f32.mrf.mxu3  ;;  %4832 = vrcp.f32 %v2754_v2  ;;  %v3450_v51 = vsel %vm1317_vm4, %v7290_v52, 0.0  ;;  %v4829_v63 = vpop.eup %4828 }
 0x62b   : > { %v1668_v44 = vpack.c.bf16 %v1646_v12, %v1646_v12  ;;  %v3494_v55 = vpack.c.bf16 %v3478_v59, %v3478_v59  ;;  %v2797_v15 = vmul.f32 %v4829_v63, %v7136_v6  ;;  %v7307_v9 = vpop.f32.mrf.mxu0  ;;  %4834 = vrcp.f32 %v2763_v21 }
 0x62c   : > { %v2899_v27 = vunpack.c.l.b16 %v2810_v11  ;;  %4836 = vrcp.f32 %v2760_v13 }
 0x62d   : > { %1685 = vst.msk [vmem:[#allocation3 + $0x30] sm:$0xf] %vm1672_vm8, %v1668_v44  ;;  %3451 = vadd.xlane.f32.xlu0 %v3450_v51  ;;  %v3518_v58 = vunpack.c.l.b16 %v3494_v55 }
 0x62e   : > { %v2907_v29 = vpack.c.b16 %v2900_v23, %v2899_v27  ;;  %v2766_v23 = vpop.xlane.xlu0 %2765 }
 0x62f   : > { %v4831_v50 = vpop.eup %4830  ;;  %v2769_v12 = vpop.xlane.xlu1 %2768 }
 0x630   : > { %v3479_v24 = vmul.f32 %v4831_v50, %v7166_v19  ;;  %v7301_v36 = vpop.xlane.xlu2 %3433  ;;  %4251 = vmatmul.msk.bf16.vlgmr.msrb.gmra.mxu3 %vm1317_vm4, %v2907_v29  ;;  %2996 = vrot.lane.b32.xlu1 %v2964_v32, %s5182_s24  ;;  %v4833_v28 = vpop.eup %4832  ;;  %v2813_v19 = vpack.c.bf16 %v2797_v15, %v2797_v15  ;;  %4838 = vrcp.f32 %v2769_v12 }
 0x631   : > { %v2796_v7 = vmul.f32 %v4833_v28, %v7100_v0  ;;  %v4835_v42 = vpop.eup %4834  ;;  %4840 = vrcp.f32 %v2766_v23 }
 0x632   : > { %v3495_v18 = vpack.c.bf16 %v3479_v24, %v3479_v24  ;;  %v1648_v40 = vpop.f32.mrf.mxu3  ;;  %v2902_v6 = vunpack.c.l.b16 %v2813_v19  ;;  %v4837_v61 = vpop.eup %4836  ;;  %v2799_v16 = vmul.f32 %v4835_v42, %v7161_v20  ;;  %v2967_v24 = vpack.c.bf16 %v7292_v26, %v7292_v26 }
 0x633   : > { %v1669_v57 = vpack.c.bf16 %v1648_v40, %v1648_v40  ;;  %v2812_v60 = vpack.c.bf16 %v2796_v7, %v2796_v7  ;;  %v7312_v0 = vpop.f32.mrf.mxu0  ;;  %v2798_v37 = vmul.f32 %v4837_v61, %v7149_v54  ;;  %v2280_v54 = vpack.c.bf16 %v7210_v62, %v7210_v62 }
 0x634   : > { %v3519_v39 = vunpack.c.l.b16 %v3495_v18  ;;  %v2815_v11 = vpack.c.bf16 %v2799_v16, %v2799_v16  ;;  %v2282_v26 = vpack.c.bf16 %v7229_v43, %v7229_v43  ;;  %v2281_v19 = vpack.c.bf16 %v7223_v8, %v7223_v8 }
 0x635   : > { %1686 = vst.msk [vmem:[#allocation3 + $0x34] sm:$0xf] %vm1672_vm8, %v1669_v57  ;;  %v2901_v41 = vunpack.c.l.b16 %v2812_v60  ;;  %v2814_v59 = vpack.c.bf16 %v2798_v37, %v2798_v37  ;;  %v2969_v43 = vpack.c.bf16 %v7312_v0, %v7312_v0  ;;  %v2966_v8 = vpack.c.bf16 %v7280_v38, %v7280_v38 }
 0x636   : > { %v3523_v35 = vpack.c.b16 %v3519_v39, %v3518_v58  ;;  %v2904_v13 = vunpack.c.l.b16 %v2815_v11  ;;  %v4839_v51 = vpop.eup %4838  ;;  %v3598_v57 = vpop.permute.xlu0 %3597  ;;  %v2283_v38 = vpack.c.bf16 %v7238_v46, %v7238_v46 }
 0x637   : > { %v2908_v2 = vpack.c.b16 %v2902_v6, %v2901_v41  ;;  %v2903_v20 = vunpack.c.l.b16 %v2814_v59  ;;  %v4841_v29 = vpop.eup %4840  ;;  %v2801_v31 = vmul.f32 %v4839_v51, %v7177_v22 }
 0x638   : > { %v3602_v34 = vpop.permute.xlu2 %3601  ;;  %4298 = vmatmul.msk.bf16.gmra.mxu0 %vm1317_vm4, %v3523_v35  ;;  %v2800_v50 = vmul.f32 %v4841_v29, %v7157_v49 }
 0x639   : > { %3626 = vmatpush.bf16.msra.mxu3 %v3602_v34  ;;  %v2909_v27 = vpack.c.b16 %v2904_v13, %v2903_v20  ;;  %v2817_v55 = vpack.c.bf16 %v2801_v31, %v2801_v31 }
 0x63a   : > { %v1651_v45 = vpop.f32.mrf.mxu3  ;;  %v2816_v15 = vpack.c.bf16 %v2800_v50, %v2800_v50 }
 0x63b   : > { %v1670_v4 = vpack.c.bf16 %v1651_v45, %v1651_v45  ;;  %v2906_v40 = vunpack.c.l.b16 %v2817_v55 }
 0x63c   : > { %v7321_v44 = vpop.f32.mrf.mxu0  ;;  %v2905_v49 = vunpack.c.l.b16 %v2816_v15 }
 0x63d   : > { %1687 = vst.msk [vmem:[#allocation3 + $0x38] sm:$0xf] %vm1672_vm8, %v1670_v4  ;;  %v2970_v13 = vpack.c.bf16 %v7321_v44, %v7321_v44 }
 0x63e   : > { %v2910_v22 = vpack.c.b16 %v2906_v40, %v2905_v49 }
 0x63f   : > { %v3437_v63 = vpop.xlane.xlu1 %3436 }
 0x640   : > { %4252 = vmatmul.msk.bf16.gmra.mxu3 %vm1317_vm4, %v2908_v2  ;;  %4842 = vrcp.f32 %v3437_v63  ;;  %v2284_v2 = vpack.c.bf16 %v7243_v33, %v7243_v33 }
 0x641   : > { %2312 = vrot.lane.b32.xlu0 %v2279_v3, %s5181_s22  ;;  %4844 = vrcp.f32 %v7301_v36 }
 0x642   : > { %v1653_v56 = vpop.f32.mrf.mxu3 }
 0x643   : > { %v1671_v53 = vpack.c.bf16 %v1653_v56, %v1653_v56  ;;  %v2968_v56 = vpack.c.bf16 %v7307_v9, %v7307_v9 }
 0x644   : > { %v7328_v32 = vpop.f32.mrf.mxu0 }
 0x645   : > { %1688 = vst.msk [vmem:[#allocation3 + $0x3c] sm:$0xf] %vm1672_vm8, %v1671_v53  ;;  %v2971_v16 = vpack.c.bf16 %v7328_v32, %v7328_v32 }
 0x646   : > { %v4843_v58 = vpop.eup %4842 }
 0x647   : > { %v4845_v39 = vpop.eup %4844  ;;  %v3481_v36 = vmul.f32 %v4843_v58, %v7195_v10 }
 0x648   : > { %v3480_v35 = vmul.f32 %v4845_v39, %v7173_v17 }
 0x649   : > { %2998 = vrot.lane.b32.xlu0 %v2965_v1, %s5182_s24  ;;  %v3497_v60 = vpack.c.bf16 %v3481_v36, %v3481_v36  ;;  %v2285_v1 = vpack.c.bf16 %v7256_v5, %v7256_v5 }
 0x64a   : > { %v3496_v34 = vpack.c.bf16 %v3480_v35, %v3480_v35  ;;  %v2258_v45 = vpop.f32.mrf.mxu3 }
 0x64b   : > { %v3586_v10 = vunpack.c.l.b16 %v3497_v60  ;;  %v2286_v11 = vpack.c.bf16 %v2258_v45, %v2258_v45  ;;  %v4404_v60 = vld [vmem:[#allocation12 + $0x8] sm:$0xff] }
 0x64c   : > { %v3585_v41 = vunpack.c.l.b16 %v3496_v34  ;;  %3853 = vmatpush.bf16.msrb.mxu1 %v4404_v60 }
 0x64e   : > { %v3593_v17 = vpack.c.b16 %v3586_v10, %v3585_v41  ;;  %v4403_v10 = vld [vmem:[#allocation12] sm:$0xff] }
 0x650   : > { %4253 = vmatmul.msk.bf16.gmra.mxu3 %vm1317_vm4, %v2909_v27  ;;  %3854 = vmatpush.bf16.msrb.mxu1 %v4403_v10 }
 0x651   : > { %2314 = vrot.lane.b32.xlu0 %v2280_v54, %s5181_s22 }
 0x652   : > { %v7362_v61 = vpop.f32.mrf.mxu3 }
 0x657   : > { %v3600_v28 = vpop.permute.xlu1 %3599 }
 0x658   : > { %v3557_v18 = vpop.f32.mrf.mxu0  ;;  %3627 = vmatpush.bf16.msra.mxu3 %v3600_v28 }
 0x659   : > { %v3650_v62 = vpack.c.bf16 %v3557_v18, %v3557_v18  ;;  %3002 = vrot.lane.b32.xlu0 %v2967_v24, %s5182_s24 }
 0x65a   : > { %v7373_v46 = vpop.f32.mrf.mxu3 }
 0x65b   : > { %3682 = vrot.lane.b32.xlu2 %v3650_v62, %s5183_s20 }
 0x65c   : > { %3628 = vmatpush.bf16.msra.mxu3 %v3598_v57 }
 0x660   : > { %4254 = vmatmul.msk.bf16.gmra.mxu3 %vm1317_vm4, %v2910_v22  ;;  %v3559_v7 = vpop.f32.mrf.mxu0 }
 0x661   : > { %v3651_v21 = vpack.c.bf16 %v3559_v7, %v3559_v7  ;;  %2318 = vrot.lane.b32.xlu0 %v2282_v26, %s5181_s22 }
 0x662   : > { %v7381_v9 = vpop.f32.mrf.mxu3 }
 0x663   : > { %2316 = vrot.lane.b32.xlu2 %v2281_v19, %s5181_s22  ;;  %3684 = vrot.lane.b32.xlu1 %v3651_v21, %s5183_s20 }
 0x668   : > { %v3562_v6 = vpop.f32.mrf.mxu0 }
 0x669   : > { %v3652_v4 = vpack.c.bf16 %v3562_v6, %v3562_v6  ;;  %3006 = vrot.lane.b32.xlu0 %v2969_v43, %s5182_s24 }
 0x66a   : > { %v7386_v27 = vpop.f32.mrf.mxu3 }
 0x66b   : > { %3686 = vrot.lane.b32.xlu2 %v3652_v4, %s5183_s20  ;;  %3000 = vrot.lane.b32.xlu1 %v2966_v8, %s5182_s24 }
 0x670   : > { %v3564_v0 = vpop.f32.mrf.mxu0  ;;  %4299 = vmatmul.msk.bf16.vlgmr.msra.gmra.mxu3 %vm1317_vm4, %v3593_v17 }
 0x671   : > { %v3653_v42 = vpack.c.bf16 %v3564_v0, %v3564_v0  ;;  %v3440_v3 = vpop.xlane.xlu2 %3439  ;;  %2322 = vrot.lane.b32.xlu0 %v2284_v2, %s5181_s22  ;;  %v2287_v2 = vpack.c.bf16 %v7362_v61, %v7362_v61 }
 0x672   : > { %4846 = vrcp.f32 %v3440_v3  ;;  %v7388_v63 = vpop.f32.mrf.mxu3 }
 0x673   : > { %2320 = vrot.lane.b32.xlu2 %v2283_v38, %s5181_s22  ;;  %3688 = vrot.lane.b32.xlu1 %v3653_v42, %s5183_s20 }
 0x678   : > { %v3567_v33 = vpop.f32.mrf.mxu0  ;;  %v4847_v51 = vpop.eup %4846 }
 0x679   : > { %v3654_v53 = vpack.c.bf16 %v3567_v33, %v3567_v33  ;;  %v3449_v37 = vpop.xlane.xlu2 %3448  ;;  %3010 = vrot.lane.b32.xlu0 %v2971_v16, %s5182_s24  ;;  %v3482_v32 = vmul.f32 %v4847_v51, %v7240_v14  ;;  %v2288_v16 = vpack.c.bf16 %v7373_v46, %v7373_v46 }
 0x67b   : > { %3690 = vrot.lane.b32.xlu2 %v3654_v53, %s5183_s20  ;;  %3004 = vrot.lane.b32.xlu1 %v2968_v56, %s5182_s24  ;;  %v3498_v31 = vpack.c.bf16 %v3482_v32, %v3482_v32 }
 0x67d   : > { %v3587_v28 = vunpack.c.l.b16 %v3498_v31 }
 0x680   : > { %v3569_v12 = vpop.f32.mrf.mxu0 }
 0x681   : > { %v3655_v59 = vpack.c.bf16 %v3569_v12, %v3569_v12  ;;  %v2311_v23 = vpop.permute.xlu2 %2310  ;;  %2326 = vrot.lane.b32.xlu0 %v2286_v11, %s5181_s22 }
 0x682   : > { %2359 = vst.msk [vmem:[#allocation3] sm:$0xf] %vm2358_vm9, %v2311_v23  ;;  %v3446_v20 = vpop.xlane.xlu1 %3445  ;;  %v2290_v23 = vpack.c.bf16 %v7386_v27, %v7386_v27 }
 0x683   : > { %2324 = vrot.lane.b32.xlu2 %v2285_v1, %s5181_s22  ;;  %3692 = vrot.lane.b32.xlu1 %v3655_v59, %s5183_s20 }
 0x68a   : > { %v3455_v54 = vpop.xlane.xlu1 %3454 }
 0x68b   : > { %3008 = vrot.lane.b32.xlu1 %v2970_v13, %s5182_s24 }
 0x698   : > { %v3443_v5 = vpop.xlane.xlu0 %3442 }
 0x699   : > { %4848 = vrcp.f32 %v3443_v5 }
 0x69a   : > { %4850 = vrcp.f32 %v3446_v20 }
 0x69b   : > { %4852 = vrcp.f32 %v3449_v37 }
 0x69f   : > { %v4849_v29 = vpop.eup %4848 }
 0x6a0   : > { %v3483_v50 = vmul.f32 %v4849_v29, %v7284_v47  ;;  %v4851_v62 = vpop.eup %4850  ;;  %v3452_v57 = vpop.xlane.xlu0 %3451 }
 0x6a1   : > { %v4853_v14 = vpop.eup %4852  ;;  %v3484_v40 = vmul.f32 %v4851_v62, %v7258_v48  ;;  %4854 = vrcp.f32 %v3452_v57 }
 0x6a2   : > { %v3499_v44 = vpack.c.bf16 %v3483_v50, %v3483_v50  ;;  %v2997_v55 = vpop.permute.xlu1 %2996  ;;  %v3485_v49 = vmul.f32 %v4853_v14, %v7250_v25  ;;  %4856 = vrcp.f32 %v3455_v54 }
 0x6a3   : > { %3045 = vst.msk [vmem:[#allocation3] sm:$0xf] %vm3044_vm10, %v2997_v55  ;;  %v7393_v24 = vpop.f32.mrf.mxu3  ;;  %v3500_v22 = vpack.c.bf16 %v3484_v40, %v3484_v40 }
 0x6a4   : > { %v3588_v15 = vunpack.c.l.b16 %v3499_v44  ;;  %v3501_v58 = vpack.c.bf16 %v3485_v49, %v3485_v49  ;;  %v2292_v44 = vpack.c.bf16 %v7393_v24, %v7393_v24 }
 0x6a5   : > { %v3589_v26 = vunpack.c.l.b16 %v3500_v22 }
 0x6a6   : > { %v3594_v18 = vpack.c.b16 %v3588_v15, %v3587_v28  ;;  %v3590_v19 = vunpack.c.l.b16 %v3501_v58  ;;  %v2289_v58 = vpack.c.bf16 %v7381_v9, %v7381_v9 }
 0x6a7   : > { %v4855_v43 = vpop.eup %4854 }
 0x6a8   : > { %4300 = vmatmul.msk.bf16.gmra.mxu3 %vm1317_vm4, %v3594_v18  ;;  %v3595_v35 = vpack.c.b16 %v3590_v19, %v3589_v26  ;;  %v4857_v25 = vpop.eup %4856  ;;  %v3486_v34 = vmul.f32 %v4855_v43, %v7290_v52 }
 0x6a9   : > { %v3487_v45 = vmul.f32 %v4857_v25, %v7266_v30  ;;  %v2291_v25 = vpack.c.bf16 %v7388_v63, %v7388_v63 }
 0x6aa   : > { %v3502_v0 = vpack.c.bf16 %v3486_v34, %v3486_v34 }
 0x6ab   : > { %v7397_v47 = vpop.f32.mrf.mxu3  ;;  %v3503_v52 = vpack.c.bf16 %v3487_v45, %v3487_v45 }
 0x6ac   : > { %v3591_v30 = vunpack.c.l.b16 %v3502_v0 }
 0x6ad   : > { %v3592_v61 = vunpack.c.l.b16 %v3503_v52 }
 0x6af   : > { %v3596_v53 = vpack.c.b16 %v3592_v61, %v3591_v30 }
 0x6b3   : > { %v2944_v7 = vpop.f32.mrf.mxu3  ;;  %v2313_v39 = vpop.permute.xlu0 %2312 }
 0x6b4   : > { %2360 = vst.msk [vmem:[#allocation3 + $0x4] sm:$0xf] %vm2358_vm9, %v2313_v39  ;;  %v2972_v56 = vpack.c.bf16 %v2944_v7, %v2944_v7 }
 0x6b5   : > { %v3683_v21 = vpop.permute.xlu2 %3682  ;;  %v3572_v36 = vpop.f32.mrf.mxu0 }
 0x6b6   : > { %3731 = vst.msk [vmem:[#allocation3] sm:$0xf] %vm3730_vm11, %v3683_v21  ;;  %v3656_v48 = vpack.c.bf16 %v3572_v36, %v3572_v36 }
 0x6b8   : > { %3694 = vrot.lane.b32.xlu2 %v3656_v48, %s5183_s20  ;;  %4301 = vmatmul.msk.bf16.gmra.mxu3 %vm1317_vm4, %v3595_v35 }
 0x6bb   : > { %v2946_v6 = vpop.f32.mrf.mxu3  ;;  %v2999_v8 = vpop.permute.xlu0 %2998 }
 0x6bc   : > { %v2973_v4 = vpack.c.bf16 %v2946_v6, %v2946_v6  ;;  %3046 = vst.msk [vmem:[#allocation3 + $0x4] sm:$0xf] %vm3044_vm10, %v2999_v8 }
 0x6bd   : > { %v2317_v41 = vpop.permute.xlu2 %2316  ;;  %v3574_v17 = vpop.f32.mrf.mxu0 }
 0x6be   : > { %2362 = vst.msk [vmem:[#allocation3 + $0xc] sm:$0xf] %vm2358_vm9, %v2317_v41  ;;  %v3657_v38 = vpack.c.bf16 %v3574_v17, %v3574_v17  ;;  %3014 = vrot.lane.b32.xlu0 %v2973_v4, %s5182_s24 }
 0x6c0   : > { %2328 = vrot.lane.b32.xlu2 %v2287_v2, %s5181_s22  ;;  %3696 = vrot.lane.b32.xlu1 %v3657_v38, %s5183_s20  ;;  %v2293_v2 = vpack.c.bf16 %v7397_v47, %v7397_v47 }
 0x6c3   : > { %v7413_v42 = vpop.f32.mrf.mxu3  ;;  %v2315_v3 = vpop.permute.xlu0 %2314 }
 0x6c4   : > { %2361 = vst.msk [vmem:[#allocation3 + $0x8] sm:$0xf] %vm2358_vm9, %v2315_v3  ;;  %v2974_v19 = vpack.c.bf16 %v7413_v42, %v7413_v42 }
 0x6c5   : > { %v3687_v33 = vpop.permute.xlu2 %3686 }
 0x6c6   : > { %2330 = vrot.lane.b32.xlu0 %v2288_v16, %s5181_s22 }
 0x6c8   : > { %3012 = vrot.lane.b32.xlu1 %v2972_v56, %s5182_s24  ;;  %4302 = vmatmul.msk.bf16.gmra.mxu3 %vm1317_vm4, %v3596_v53  ;;  %v7492_v53 = vld [vmem:[%s7841_s12] ss:$0 sm:$0xff] }
 0x6cb   : > { %v2951_v37 = vpop.f32.mrf.mxu3  ;;  %v3003_v11 = vpop.permute.xlu0 %3002 }
 0x6cc   : > { %v2975_v12 = vpack.c.bf16 %v2951_v37, %v2951_v37  ;;  %3048 = vst.msk [vmem:[#allocation3 + $0xc] sm:$0xf] %vm3044_vm10, %v3003_v11 }
 0x6cd   : > { %v2321_v1 = vpop.permute.xlu2 %2320 }
 0x6ce   : > { %2364 = vst.msk [vmem:[#allocation3 + $0x14] sm:$0xf] %vm2358_vm9, %v2321_v1  ;;  %3018 = vrot.lane.b32.xlu0 %v2975_v12, %s5182_s24 }
 0x6d3   : > { %v7424_v46 = vpop.f32.mrf.mxu3  ;;  %v2319_v59 = vpop.permute.xlu0 %2318 }
 0x6d4   : > { %2363 = vst.msk [vmem:[#allocation3 + $0x10] sm:$0xf] %vm2358_vm9, %v2319_v59  ;;  %v2976_v10 = vpack.c.bf16 %v7424_v46, %v7424_v46 }
 0x6d5   : > { %v3691_v13 = vpop.permute.xlu2 %3690  ;;  %v3685_v20 = vpop.permute.xlu1 %3684 }
 0x6d6   : > { %3732 = vst.msk [vmem:[#allocation3 + $0x4] sm:$0xf] %vm3730_vm11, %v3685_v20  ;;  %2334 = vrot.lane.b32.xlu0 %v2290_v23, %s5181_s22 }
 0x6db   : > { %v2956_v5 = vpop.f32.mrf.mxu3  ;;  %v3007_v51 = vpop.permute.xlu0 %3006 }
 0x6dc   : > { %v2977_v54 = vpack.c.bf16 %v2956_v5, %v2956_v5  ;;  %3050 = vst.msk [vmem:[#allocation3 + $0x14] sm:$0xf] %vm3044_vm10, %v3007_v51 }
 0x6dd   : > { %v2325_v32 = vpop.permute.xlu2 %2324  ;;  %v3001_v29 = vpop.permute.xlu1 %3000  ;;  %v4395_v31 = vld [vmem:[#allocation3] sm:$0xff] }
 0x6de   : > { %2366 = vst.msk [vmem:[#allocation3 + $0x1c] sm:$0xf] %vm2358_vm9, %v2325_v32  ;;  %3022 = vrot.lane.b32.xlu0 %v2977_v54, %s5182_s24  ;;  %4343 = vmatmul.msk.bf16.vlgmr.msrb.gmra.mxu1 %vm484_vm0, %v4395_v31 }
 0x6df   : > { %3047 = vst.msk [vmem:[#allocation3 + $0x8] sm:$0xf] %vm3044_vm10, %v3001_v29 }
 0x6e0   : > { %3733 = vst.msk [vmem:[#allocation3 + $0x8] sm:$0xf] %vm3730_vm11, %v3687_v33 }
 0x6e3   : > { %v7437_v27 = vpop.f32.mrf.mxu3  ;;  %v2323_v50 = vpop.permute.xlu0 %2322 }
 0x6e4   : > { %2365 = vst.msk [vmem:[#allocation3 + $0x18] sm:$0xf] %vm2358_vm9, %v2323_v50  ;;  %v2978_v30 = vpack.c.bf16 %v7437_v27, %v7437_v27 }
 0x6e5   : > { %v3689_v55 = vpop.permute.xlu1 %3688 }
 0x6e6   : > { %3734 = vst.msk [vmem:[#allocation3 + $0xc] sm:$0xf] %vm3730_vm11, %v3689_v55  ;;  %2338 = vrot.lane.b32.xlu0 %v2292_v44, %s5181_s22 }
 0x6eb   : > { %v2961_v28 = vpop.f32.mrf.mxu3  ;;  %v3011_v15 = vpop.permute.xlu0 %3010 }
 0x6ec   : > { %v2979_v18 = vpack.c.bf16 %v2961_v28, %v2961_v28  ;;  %3052 = vst.msk [vmem:[#allocation3 + $0x1c] sm:$0xf] %vm3044_vm10, %v3011_v15 }
 0x6ed   : > { %v3005_v62 = vpop.permute.xlu1 %3004  ;;  %v4396_v14 = vld [vmem:[#allocation3 + $0x8] sm:$0xff] }
 0x6ee   : > { %3049 = vst.msk [vmem:[#allocation3 + $0x10] sm:$0xf] %vm3044_vm10, %v3005_v62  ;;  %3026 = vrot.lane.b32.xlu0 %v2979_v18, %s5182_s24  ;;  %4344 = vmatmul.msk.bf16.gmra.mxu1 %vm484_vm0, %v4396_v14 }
 0x6ef   : > { %3735 = vst.msk [vmem:[#allocation3 + $0x10] sm:$0xf] %vm3730_vm11, %v3691_v13 }
 0x6f3   : > { %v3630_v24 = vpop.f32.mrf.mxu3  ;;  %v2327_v40 = vpop.permute.xlu0 %2326 }
 0x6f4   : > { %v3658_v57 = vpack.c.bf16 %v3630_v24, %v3630_v24  ;;  %2367 = vst.msk [vmem:[#allocation3 + $0x20] sm:$0xf] %vm2358_vm9, %v2327_v40 }
 0x6f5   : > { %v3693_v49 = vpop.permute.xlu1 %3692 }
 0x6f6   : > { %3736 = vst.msk [vmem:[#allocation3 + $0x14] sm:$0xf] %vm3730_vm11, %v3693_v49  ;;  %3698 = vrot.lane.b32.xlu2 %v3658_v57, %s5183_s20 }
 0x6fb   : > { %v3632_v22 = vpop.f32.mrf.mxu3 }
 0x6fc   : > { %v3659_v26 = vpack.c.bf16 %v3632_v22, %v3632_v22 }
 0x6fd   : > { %v3009_v7 = vpop.permute.xlu1 %3008  ;;  %v4397_v39 = vld [vmem:[#allocation3 + $0x10] sm:$0xff] }
 0x6fe   : > { %3051 = vst.msk [vmem:[#allocation3 + $0x18] sm:$0xf] %vm3044_vm10, %v3009_v7  ;;  %2332 = vrot.lane.b32.xlu2 %v2289_v58, %s5181_s22  ;;  %3700 = vrot.lane.b32.xlu1 %v3659_v26, %s5183_s20 }
 0x6ff   : > { %4345 = vmatmul.msk.bf16.gmra.mxu1 %vm484_vm0, %v4397_v39 }
 0x706   : > { %3016 = vrot.lane.b32.xlu1 %v2974_v19, %s5182_s24 }
 0x712   : > { %v3695_v21 = vpop.permute.xlu2 %3694 }
 0x713   : > { %3737 = vst.msk [vmem:[#allocation3 + $0x18] sm:$0xf] %vm3730_vm11, %v3695_v21 }
 0x71a   : > { %v2329_v9 = vpop.permute.xlu2 %2328 }
 0x71b   : > { %2368 = vst.msk [vmem:[#allocation3 + $0x24] sm:$0xf] %vm2358_vm9, %v2329_v9 }
 0x72b   : > { %v3635_v36 = vpop.f32.mrf.mxu3 }
 0x72c   : > { %v3660_v48 = vpack.c.bf16 %v3635_v36, %v3635_v36 }
 0x72e   : > { %3702 = vrot.lane.b32.xlu2 %v3660_v48, %s5183_s20 }
 0x730   : > { %v3015_v35 = vpop.permute.xlu0 %3014 }
 0x731   : > { %3054 = vst.msk [vmem:[#allocation3 + $0x24] sm:$0xf] %vm3044_vm10, %v3015_v35 }
 0x732   : > { %v3697_v60 = vpop.permute.xlu1 %3696 }
 0x733   : > { %3738 = vst.msk [vmem:[#allocation3 + $0x1c] sm:$0xf] %vm3730_vm11, %v3697_v60  ;;  %v3637_v43 = vpop.f32.mrf.mxu3 }
 0x734   : > { %v3661_v34 = vpack.c.bf16 %v3637_v43, %v3637_v43 }
 0x736   : > { %2336 = vrot.lane.b32.xlu2 %v2291_v25, %s5181_s22  ;;  %3704 = vrot.lane.b32.xlu1 %v3661_v34, %s5183_s20 }
 0x738   : > { %v2331_v6 = vpop.permute.xlu0 %2330 }
 0x739   : > { %2369 = vst.msk [vmem:[#allocation3 + $0x28] sm:$0xf] %vm2358_vm9, %v2331_v6 }
 0x73a   : > { %v3013_v8 = vpop.permute.xlu1 %3012  ;;  %v4398_v45 = vld [vmem:[#allocation3 + $0x18] sm:$0xff] }
 0x73b   : > { %3053 = vst.msk [vmem:[#allocation3 + $0x20] sm:$0xf] %vm3044_vm10, %v3013_v8  ;;  %v3640_v4 = vpop.f32.mrf.mxu3  ;;  %4346 = vmatmul.msk.bf16.gmra.mxu1 %vm484_vm0, %v4398_v45 }
 0x73c   : > { %v3662_v41 = vpack.c.bf16 %v3640_v4, %v3640_v4 }
 0x73e   : > { %3020 = vrot.lane.b32.xlu1 %v2976_v10, %s5182_s24  ;;  %3706 = vrot.lane.b32.xlu2 %v3662_v41, %s5183_s20 }
 0x740   : > { %v3019_v63 = vpop.permute.xlu0 %3018 }
 0x743   : > { %v3642_v17 = vpop.f32.mrf.mxu3 }
 0x744   : > { %v3663_v0 = vpack.c.bf16 %v3642_v17, %v3642_v17 }
 0x746   : > { %2340 = vrot.lane.b32.xlu2 %v2293_v2, %s5181_s22  ;;  %3708 = vrot.lane.b32.xlu1 %v3663_v0, %s5183_s20 }
 0x748   : > { %v2335_v38 = vpop.permute.xlu0 %2334 }
 0x749   : > { %2371 = vst.msk [vmem:[#allocation3 + $0x30] sm:$0xf] %vm2358_vm9, %v2335_v38 }
 0x74b   : > { %v3645_v52 = vpop.f32.mrf.mxu3 }
 0x74c   : > { %v3664_v42 = vpack.c.bf16 %v3645_v52, %v3645_v52 }
 0x74e   : > { %3024 = vrot.lane.b32.xlu1 %v2978_v30, %s5182_s24  ;;  %3710 = vrot.lane.b32.xlu2 %v3664_v42, %s5183_s20  ;;  %s3913_s24 = scalar_lea.sflag [#allocation6], %s5417_s30 }
 0x750   : > { %v3699_v3 = vpop.permute.xlu2 %3698  ;;  %v3023_v47 = vpop.permute.xlu0 %3022 }
 0x751   : > { %3739 = vst.msk [vmem:[#allocation3 + $0x20] sm:$0xf] %vm3730_vm11, %v3699_v3 }
 0x753   : > { %v3647_v16 = vpop.f32.mrf.mxu3 }
 0x754   : > { %v3665_v61 = vpack.c.bf16 %v3647_v16, %v3647_v16 }
 0x756   : > { %3712 = vrot.lane.b32.xlu1 %v3665_v61, %s5183_s20  ;;  %s5040_s20 = sshra.s32 %s3931_s18, 4  ;;  %s5041_s20 = int_to_ptr.hbm [resolvable:$true] %s5040_s20 }
 0x757   : > { %s5042_s21 = scalar_lea.hbm %s5041_s20, 128  ;;  %p5047_p3 = scmp.lt.s32.totalorder %s5041_s20, %s7845_s29 }
 0x758   : > { %v2333_v33 = vpop.permute.xlu2 %2332  ;;  %v2339_v56 = vpop.permute.xlu0 %2338  ;;  %p5043_p1 = scmp.ne.s32.totalorder %s5041_s20, %s5042_s21  ;;  %p5048_p4 = scmp.lt.s32.totalorder %s5046_s4, %s5042_s21 }
 0x759   : > { %2370 = vst.msk [vmem:[#allocation3 + $0x2c] sm:$0xf] %vm2358_vm9, %v2333_v33 }
 0x75a   : > { %3056 = vst.msk [vmem:[#allocation3 + $0x2c] sm:$0xf] %vm3044_vm10, %v3019_v63  ;;  %p5044_p5 = pnand %p5043_p1, %p5365_p7  ;;  %p5049_p8 = por %p5048_p4, %p5047_p3 }
 0x75b   : > { %2373 = vst.msk [vmem:[#allocation3 + $0x38] sm:$0xf] %vm2358_vm9, %v2339_v56  ;;  %v3856_v37 = vpop.f32.mrf.mxu1 }
 0x75c   : > { %v3857_v11 = vadd.f32 %v7492_v53, %v3856_v37  ;;  %p5045_p6 = pneg %p5044_p5 }
 0x75e   : > { %3896 = vst.msk [vmem:[%s7499_s5] sm:$0xff] %vm484_vm0, %v3857_v11  ;;  %p5050_p9 = pnand %p5049_p8, %p5045_p6 }
 0x760   : > { %v3027_v28 = vpop.permute.xlu0 %3026 }
 0x763   : > { %v3858_v12 = vpop.f32.mrf.mxu1 }
 0x764   : > { %v3859_v1 = vadd.f32 %v7492_v53, %v3858_v12 }
 0x766   : > { %3898 = vst.msk [vmem:[%s7499_s5 + $0x10] sm:$0xff] %vm484_vm0, %v3859_v1 }
 0x76b   : > { %v3861_v46 = vpop.f32.mrf.mxu1 }
 0x76c   : > { %v3862_v59 = vadd.f32 %v7492_v53, %v3861_v46 }
 0x76e   : > { %3900 = vst.msk [vmem:[%s7499_s5 + $0x20] sm:$0xff] %vm484_vm0, %v3862_v59 }
 0x770   : > { %v3701_v23 = vpop.permute.xlu1 %3700 }
 0x771   : > { %3740 = vst.msk [vmem:[#allocation3 + $0x24] sm:$0xf] %vm3730_vm11, %v3701_v23 }
 0x773   : > { %v3863_v13 = vpop.f32.mrf.mxu1 }
 0x774   : > { %v3864_v20 = vadd.f32 %v7492_v53, %v3863_v13 }
 0x776   : > { %3902 = vst.msk [vmem:[%s7499_s5 + $0x30] sm:$0xff] %vm484_vm0, %v3864_v20 }
 0x778   : > { %v3017_v5 = vpop.permute.xlu1 %3016  ;;  %v4399_v51 = vld [vmem:[#allocation3 + $0x20] sm:$0xff] }
 0x779   : > { %3055 = vst.msk [vmem:[#allocation3 + $0x28] sm:$0xf] %vm3044_vm10, %v3017_v5  ;;  %4347 = vmatmul.msk.bf16.gmra.mxu1 %vm484_vm0, %v4399_v51 }
 0x77c   : > { %v3866_v54 = vpop.f32.mrf.mxu1 }
 0x77d   : > { %v3867_v32 = vadd.f32 %v7492_v53, %v3866_v54 }
 0x77f   : > { %3904 = vst.msk [vmem:[%s7499_s5 + $0x40] sm:$0xff] %vm484_vm0, %v3867_v32 }
 0x784   : > { %v3868_v29 = vpop.f32.mrf.mxu1 }
 0x785   : > { %v3869_v31 = vadd.f32 %v7492_v53, %v3868_v29 }
 0x787   : > { %3906 = vst.msk [vmem:[%s7499_s5 + $0x50] sm:$0xff] %vm484_vm0, %v3869_v31 }
 0x788   : > { %v3703_v27 = vpop.permute.xlu2 %3702 }
 0x789   : > { %3741 = vst.msk [vmem:[#allocation3 + $0x28] sm:$0xf] %vm3730_vm11, %v3703_v27 }
 0x790   : > { %v2337_v50 = vpop.permute.xlu2 %2336 }
 0x791   : > { %2372 = vst.msk [vmem:[#allocation3 + $0x34] sm:$0xf] %vm2358_vm9, %v2337_v50 }
 0x792   : > { %3058 = vst.msk [vmem:[#allocation3 + $0x34] sm:$0xf] %vm3044_vm10, %v3023_v47 }
 0x798   : > { %v3707_v44 = vpop.permute.xlu2 %3706 }
 0x7a0   : > { %v2341_v55 = vpop.permute.xlu2 %2340 }
 0x7a1   : > { %2374 = vst.msk [vmem:[#allocation3 + $0x3c] sm:$0xf] %vm2358_vm9, %v2341_v55 }
 0x7a2   : > { %3060 = vst.msk [vmem:[#allocation3 + $0x3c] sm:$0xf] %vm3044_vm10, %v3027_v28 }
 0x7a8   : > { %v3705_v15 = vpop.permute.xlu1 %3704  ;;  %v3711_v22 = vpop.permute.xlu2 %3710 }
 0x7a9   : > { %3742 = vst.msk [vmem:[#allocation3 + $0x2c] sm:$0xf] %vm3730_vm11, %v3705_v15 }
 0x7b0   : > { %v3021_v18 = vpop.permute.xlu1 %3020  ;;  %v4400_v62 = vld [vmem:[#allocation3 + $0x28] sm:$0xff] }
 0x7b1   : > { %3057 = vst.msk [vmem:[#allocation3 + $0x30] sm:$0xf] %vm3044_vm10, %v3021_v18  ;;  %4348 = vmatmul.msk.bf16.gmra.mxu1 %vm484_vm0, %v4400_v62 }
 0x7b2   : > { %3743 = vst.msk [vmem:[#allocation3 + $0x30] sm:$0xf] %vm3730_vm11, %v3707_v44 }
 0x7b8   : > { %v3709_v14 = vpop.permute.xlu1 %3708  ;;  %v3871_v24 = vpop.f32.mrf.mxu1 }
 0x7b9   : > { %3744 = vst.msk [vmem:[#allocation3 + $0x34] sm:$0xf] %vm3730_vm11, %v3709_v14  ;;  %v3872_v40 = vadd.f32 %v7492_v53, %v3871_v24 }
 0x7bb   : > { %3908 = vst.msk [vmem:[%s7499_s5 + $0x60] sm:$0xff] %vm484_vm0, %v3872_v40 }
 0x7c0   : > { %v3025_v57 = vpop.permute.xlu1 %3024  ;;  %v4401_v49 = vld [vmem:[#allocation3 + $0x30] sm:$0xff]  ;;  %v3873_v58 = vpop.f32.mrf.mxu1 }
 0x7c1   : > { %3059 = vst.msk [vmem:[#allocation3 + $0x38] sm:$0xf] %vm3044_vm10, %v3025_v57  ;;  %v3874_v26 = vadd.f32 %v7492_v53, %v3873_v58  ;;  %4349 = vmatmul.msk.bf16.gmra.mxu1 %vm484_vm0, %v4401_v49 }
 0x7c2   : > { %3745 = vst.msk [vmem:[#allocation3 + $0x38] sm:$0xf] %vm3730_vm11, %v3711_v22 }
 0x7c3   : > { %3910 = vst.msk [vmem:[%s7499_s5 + $0x70] sm:$0xff] %vm484_vm0, %v3874_v26 }
 0x7c8   : > { %v3713_v7 = vpop.permute.xlu1 %3712 }
 0x7c9   : > { %3746 = vst.msk [vmem:[#allocation3 + $0x3c] sm:$0xf] %vm3730_vm11, %v3713_v7 }
 0x7d0   : > { %v4402_v39 = vld [vmem:[#allocation3 + $0x38] sm:$0xff] }
 0x7d1   : > { %4350 = vmatmul.msk.bf16.gmra.mxu1 %vm484_vm0, %v4402_v39 }
 0x7f6   : > { %v3876_v19 = vpop.f32.mrf.mxu1 }
 0x7f7   : > { %v3877_v21 = vadd.f32 %v7492_v53, %v3876_v19 }
 0x7f9   : > { %3897 = vst.msk [vmem:[%s7499_s5 + $0x8] sm:$0xff] %vm484_vm0, %v3877_v21 }
 0x7fe   : > { %v3878_v9 = vpop.f32.mrf.mxu1 }
 0x7ff   : > { %v3879_v36 = vadd.f32 %v7492_v53, %v3878_v9 }
 0x801   : > { %3899 = vst.msk [vmem:[%s7499_s5 + $0x18] sm:$0xff] %vm484_vm0, %v3879_v36 }
 0x82e   : > { %v3881_v48 = vpop.f32.mrf.mxu1 }
 0x82f   : > { %v3882_v35 = vadd.f32 %v7492_v53, %v3881_v48 }
 0x831   : > { %3901 = vst.msk [vmem:[%s7499_s5 + $0x28] sm:$0xff] %vm484_vm0, %v3882_v35 }
 0x836   : > { %v3883_v60 = vpop.f32.mrf.mxu1 }
 0x837   : > { %v3884_v43 = vadd.f32 %v7492_v53, %v3883_v60 }
 0x839   : > { %3903 = vst.msk [vmem:[%s7499_s5 + $0x38] sm:$0xff] %vm484_vm0, %v3884_v43 }
 0x83e   : > { %v3886_v25 = vpop.f32.mrf.mxu1 }
 0x83f   : > { %v3887_v34 = vadd.f32 %v7492_v53, %v3886_v25 }
 0x841   : > { %3905 = vst.msk [vmem:[%s7499_s5 + $0x48] sm:$0xff] %vm484_vm0, %v3887_v34 }
 0x846   : > { %v3888_v6 = vpop.f32.mrf.mxu1 }
 0x847   : > { %v3889_v8 = vadd.f32 %v7492_v53, %v3888_v6 }
 0x849   : > { %3907 = vst.msk [vmem:[%s7499_s5 + $0x58] sm:$0xff] %vm484_vm0, %v3889_v8 }
 0x84e   : > { %v3891_v45 = vpop.f32.mrf.mxu1 }
 0x84f   : > { %v3892_v4 = vadd.f32 %v7492_v53, %v3891_v45 }
 0x851   : > { %3909 = vst.msk [vmem:[%s7499_s5 + $0x68] sm:$0xff] %vm484_vm0, %v3892_v4 }
 0x856   : > { %v3893_v10 = vpop.f32.mrf.mxu1 }
 0x857   : > { %v3894_v41 = vadd.f32 %v7492_v53, %v3893_v10 }
 0x859   : > { %3911 = vst.msk [vmem:[%s7499_s5 + $0x78] sm:$0xff] %vm484_vm0, %v3894_v41 }
 0x85a   : > { %5053 = shalt.err (!%p5050_p9)
}
 0x85b   : > { %s5184_s30 = smov 128  }
 0x85c   : > { %4422 = dma.vmem_to_hbm [thread:$0]  (%p5365_p7), %s3929_s14, 2048, %s3931_s18, %s3913_s24, %s5184_s30, %s5184_s30, %s5181_s22  }
 0x85d PF: > { %s7846_s5 = sld [smem:[#allocation19_spill]]  ;;  %p4452_p2 = scmp.ge.s32.totalorder %s5160_s19, 2 }
 0x85f   : > { %p4442_p10 = pnand %p4452_p2, %p5373_p12 }
 0x861   : > { %p4443_p11 = pneg %p4442_p10 }
 0x863   : > { %s3945_s27 = sand.u32 1, %s7846_s5  }
 0x864   : > { %s3946_s16 = scalar_lea.sflag [#allocation6], %s3945_s27 }
 0x865   : > { %5115 = dma.done.wait (%p4443_p11), %s3946_s16, 2048  }
 0x866   : > { %5117 = vsyncadd (%p4443_p11), %s3946_s16, 4294965248  ;;  %s29_s19 = sadd.s32 1, %s5160_s19   ;;  %s7848_s22 = sld [smem:[#allocation20_spill]] }
 0x867   : > { %p26_p13 = scmp.ge.s32.totalorder %s29_s19, 6   ;;  %s7849_s14 = sld [smem:[#allocation28_spill]] }
 0x868   : > { %s7850_s16 = sld [smem:[#allocation23_spill]]  ;;  %s7853_s30 = smov %s5124_s10 }
 0x869   : > { %s7851_s28 = sld [smem:[#allocation24_spill]]  ;;  %s7854_s10 = smov %s5128_s11 }
 0x86a   : > { %s7852_s18 = sld [smem:[#allocation25_spill]]  ;;  %s7855_s11 = smov %s5400_s26 }
 0x86b   : > { %s7856_s12 = smov %s5136_s13  ;;  %s7858_s15 = smov %s5152_s17 }
 0x86c   : > { %s7857_s13 = smov %s7848_s22  ;;  %28 = sbr.rel (!%p26_p13) target bundleno = 19 (0x13), region = 129 }
 0x86f   : > { %s7859_s17 = smov %s7851_s28 }
 0x871   :  { %3952 = vsyncpa [#allocation5], 1 }
 0x872   :  { %3954 = vsyncpa [#allocation5 + $0x1], 1 }
 0x873   :  { %3955 = vsyncpa [#allocation8], 1 }
 0x874   :  { %3957 = vsyncpa [#allocation8 + $0x1], 1 }
 0x875   :  { %3958 = vsyncpa [#allocation11], 1 }
 0x876   :  { %3959 = vsyncpa [#allocation6], 1 }
 0x877   :  { %3961 = vsyncpa [#allocation6 + $0x1], 1 }

</bundles_post_ra>
